<compile_context>
chip_gen: v7x
topology: tpu7x:2x2x1
jax: 0.10.0
libtpu: 0.0.40
codegen_flags: <defaults>
</compile_context>

<pallas_src>
import functools

import jax
import jax.numpy as jnp
from jax.experimental import pallas as pl
from jax.experimental.pallas import tpu as pltpu


def _round_up(v, m):
    return (v + m - 1) // m * m


# ------------------------------ fused kernel --------------------------------

def _sgdepth_fused_kernel(x_ref, w0_ref, b0_ref, w1_ref, b1_ref, w2_ref,
                          b2_ref, o_ref, pat_ref, d_ref, p_ref,
                          *, wp, h, m_pat):
    """dec0 -> (upsample-folded) dec1 -> (parity-folded) seg for one image.

    Activations live in VMEM in a flat padded-width layout: flat index
    = row*wp + col over an (h+2, wp) padded image, so every 3x3 tap is a
    contiguous lane slice at offset dy*wp + dx.
    """
    offsets = tuple(dy * wp + dx for dy in range(3) for dx in range(3))

    def conv(src_ref, w_ref, b_ref, elu):
        c = src_ref.shape[0]
        # Stack the nine shifted slabs -> (9*c, m_pat), then one stacked-K dot.
        for k in range(9):
            off = offsets[k]
            pat_ref[k * c:(k + 1) * c, :] = src_ref[:, off:off + m_pat]
        acc = jnp.dot(w_ref[...], pat_ref[:9 * c, :],
                      preferred_element_type=jnp.float32)
        acc = acc + b_ref[...]
        if elu:
            # ELU(alpha=1); exp argument clamped to <= 0.
            # TODO(synk): switch to jnp.expm1 for bit-exact torch ELU numerics
            # once confirmed to lower on all Mosaic targets.
            acc = jnp.where(acc > 0.0, acc,
                            jnp.exp(jnp.minimum(acc, 0.0)) - 1.0)
        return acc

    def write_edge_padded(dst_ref, acc):
        # Store `acc` ((c, m_pat) flat conv output) into dst_ref as the
        # edge-padded flat input of the NEXT conv:
        #   * bulk copy shifted by wp+1 puts valid pixels at interior slots,
        #   * left/right pad columns take their horizontal neighbours,
        #   * top/bottom pad rows copy the adjacent interior rows.
        c, fp = dst_ref.shape
        v = acc.astype(dst_ref.dtype)
        z_l = jnp.zeros((c, wp + 1), dst_ref.dtype)
        z_r = jnp.zeros((c, fp - wp - 1 - m_pat), dst_ref.dtype)
        buf = jnp.concatenate([z_l, v, z_r], axis=1)
        nxt = jnp.concatenate([buf[:, 1:], buf[:, :1]], axis=1)    # buf[j+1]
        prv = jnp.concatenate([buf[:, :1], buf[:, :-1]], axis=1)   # buf[j-1]
        col = jax.lax.broadcasted_iota(jnp.int32, (1, fp), 1) % wp
        buf = jnp.where(col == 0, nxt,
                        jnp.where(col == wp - 1, prv, buf))
        dst_ref[...] = buf
        dst_ref[:, 0:wp] = buf[:, wp:2 * wp]                        # top row
        dst_ref[:, (h + 1) * wp:(h + 2) * wp] = buf[:, h * wp:(h + 1) * wp]

    # dec0: ConvBlock (Conv3x3 reflect-pad done in wrapper + ELU).
    write_edge_padded(d_ref, conv(x_ref, w0_ref, b0_ref, elu=True))
    # dec1: ConvBlock on nearest-up2(d); the upsample is folded into the
    # weights -> 4*C_out parity planes on the original grid (edge pad of d).
    write_edge_padded(p_ref, conv(d_ref, w1_ref, b1_ref, elu=True))
    # seg head: Conv3x3 on the interleaved x2 image with the parity
    # de-interleave folded into the weights -> 4*num_classes parity planes.
    o_ref[...] = conv(p_ref, w2_ref, b2_ref, elu=False)


# ------------------------------ JAX wrapper ----------------------------------

def sgdepth_seg_forward(x_nchw, prep):
    """SGDepthSeg forward: decoder tail -> seg head -> x_lin (NCHW logits)."""
    n, c_in, h, w = x_nchw.shape
    c_mid = prep["w0"].shape[0]
    c_p = prep["w1"].shape[0]        # 4 * C_out (parity planes of the x2 map)
    c_o4 = prep["w2"].shape[0]       # 4 * num_classes
    assert c_in % 8 == 0 and c_mid % 8 == 0 and c_p % 8 == 0, \
        "channel counts must be multiples of 8"  # TODO(synk): pad channels

    wp = w + 2
    m = h * wp                                   # valid flat outputs per image
    m_pat = _round_up(m, 128)                    # lane-dense patch/output width
    fp = _round_up(2 * wp + 2 + m_pat, 128)      # flat padded-activation length

    # Only XLA-side activation op left: reflect-pad the network input once and
    # lay it out flat. Every later pad / upsample / de-interleave is folded
    # into the kernel or into the weights.
    xp = jnp.pad(x_nchw, ((0, 0), (0, 0), (1, 1), (1, 1)), mode="reflect")
    xf = xp.reshape(n, c_in, (h + 2) * wp).astype(jnp.bfloat16)
    xf = jnp.pad(xf, ((0, 0), (0, 0), (0, fp - (h + 2) * wp)))

    c_max = max(c_in, c_mid, c_p)
    kernel = functools.partial(_sgdepth_fused_kernel, wp=wp, h=h, m_pat=m_pat)

    flops = 2 * n * m_pat * 9 * (c_in * c_mid + c_mid * c_p + c_p * c_o4)
    transc = n * m_pat * (c_mid + c_p)
    bytes_acc = (xf.size * 2 + n * c_o4 * m_pat * 4 +
                 2 * (prep["w0"].size + prep["w1"].size + prep["w2"].size))

    # TODO(synk): for real resolutions add a second ("parallel") grid axis over
    # H bands with a 1-row halo and size vmem_limit_bytes from the blocks
    # (v7x: 64 MiB physical VMEM, 2 TensorCores).
    out = pl.pallas_call(
        kernel,
        out_shape=jax.ShapeDtypeStruct((n, c_o4, m_pat), jnp.float32),
        grid=(n,),
        in_specs=[
            pl.BlockSpec((None, c_in, fp), lambda i: (i, 0, 0)),
            pl.BlockSpec((c_mid, 9 * c_in), lambda i: (0, 0)),   # resident
            pl.BlockSpec((c_mid, 1), lambda i: (0, 0)),
            pl.BlockSpec((c_p, 9 * c_mid), lambda i: (0, 0)),
            pl.BlockSpec((c_p, 1), lambda i: (0, 0)),
            pl.BlockSpec((c_o4, 9 * c_p), lambda i: (0, 0)),
            pl.BlockSpec((c_o4, 1), lambda i: (0, 0)),
        ],
        out_specs=pl.BlockSpec((None, c_o4, m_pat), lambda i: (i, 0, 0)),
        scratch_shapes=[
            pltpu.VMEM((9 * c_max, m_pat), jnp.bfloat16),    # stacked patches
            pltpu.VMEM((c_mid, fp), jnp.bfloat16),           # edge-padded d
            pltpu.VMEM((c_p, fp), jnp.bfloat16),             # edge-padded p
        ],
        compiler_params=pltpu.CompilerParams(
            dimension_semantics=("parallel",),
            vmem_limit_bytes=64 * 1024 * 1024),
        cost_estimate=pl.CostEstimate(flops=flops, transcendentals=transc,
                                      bytes_accessed=bytes_acc),
    )(xf, prep["w0"], prep["b0"], prep["w1"], prep["b1"],
      prep["w2"], prep["b2"])

    # De-interleave the four output-parity planes into full-res NCHW logits.
    nc = c_o4 // 4
    planes = out[:, :, :m].reshape(n, c_o4, h, wp)[:, :, :, :w]
    planes = planes.reshape(n, 2, 2, nc, h, w)
    x_lin = planes.transpose(0, 3, 4, 1, 5, 2).reshape(n, nc, 2 * h, 2 * w)
    # TODO(synk): nn.Softmax2d is constructed in the PyTorch __init__ but not
    # applied in forward, so it is intentionally omitted here too.
    return x_lin


# ----------------------------- parameter prep --------------------------------

def _pack_w9(w_oihw):
    """(Cout, Cin, 3, 3) -> (Cout, 9*Cin) bf16; K ordered (dy, dx, ci)."""
    o, c = w_oihw.shape[:2]
    return w_oihw.transpose(0, 2, 3, 1).reshape(o, 9 * c).astype(jnp.bfloat16)


def _expand_upsample_conv_weights(w_oihw, b):
    """Fold nearest-x2 upsample into the conv that follows it.

    conv3x3(reflect_pad(nearest_up2(d)))[co, 2s+pr, 2t+pc]
        == conv3x3(edge_pad(d), W_ext, b_ext)[(pr*2+pc)*Cout + co, s, t]
    """
    mix = (jnp.array([[1., 0., 0.], [0., 1., 1.]], jnp.float32),   # even parity
           jnp.array([[1., 1., 0.], [0., 0., 1.]], jnp.float32))   # odd parity
    blocks = []
    for pr in (0, 1):
        for pc in (0, 1):
            k22 = jnp.einsum("ad,be,oide->oiab", mix[pr], mix[pc],
                             w_oihw.astype(jnp.float32))
            k33 = jnp.zeros_like(w_oihw).at[:, :, pr:pr + 2, pc:pc + 2].set(k22)
            blocks.append(k33)
    return jnp.concatenate(blocks, axis=0), jnp.tile(b, 4)


def _fold_deinterleave_into_conv_weights(w_oihw, b):
    """Fold the 2x2 parity de-interleave into the 3x3 conv that follows it.

    conv3x3(reflect_pad(interleave(p)))[o, 2s+qr, 2t+qc]
        == conv3x3(edge_pad(p), W_ext, b_ext)[(qr*2+qc)*O + o, s, t]
    where p holds the four parity planes ((pr*2+pc)*C + c).  Each tap of the
    x2 conv maps to exactly one (parity, tap) of the folded conv, so W_ext is
    a pure re-indexing of W (no summing, hence exact).
    """
    amap = jnp.zeros((2, 2, 3, 3), jnp.float32)      # [q, pr, ky, dy]
    for q, dy, pr, ky in ((0, 0, 1, 0), (0, 1, 0, 1), (0, 2, 1, 1),
                          (1, 0, 0, 1), (1, 1, 1, 1), (1, 2, 0, 2)):
        amap = amap.at[q, pr, ky, dy].set(1.0)
    o, c = w_oihw.shape[:2]
    blocks = []
    for qr in (0, 1):
        for qc in (0, 1):
            k = jnp.einsum("pad,qbe,ocde->opqcab", amap[qr], amap[qc],
                           w_oihw.astype(jnp.float32))
            blocks.append(k.reshape(o, 4 * c, 3, 3))
    return jnp.concatenate(blocks, axis=0), jnp.tile(b, 4)


def prepare_params(params):
    """Hoist all weight packing / folding out of the per-forward path."""
    w1x, b1x = _expand_upsample_conv_weights(params["dec1_w"], params["dec1_b"])
    w2x, b2x = _fold_deinterleave_into_conv_weights(params["seg_w"],
                                                    params["seg_b"])

    def _b(v):
        return v.reshape(-1, 1).astype(jnp.float32)

    return {
        "w0": _pack_w9(params["dec0_w"]), "b0": _b(params["dec0_b"]),
        "w1": _pack_w9(w1x),              "b1": _b(b1x),
        "w2": _pack_w9(w2x),              "b2": _b(b2x),
    }


# ---------------------------- pure-JAX reference -----------------------------

def _ref_conv3x3(x, w, b, act, pad_mode):
    n, ci, h, wd = x.shape
    co = w.shape[0]
    xp = jnp.pad(x, ((0, 0), (0, 0), (1, 1), (1, 1)),
                 mode=pad_mode).astype(jnp.bfloat16)
    wb = w.astype(jnp.bfloat16)
    acc = jnp.zeros((n, co, h, wd), jnp.float32)
    for dy in range(3):
        for dx in range(3):
            acc = acc + jnp.einsum("nihw,oi->nohw",
                                   xp[:, :, dy:dy + h, dx:dx + wd],
                                   wb[:, :, dy, dx],
                                   preferred_element_type=jnp.float32)
    acc = acc + b.reshape(1, co, 1, 1).astype(jnp.float32)
    if act == "elu":
        acc = jnp.where(acc > 0.0, acc, jnp.exp(jnp.minimum(acc, 0.0)) - 1.0)
    return acc


def sgdepth_seg_reference(x, params):
    d = _ref_conv3x3(x, params["dec0_w"], params["dec0_b"], "elu", "reflect")
    d = d.astype(jnp.bfloat16)
    u = jnp.repeat(jnp.repeat(d, 2, axis=2), 2, axis=3)     # explicit upsample
    e = _ref_conv3x3(u, params["dec1_w"], params["dec1_b"], "elu", "reflect")
    e = e.astype(jnp.bfloat16)
    return _ref_conv3x3(e, params["seg_w"], params["seg_b"], "none", "reflect")


# ------------------------------- param setup ---------------------------------

def make_params(c_in, c_mid, c_out, n_classes, key):
    ks = jax.random.split(key, 6)
    scale = 0.1
    return {
        "dec0_w": scale * jax.random.normal(ks[0], (c_mid, c_in, 3, 3), jnp.float32),
        "dec0_b": scale * jax.random.normal(ks[1], (c_mid,), jnp.float32),
        "dec1_w": scale * jax.random.normal(ks[2], (c_out, c_mid, 3, 3), jnp.float32),
        "dec1_b": scale * jax.random.normal(ks[3], (c_out,), jnp.float32),
        "seg_w": scale * jax.random.normal(ks[4], (n_classes, c_out, 3, 3), jnp.float32),
        "seg_b": scale * jax.random.normal(ks[5], (n_classes,), jnp.float32),
    }


if __name__ == "__main__":
    key = jax.random.PRNGKey(0)
    k_x, k_p = jax.random.split(key)

    # Small shapes: batch=2, decoder-tail input channels=8, spatial=16x16.
    N, C_IN, H, W = 2, 8, 16, 16
    C_MID, C_OUT, N_CLASSES = 16, 16, 8

    x = jax.random.normal(k_x, (N, C_IN, H, W), jnp.float32)
    params = make_params(C_IN, C_MID, C_OUT, N_CLASSES, k_p)
    prep = prepare_params(params)

    fwd = jax.jit(sgdepth_seg_forward)
    out = jax.block_until_ready(fwd(x, prep))

    assert out.shape == (N, N_CLASSES, 2 * H, 2 * W), out.shape
    assert out.dtype == jnp.float32
    assert bool(jnp.all(jnp.isfinite(out)))

    # Numerical check against a plain-JAX reference that uses the explicit
    # (unfused) upsample + de-interleave path; tolerance accounts for the bf16
    # streams and the bf16 rounding of the folded (summed) dec1 weights.
    ref = sgdepth_seg_reference(x, params)
    max_diff = float(jnp.max(jnp.abs(out - ref)))
    assert jnp.allclose(out, ref, rtol=0.1, atol=0.1), f"max |diff| = {max_diff}"

    print("KERNEL_OK")
</pallas_src>

<mosaic_0001>
module attributes {stable_mosaic.version = 11 : i64} {
  func.func @_sgdepth_fused_kernel(%arg0: i32, %arg1: memref<1x8x512xbf16, #tpu.memory_space<vmem>>, %arg2: memref<16x72xbf16, #tpu.memory_space<vmem>>, %arg3: memref<16x1xf32, #tpu.memory_space<vmem>>, %arg4: memref<64x144xbf16, #tpu.memory_space<vmem>>, %arg5: memref<64x1xf32, #tpu.memory_space<vmem>>, %arg6: memref<32x576xbf16, #tpu.memory_space<vmem>>, %arg7: memref<32x1xf32, #tpu.memory_space<vmem>>, %arg8: memref<1x32x384xf32, #tpu.memory_space<vmem>>, %arg9: memref<576x384xbf16, #tpu.memory_space<vmem>>, %arg10: memref<16x512xbf16, #tpu.memory_space<vmem>>, %arg11: memref<64x512xbf16, #tpu.memory_space<vmem>>) attributes {dimension_semantics = [#tpu.dimension_semantics<parallel>], iteration_bounds = array<i64: 2>, scalar_prefetch = 0 : i64, scratch_operands = 3 : i64, tpu.core_type = #tpu.core_type<tc>, window_params = [{transform_indices = @transform_0, window_bounds = array<i64: 1, 8, 512>}, {pipeline_mode = #tpu.pipeline_mode<synchronous>, transform_indices = @transform_1, window_bounds = array<i64: 16, 72>}, {pipeline_mode = #tpu.pipeline_mode<synchronous>, transform_indices = @transform_2, window_bounds = array<i64: 16, 1>}, {pipeline_mode = #tpu.pipeline_mode<synchronous>, transform_indices = @transform_3, window_bounds = array<i64: 64, 144>}, {pipeline_mode = #tpu.pipeline_mode<synchronous>, transform_indices = @transform_4, window_bounds = array<i64: 64, 1>}, {pipeline_mode = #tpu.pipeline_mode<synchronous>, transform_indices = @transform_5, window_bounds = array<i64: 32, 576>}, {pipeline_mode = #tpu.pipeline_mode<synchronous>, transform_indices = @transform_6, window_bounds = array<i64: 32, 1>}, {transform_indices = @transform_7, window_bounds = array<i64: 1, 32, 384>}]} {
    %c0 = arith.constant 0 : index
    %c0_0 = arith.constant 0 : index
    %c0_1 = arith.constant 0 : index
    %0 = vector.load %arg1[%c0, %c0_0, %c0_1] : memref<1x8x512xbf16, #tpu.memory_space<vmem>>, vector<1x8x384xbf16>
    %1 = vector.shape_cast %0 : vector<1x8x384xbf16> to vector<8x384xbf16>
    %c0_2 = arith.constant 0 : index
    %c0_3 = arith.constant 0 : index
    %2 = vector.load %arg9[%c0_2, %c0_3] : memref<576x384xbf16, #tpu.memory_space<vmem>>, vector<8x384xbf16>
    tpu.vector_store %arg9[%c0_2, %c0_3], %1 {strides = array<i32>} : memref<576x384xbf16, #tpu.memory_space<vmem>>, vector<8x384xbf16>,
    %c0_4 = arith.constant 0 : index
    %c0_5 = arith.constant 0 : index
    %c1 = arith.constant 1 : index
    %3 = vector.load %arg1[%c0_4, %c0_5, %c1] : memref<1x8x512xbf16, #tpu.memory_space<vmem>>, vector<1x8x384xbf16>
    %4 = vector.shape_cast %3 : vector<1x8x384xbf16> to vector<8x384xbf16>
    %c8 = arith.constant 8 : index
    %c0_6 = arith.constant 0 : index
    %5 = vector.load %arg9[%c8, %c0_6] : memref<576x384xbf16, #tpu.memory_space<vmem>>, vector<8x384xbf16>
    tpu.vector_store %arg9[%c8, %c0_6], %4 {strides = array<i32>} : memref<576x384xbf16, #tpu.memory_space<vmem>>, vector<8x384xbf16>,
    %c0_7 = arith.constant 0 : index
    %c0_8 = arith.constant 0 : index
    %c2 = arith.constant 2 : index
    %6 = vector.load %arg1[%c0_7, %c0_8, %c2] : memref<1x8x512xbf16, #tpu.memory_space<vmem>>, vector<1x8x384xbf16>
    %7 = vector.shape_cast %6 : vector<1x8x384xbf16> to vector<8x384xbf16>
    %c16 = arith.constant 16 : index
    %c0_9 = arith.constant 0 : index
    %8 = vector.load %arg9[%c16, %c0_9] : memref<576x384xbf16, #tpu.memory_space<vmem>>, vector<8x384xbf16>
    tpu.vector_store %arg9[%c16, %c0_9], %7 {strides = array<i32>} : memref<576x384xbf16, #tpu.memory_space<vmem>>, vector<8x384xbf16>,
    %c0_10 = arith.constant 0 : index
    %c0_11 = arith.constant 0 : index
    %c18 = arith.constant 18 : index
    %9 = vector.load %arg1[%c0_10, %c0_11, %c18] : memref<1x8x512xbf16, #tpu.memory_space<vmem>>, vector<1x8x384xbf16>
    %10 = vector.shape_cast %9 : vector<1x8x384xbf16> to vector<8x384xbf16>
    %c24 = arith.constant 24 : index
    %c0_12 = arith.constant 0 : index
    %11 = vector.load %arg9[%c24, %c0_12] : memref<576x384xbf16, #tpu.memory_space<vmem>>, vector<8x384xbf16>
    tpu.vector_store %arg9[%c24, %c0_12], %10 {strides = array<i32>} : memref<576x384xbf16, #tpu.memory_space<vmem>>, vector<8x384xbf16>,
    %c0_13 = arith.constant 0 : index
    %c0_14 = arith.constant 0 : index
    %c19 = arith.constant 19 : index
    %12 = vector.load %arg1[%c0_13, %c0_14, %c19] : memref<1x8x512xbf16, #tpu.memory_space<vmem>>, vector<1x8x384xbf16>
    %13 = vector.shape_cast %12 : vector<1x8x384xbf16> to vector<8x384xbf16>
    %c32 = arith.constant 32 : index
    %c0_15 = arith.constant 0 : index
    %14 = vector.load %arg9[%c32, %c0_15] : memref<576x384xbf16, #tpu.memory_space<vmem>>, vector<8x384xbf16>
    tpu.vector_store %arg9[%c32, %c0_15], %13 {strides = array<i32>} : memref<576x384xbf16, #tpu.memory_space<vmem>>, vector<8x384xbf16>,
    %c0_16 = arith.constant 0 : index
    %c0_17 = arith.constant 0 : index
    %c20 = arith.constant 20 : index
    %15 = vector.load %arg1[%c0_16, %c0_17, %c20] : memref<1x8x512xbf16, #tpu.memory_space<vmem>>, vector<1x8x384xbf16>
    %16 = vector.shape_cast %15 : vector<1x8x384xbf16> to vector<8x384xbf16>
    %c40 = arith.constant 40 : index
    %c0_18 = arith.constant 0 : index
    %17 = vector.load %arg9[%c40, %c0_18] : memref<576x384xbf16, #tpu.memory_space<vmem>>, vector<8x384xbf16>
    tpu.vector_store %arg9[%c40, %c0_18], %16 {strides = array<i32>} : memref<576x384xbf16, #tpu.memory_space<vmem>>, vector<8x384xbf16>,
    %c0_19 = arith.constant 0 : index
    %c0_20 = arith.constant 0 : index
    %c36 = arith.constant 36 : index
    %18 = vector.load %arg1[%c0_19, %c0_20, %c36] : memref<1x8x512xbf16, #tpu.memory_space<vmem>>, vector<1x8x384xbf16>
    %19 = vector.shape_cast %18 : vector<1x8x384xbf16> to vector<8x384xbf16>
    %c48 = arith.constant 48 : index
    %c0_21 = arith.constant 0 : index
    %20 = vector.load %arg9[%c48, %c0_21] : memref<576x384xbf16, #tpu.memory_space<vmem>>, vector<8x384xbf16>
    tpu.vector_store %arg9[%c48, %c0_21], %19 {strides = array<i32>} : memref<576x384xbf16, #tpu.memory_space<vmem>>, vector<8x384xbf16>,
    %c0_22 = arith.constant 0 : index
    %c0_23 = arith.constant 0 : index
    %c37 = arith.constant 37 : index
    %21 = vector.load %arg1[%c0_22, %c0_23, %c37] : memref<1x8x512xbf16, #tpu.memory_space<vmem>>, vector<1x8x384xbf16>
    %22 = vector.shape_cast %21 : vector<1x8x384xbf16> to vector<8x384xbf16>
    %c56 = arith.constant 56 : index
    %c0_24 = arith.constant 0 : index
    %23 = vector.load %arg9[%c56, %c0_24] : memref<576x384xbf16, #tpu.memory_space<vmem>>, vector<8x384xbf16>
    tpu.vector_store %arg9[%c56, %c0_24], %22 {strides = array<i32>} : memref<576x384xbf16, #tpu.memory_space<vmem>>, vector<8x384xbf16>,
    %c0_25 = arith.constant 0 : index
    %c0_26 = arith.constant 0 : index
    %c38 = arith.constant 38 : index
    %24 = vector.load %arg1[%c0_25, %c0_26, %c38] : memref<1x8x512xbf16, #tpu.memory_space<vmem>>, vector<1x8x384xbf16>
    %25 = vector.shape_cast %24 : vector<1x8x384xbf16> to vector<8x384xbf16>
    %c64 = arith.constant 64 : index
    %c0_27 = arith.constant 0 : index
    %26 = vector.load %arg9[%c64, %c0_27] : memref<576x384xbf16, #tpu.memory_space<vmem>>, vector<8x384xbf16>
    tpu.vector_store %arg9[%c64, %c0_27], %25 {strides = array<i32>} : memref<576x384xbf16, #tpu.memory_space<vmem>>, vector<8x384xbf16>,
    %c0_28 = arith.constant 0 : index
    %c0_29 = arith.constant 0 : index
    %27 = vector.load %arg2[%c0_28, %c0_29] : memref<16x72xbf16, #tpu.memory_space<vmem>>, vector<16x72xbf16>
    %c0_30 = arith.constant 0 : index
    %c0_31 = arith.constant 0 : index
    %28 = vector.load %arg9[%c0_30, %c0_31] : memref<576x384xbf16, #tpu.memory_space<vmem>>, vector<72x384xbf16>
    %cst = arith.constant dense<0.000000e+00> : vector<16x384xf32>
    %29 = tpu.matmul %27, %28, %cst {dimension_numbers = #tpu.dot_dimension_numbers<[1], [0], [0], [1], [0, 0, 1, 1], [], []>} : vector<16x72xbf16>, vector<72x384xbf16>, vector<16x384xf32> -> vector<16x384xf32>
    %c0_32 = arith.constant 0 : index
    %c0_33 = arith.constant 0 : index
    %30 = vector.load %arg3[%c0_32, %c0_33] : memref<16x1xf32, #tpu.memory_space<vmem>>, vector<16x1xf32>
    %31 = vector.broadcast %30 : vector<16x1xf32> to vector<16x384xf32>
    %32 = arith.addf %29, %31 : vector<16x384xf32>
    %cst_34 = arith.constant 0.000000e+00 : f32
    %33 = vector.broadcast %cst_34 : f32 to vector<16x384xf32>
    %34 = arith.cmpf ogt, %32, %33 : vector<16x384xf32>
    %cst_35 = arith.constant 0.000000e+00 : f32
    %35 = vector.broadcast %cst_35 : f32 to vector<16x384xf32>
    %36 = arith.minimumf %32, %35 : vector<16x384xf32>
    %37 = math.exp %36 : vector<16x384xf32>
    %cst_36 = arith.constant 1.000000e+00 : f32
    %38 = vector.broadcast %cst_36 : f32 to vector<16x384xf32>
    %39 = arith.subf %37, %38 : vector<16x384xf32>
    %40 = arith.select %34, %32, %39 : vector<16x384xi1>, vector<16x384xf32>
    %41 = arith.truncf %40 : vector<16x384xf32> to vector<16x384xbf16>
    %cst_37 = arith.constant 0.000000e+00 : bf16
    %42 = vector.broadcast %cst_37 : bf16 to vector<16x19xbf16>
    %cst_38 = arith.constant 0.000000e+00 : bf16
    %43 = vector.broadcast %cst_38 : bf16 to vector<16x109xbf16>
    %44 = tpu.concatenate %42, %41, %43 in 1 : vector<16x19xbf16>, vector<16x384xbf16>, vector<16x109xbf16> -> vector<16x512xbf16>
    %45 = vector.extract_strided_slice %44 {offsets = [0, 1], sizes = [16, 511], strides = [1, 1]} : vector<16x512xbf16> to vector<16x511xbf16>
    %46 = vector.extract_strided_slice %44 {offsets = [0, 0], sizes = [16, 1], strides = [1, 1]} : vector<16x512xbf16> to vector<16x1xbf16>
    %47 = tpu.concatenate %45, %46 in 1 : vector<16x511xbf16>, vector<16x1xbf16> -> vector<16x512xbf16>
    %48 = vector.extract_strided_slice %44 {offsets = [0, 0], sizes = [16, 1], strides = [1, 1]} : vector<16x512xbf16> to vector<16x1xbf16>
    %49 = vector.extract_strided_slice %44 {offsets = [0, 0], sizes = [16, 511], strides = [1, 1]} : vector<16x512xbf16> to vector<16x511xbf16>
    %50 = tpu.concatenate %48, %49 in 1 : vector<16x1xbf16>, vector<16x511xbf16> -> vector<16x512xbf16>
    %51 = tpu.iota {dimensions = array<i32: 1>} : vector<1x512xi32>
    %c18_i32 = arith.constant 18 : i32
    %c0_i32 = arith.constant 0 : i32
    %52 = arith.cmpi eq, %c18_i32, %c0_i32 : i32
    %c1_i32 = arith.constant 1 : i32
    %53 = arith.select %52, %c1_i32, %c18_i32 : i32
    %54 = vector.broadcast %53 : i32 to vector<1x512xi32>
    %55 = arith.remsi %51, %54 : vector<1x512xi32>
    %c0_i32_39 = arith.constant 0 : i32
    %56 = vector.broadcast %c0_i32_39 : i32 to vector<1x512xi32>
    %57 = arith.cmpi ne, %55, %56 : vector<1x512xi32>
    %c0_i32_40 = arith.constant 0 : i32
    %58 = vector.broadcast %c0_i32_40 : i32 to vector<1x512xi32>
    %59 = arith.cmpi slt, %55, %58 : vector<1x512xi32>
    %c0_i32_41 = arith.constant 0 : i32
    %60 = arith.cmpi slt, %53, %c0_i32_41 : i32
    %61 = vector.broadcast %60 : i1 to vector<1x512xi1>
    %62 = vector.broadcast %61 : vector<1x512xi1> to vector<1x512xi1>
    %63 = arith.xori %59, %62 : vector<1x512xi1>
    %64 = arith.andi %63, %57 : vector<1x512xi1>
    %65 = vector.broadcast %53 : i32 to vector<1x512xi32>
    %66 = arith.addi %55, %65 : vector<1x512xi32>
    %67 = arith.select %64, %66, %55 : vector<1x512xi1>, vector<1x512xi32>
    %c0_i32_42 = arith.constant 0 : i32
    %68 = vector.broadcast %c0_i32_42 : i32 to vector<1x512xi32>
    %69 = arith.cmpi eq, %67, %68 : vector<1x512xi32>
    %c17_i32 = arith.constant 17 : i32
    %70 = vector.broadcast %c17_i32 : i32 to vector<1x512xi32>
    %71 = arith.cmpi eq, %67, %70 : vector<1x512xi32>
    %72 = vector.shape_cast %71 : vector<1x512xi1> to vector<1x512xi1>
    %73 = vector.broadcast %72 : vector<1x512xi1> to vector<16x512xi1>
    %74 = arith.select %73, %50, %44 : vector<16x512xi1>, vector<16x512xbf16>
    %75 = vector.shape_cast %69 : vector<1x512xi1> to vector<1x512xi1>
    %76 = vector.broadcast %75 : vector<1x512xi1> to vector<16x512xi1>
    %77 = arith.select %76, %47, %74 : vector<16x512xi1>, vector<16x512xbf16>
    %c0_43 = arith.constant 0 : index
    %c0_44 = arith.constant 0 : index
    %78 = vector.load %arg10[%c0_43, %c0_44] : memref<16x512xbf16, #tpu.memory_space<vmem>>, vector<16x512xbf16>
    tpu.vector_store %arg10[%c0_43, %c0_44], %77 {strides = array<i32>} : memref<16x512xbf16, #tpu.memory_space<vmem>>, vector<16x512xbf16>,
    %79 = vector.extract_strided_slice %77 {offsets = [0, 18], sizes = [16, 18], strides = [1, 1]} : vector<16x512xbf16> to vector<16x18xbf16>
    %c0_45 = arith.constant 0 : index
    %c0_46 = arith.constant 0 : index
    %80 = vector.load %arg10[%c0_45, %c0_46] : memref<16x512xbf16, #tpu.memory_space<vmem>>, vector<16x18xbf16>
    tpu.vector_store %arg10[%c0_45, %c0_46], %79 {strides = array<i32>} : memref<16x512xbf16, #tpu.memory_space<vmem>>, vector<16x18xbf16>,
    %81 = vector.extract_strided_slice %77 {offsets = [0, 288], sizes = [16, 18], strides = [1, 1]} : vector<16x512xbf16> to vector<16x18xbf16>
    %c0_47 = arith.constant 0 : index
    %c306 = arith.constant 306 : index
    %82 = vector.load %arg10[%c0_47, %c306] : memref<16x512xbf16, #tpu.memory_space<vmem>>, vector<16x18xbf16>
    tpu.vector_store %arg10[%c0_47, %c306], %81 {strides = array<i32>} : memref<16x512xbf16, #tpu.memory_space<vmem>>, vector<16x18xbf16>,
    %c0_48 = arith.constant 0 : index
    %c0_49 = arith.constant 0 : index
    %83 = vector.load %arg10[%c0_48, %c0_49] : memref<16x512xbf16, #tpu.memory_space<vmem>>, vector<16x384xbf16>
    %c0_50 = arith.constant 0 : index
    %c0_51 = arith.constant 0 : index
    %84 = vector.load %arg9[%c0_50, %c0_51] : memref<576x384xbf16, #tpu.memory_space<vmem>>, vector<16x384xbf16>
    tpu.vector_store %arg9[%c0_50, %c0_51], %83 {strides = array<i32>} : memref<576x384xbf16, #tpu.memory_space<vmem>>, vector<16x384xbf16>,
    %c0_52 = arith.constant 0 : index
    %c1_53 = arith.constant 1 : index
    %85 = vector.load %arg10[%c0_52, %c1_53] : memref<16x512xbf16, #tpu.memory_space<vmem>>, vector<16x384xbf16>
    %c16_54 = arith.constant 16 : index
    %c0_55 = arith.constant 0 : index
    %86 = vector.load %arg9[%c16_54, %c0_55] : memref<576x384xbf16, #tpu.memory_space<vmem>>, vector<16x384xbf16>
    tpu.vector_store %arg9[%c16_54, %c0_55], %85 {strides = array<i32>} : memref<576x384xbf16, #tpu.memory_space<vmem>>, vector<16x384xbf16>,
    %c0_56 = arith.constant 0 : index
    %c2_57 = arith.constant 2 : index
    %87 = vector.load %arg10[%c0_56, %c2_57] : memref<16x512xbf16, #tpu.memory_space<vmem>>, vector<16x384xbf16>
    %c32_58 = arith.constant 32 : index
    %c0_59 = arith.constant 0 : index
    %88 = vector.load %arg9[%c32_58, %c0_59] : memref<576x384xbf16, #tpu.memory_space<vmem>>, vector<16x384xbf16>
    tpu.vector_store %arg9[%c32_58, %c0_59], %87 {strides = array<i32>} : memref<576x384xbf16, #tpu.memory_space<vmem>>, vector<16x384xbf16>,
    %c0_60 = arith.constant 0 : index
    %c18_61 = arith.constant 18 : index
    %89 = vector.load %arg10[%c0_60, %c18_61] : memref<16x512xbf16, #tpu.memory_space<vmem>>, vector<16x384xbf16>
    %c48_62 = arith.constant 48 : index
    %c0_63 = arith.constant 0 : index
    %90 = vector.load %arg9[%c48_62, %c0_63] : memref<576x384xbf16, #tpu.memory_space<vmem>>, vector<16x384xbf16>
    tpu.vector_store %arg9[%c48_62, %c0_63], %89 {strides = array<i32>} : memref<576x384xbf16, #tpu.memory_space<vmem>>, vector<16x384xbf16>,
    %c0_64 = arith.constant 0 : index
    %c19_65 = arith.constant 19 : index
    %91 = vector.load %arg10[%c0_64, %c19_65] : memref<16x512xbf16, #tpu.memory_space<vmem>>, vector<16x384xbf16>
    %c64_66 = arith.constant 64 : index
    %c0_67 = arith.constant 0 : index
    %92 = vector.load %arg9[%c64_66, %c0_67] : memref<576x384xbf16, #tpu.memory_space<vmem>>, vector<16x384xbf16>
    tpu.vector_store %arg9[%c64_66, %c0_67], %91 {strides = array<i32>} : memref<576x384xbf16, #tpu.memory_space<vmem>>, vector<16x384xbf16>,
    %c0_68 = arith.constant 0 : index
    %c20_69 = arith.constant 20 : index
    %93 = vector.load %arg10[%c0_68, %c20_69] : memref<16x512xbf16, #tpu.memory_space<vmem>>, vector<16x384xbf16>
    %c80 = arith.constant 80 : index
    %c0_70 = arith.constant 0 : index
    %94 = vector.load %arg9[%c80, %c0_70] : memref<576x384xbf16, #tpu.memory_space<vmem>>, vector<16x384xbf16>
    tpu.vector_store %arg9[%c80, %c0_70], %93 {strides = array<i32>} : memref<576x384xbf16, #tpu.memory_space<vmem>>, vector<16x384xbf16>,
    %c0_71 = arith.constant 0 : index
    %c36_72 = arith.constant 36 : index
    %95 = vector.load %arg10[%c0_71, %c36_72] : memref<16x512xbf16, #tpu.memory_space<vmem>>, vector<16x384xbf16>
    %c96 = arith.constant 96 : index
    %c0_73 = arith.constant 0 : index
    %96 = vector.load %arg9[%c96, %c0_73] : memref<576x384xbf16, #tpu.memory_space<vmem>>, vector<16x384xbf16>
    tpu.vector_store %arg9[%c96, %c0_73], %95 {strides = array<i32>} : memref<576x384xbf16, #tpu.memory_space<vmem>>, vector<16x384xbf16>,
    %c0_74 = arith.constant 0 : index
    %c37_75 = arith.constant 37 : index
    %97 = vector.load %arg10[%c0_74, %c37_75] : memref<16x512xbf16, #tpu.memory_space<vmem>>, vector<16x384xbf16>
    %c112 = arith.constant 112 : index
    %c0_76 = arith.constant 0 : index
    %98 = vector.load %arg9[%c112, %c0_76] : memref<576x384xbf16, #tpu.memory_space<vmem>>, vector<16x384xbf16>
    tpu.vector_store %arg9[%c112, %c0_76], %97 {strides = array<i32>} : memref<576x384xbf16, #tpu.memory_space<vmem>>, vector<16x384xbf16>,
    %c0_77 = arith.constant 0 : index
    %c38_78 = arith.constant 38 : index
    %99 = vector.load %arg10[%c0_77, %c38_78] : memref<16x512xbf16, #tpu.memory_space<vmem>>, vector<16x384xbf16>
    %c128 = arith.constant 128 : index
    %c0_79 = arith.constant 0 : index
    %100 = vector.load %arg9[%c128, %c0_79] : memref<576x384xbf16, #tpu.memory_space<vmem>>, vector<16x384xbf16>
    tpu.vector_store %arg9[%c128, %c0_79], %99 {strides = array<i32>} : memref<576x384xbf16, #tpu.memory_space<vmem>>, vector<16x384xbf16>,
    %c0_80 = arith.constant 0 : index
    %c0_81 = arith.constant 0 : index
    %101 = vector.load %arg4[%c0_80, %c0_81] : memref<64x144xbf16, #tpu.memory_space<vmem>>, vector<64x144xbf16>
    %c0_82 = arith.constant 0 : index
    %c0_83 = arith.constant 0 : index
    %102 = vector.load %arg9[%c0_82, %c0_83] : memref<576x384xbf16, #tpu.memory_space<vmem>>, vector<144x384xbf16>
    %cst_84 = arith.constant dense<0.000000e+00> : vector<64x384xf32>
    %103 = tpu.matmul %101, %102, %cst_84 {dimension_numbers = #tpu.dot_dimension_numbers<[1], [0], [0], [1], [0, 0, 1, 1], [], []>} : vector<64x144xbf16>, vector<144x384xbf16>, vector<64x384xf32> -> vector<64x384xf32>
    %c0_85 = arith.constant 0 : index
    %c0_86 = arith.constant 0 : index
    %104 = vector.load %arg5[%c0_85, %c0_86] : memref<64x1xf32, #tpu.memory_space<vmem>>, vector<64x1xf32>
    %105 = vector.broadcast %104 : vector<64x1xf32> to vector<64x384xf32>
    %106 = arith.addf %103, %105 : vector<64x384xf32>
    %cst_87 = arith.constant 0.000000e+00 : f32
    %107 = vector.broadcast %cst_87 : f32 to vector<64x384xf32>
    %108 = arith.cmpf ogt, %106, %107 : vector<64x384xf32>
    %cst_88 = arith.constant 0.000000e+00 : f32
    %109 = vector.broadcast %cst_88 : f32 to vector<64x384xf32>
    %110 = arith.minimumf %106, %109 : vector<64x384xf32>
    %111 = math.exp %110 : vector<64x384xf32>
    %cst_89 = arith.constant 1.000000e+00 : f32
    %112 = vector.broadcast %cst_89 : f32 to vector<64x384xf32>
    %113 = arith.subf %111, %112 : vector<64x384xf32>
    %114 = arith.select %108, %106, %113 : vector<64x384xi1>, vector<64x384xf32>
    %115 = arith.truncf %114 : vector<64x384xf32> to vector<64x384xbf16>
    %cst_90 = arith.constant 0.000000e+00 : bf16
    %116 = vector.broadcast %cst_90 : bf16 to vector<64x19xbf16>
    %cst_91 = arith.constant 0.000000e+00 : bf16
    %117 = vector.broadcast %cst_91 : bf16 to vector<64x109xbf16>
    %118 = tpu.concatenate %116, %115, %117 in 1 : vector<64x19xbf16>, vector<64x384xbf16>, vector<64x109xbf16> -> vector<64x512xbf16>
    %119 = vector.extract_strided_slice %118 {offsets = [0, 1], sizes = [64, 511], strides = [1, 1]} : vector<64x512xbf16> to vector<64x511xbf16>
    %120 = vector.extract_strided_slice %118 {offsets = [0, 0], sizes = [64, 1], strides = [1, 1]} : vector<64x512xbf16> to vector<64x1xbf16>
    %121 = tpu.concatenate %119, %120 in 1 : vector<64x511xbf16>, vector<64x1xbf16> -> vector<64x512xbf16>
    %122 = vector.extract_strided_slice %118 {offsets = [0, 0], sizes = [64, 1], strides = [1, 1]} : vector<64x512xbf16> to vector<64x1xbf16>
    %123 = vector.extract_strided_slice %118 {offsets = [0, 0], sizes = [64, 511], strides = [1, 1]} : vector<64x512xbf16> to vector<64x511xbf16>
    %124 = tpu.concatenate %122, %123 in 1 : vector<64x1xbf16>, vector<64x511xbf16> -> vector<64x512xbf16>
    %125 = tpu.iota {dimensions = array<i32: 1>} : vector<1x512xi32>
    %c18_i32_92 = arith.constant 18 : i32
    %c0_i32_93 = arith.constant 0 : i32
    %126 = arith.cmpi eq, %c18_i32_92, %c0_i32_93 : i32
    %c1_i32_94 = arith.constant 1 : i32
    %127 = arith.select %126, %c1_i32_94, %c18_i32_92 : i32
    %128 = vector.broadcast %127 : i32 to vector<1x512xi32>
    %129 = arith.remsi %125, %128 : vector<1x512xi32>
    %c0_i32_95 = arith.constant 0 : i32
    %130 = vector.broadcast %c0_i32_95 : i32 to vector<1x512xi32>
    %131 = arith.cmpi ne, %129, %130 : vector<1x512xi32>
    %c0_i32_96 = arith.constant 0 : i32
    %132 = vector.broadcast %c0_i32_96 : i32 to vector<1x512xi32>
    %133 = arith.cmpi slt, %129, %132 : vector<1x512xi32>
    %c0_i32_97 = arith.constant 0 : i32
    %134 = arith.cmpi slt, %127, %c0_i32_97 : i32
    %135 = vector.broadcast %134 : i1 to vector<1x512xi1>
    %136 = vector.broadcast %135 : vector<1x512xi1> to vector<1x512xi1>
    %137 = arith.xori %133, %136 : vector<1x512xi1>
    %138 = arith.andi %137, %131 : vector<1x512xi1>
    %139 = vector.broadcast %127 : i32 to vector<1x512xi32>
    %140 = arith.addi %129, %139 : vector<1x512xi32>
    %141 = arith.select %138, %140, %129 : vector<1x512xi1>, vector<1x512xi32>
    %c0_i32_98 = arith.constant 0 : i32
    %142 = vector.broadcast %c0_i32_98 : i32 to vector<1x512xi32>
    %143 = arith.cmpi eq, %141, %142 : vector<1x512xi32>
    %c17_i32_99 = arith.constant 17 : i32
    %144 = vector.broadcast %c17_i32_99 : i32 to vector<1x512xi32>
    %145 = arith.cmpi eq, %141, %144 : vector<1x512xi32>
    %146 = vector.shape_cast %145 : vector<1x512xi1> to vector<1x512xi1>
    %147 = vector.broadcast %146 : vector<1x512xi1> to vector<64x512xi1>
    %148 = arith.select %147, %124, %118 : vector<64x512xi1>, vector<64x512xbf16>
    %149 = vector.shape_cast %143 : vector<1x512xi1> to vector<1x512xi1>
    %150 = vector.broadcast %149 : vector<1x512xi1> to vector<64x512xi1>
    %151 = arith.select %150, %121, %148 : vector<64x512xi1>, vector<64x512xbf16>
    %c0_100 = arith.constant 0 : index
    %c0_101 = arith.constant 0 : index
    %152 = vector.load %arg11[%c0_100, %c0_101] : memref<64x512xbf16, #tpu.memory_space<vmem>>, vector<64x512xbf16>
    tpu.vector_store %arg11[%c0_100, %c0_101], %151 {strides = array<i32>} : memref<64x512xbf16, #tpu.memory_space<vmem>>, vector<64x512xbf16>,
    %153 = vector.extract_strided_slice %151 {offsets = [0, 18], sizes = [64, 18], strides = [1, 1]} : vector<64x512xbf16> to vector<64x18xbf16>
    %c0_102 = arith.constant 0 : index
    %c0_103 = arith.constant 0 : index
    %154 = vector.load %arg11[%c0_102, %c0_103] : memref<64x512xbf16, #tpu.memory_space<vmem>>, vector<64x18xbf16>
    tpu.vector_store %arg11[%c0_102, %c0_103], %153 {strides = array<i32>} : memref<64x512xbf16, #tpu.memory_space<vmem>>, vector<64x18xbf16>,
    %155 = vector.extract_strided_slice %151 {offsets = [0, 288], sizes = [64, 18], strides = [1, 1]} : vector<64x512xbf16> to vector<64x18xbf16>
    %c0_104 = arith.constant 0 : index
    %c306_105 = arith.constant 306 : index
    %156 = vector.load %arg11[%c0_104, %c306_105] : memref<64x512xbf16, #tpu.memory_space<vmem>>, vector<64x18xbf16>
    tpu.vector_store %arg11[%c0_104, %c306_105], %155 {strides = array<i32>} : memref<64x512xbf16, #tpu.memory_space<vmem>>, vector<64x18xbf16>,
    %c0_106 = arith.constant 0 : index
    %c0_107 = arith.constant 0 : index
    %157 = vector.load %arg11[%c0_106, %c0_107] : memref<64x512xbf16, #tpu.memory_space<vmem>>, vector<64x384xbf16>
    %c0_108 = arith.constant 0 : index
    %c0_109 = arith.constant 0 : index
    %158 = vector.load %arg9[%c0_108, %c0_109] : memref<576x384xbf16, #tpu.memory_space<vmem>>, vector<64x384xbf16>
    tpu.vector_store %arg9[%c0_108, %c0_109], %157 {strides = array<i32>} : memref<576x384xbf16, #tpu.memory_space<vmem>>, vector<64x384xbf16>,
    %c0_110 = arith.constant 0 : index
    %c1_111 = arith.constant 1 : index
    %159 = vector.load %arg11[%c0_110, %c1_111] : memref<64x512xbf16, #tpu.memory_space<vmem>>, vector<64x384xbf16>
    %c64_112 = arith.constant 64 : index
    %c0_113 = arith.constant 0 : index
    %160 = vector.load %arg9[%c64_112, %c0_113] : memref<576x384xbf16, #tpu.memory_space<vmem>>, vector<64x384xbf16>
    tpu.vector_store %arg9[%c64_112, %c0_113], %159 {strides = array<i32>} : memref<576x384xbf16, #tpu.memory_space<vmem>>, vector<64x384xbf16>,
    %c0_114 = arith.constant 0 : index
    %c2_115 = arith.constant 2 : index
    %161 = vector.load %arg11[%c0_114, %c2_115] : memref<64x512xbf16, #tpu.memory_space<vmem>>, vector<64x384xbf16>
    %c128_116 = arith.constant 128 : index
    %c0_117 = arith.constant 0 : index
    %162 = vector.load %arg9[%c128_116, %c0_117] : memref<576x384xbf16, #tpu.memory_space<vmem>>, vector<64x384xbf16>
    tpu.vector_store %arg9[%c128_116, %c0_117], %161 {strides = array<i32>} : memref<576x384xbf16, #tpu.memory_space<vmem>>, vector<64x384xbf16>,
    %c0_118 = arith.constant 0 : index
    %c18_119 = arith.constant 18 : index
    %163 = vector.load %arg11[%c0_118, %c18_119] : memref<64x512xbf16, #tpu.memory_space<vmem>>, vector<64x384xbf16>
    %c192 = arith.constant 192 : index
    %c0_120 = arith.constant 0 : index
    %164 = vector.load %arg9[%c192, %c0_120] : memref<576x384xbf16, #tpu.memory_space<vmem>>, vector<64x384xbf16>
    tpu.vector_store %arg9[%c192, %c0_120], %163 {strides = array<i32>} : memref<576x384xbf16, #tpu.memory_space<vmem>>, vector<64x384xbf16>,
    %c0_121 = arith.constant 0 : index
    %c19_122 = arith.constant 19 : index
    %165 = vector.load %arg11[%c0_121, %c19_122] : memref<64x512xbf16, #tpu.memory_space<vmem>>, vector<64x384xbf16>
    %c256 = arith.constant 256 : index
    %c0_123 = arith.constant 0 : index
    %166 = vector.load %arg9[%c256, %c0_123] : memref<576x384xbf16, #tpu.memory_space<vmem>>, vector<64x384xbf16>
    tpu.vector_store %arg9[%c256, %c0_123], %165 {strides = array<i32>} : memref<576x384xbf16, #tpu.memory_space<vmem>>, vector<64x384xbf16>,
    %c0_124 = arith.constant 0 : index
    %c20_125 = arith.constant 20 : index
    %167 = vector.load %arg11[%c0_124, %c20_125] : memref<64x512xbf16, #tpu.memory_space<vmem>>, vector<64x384xbf16>
    %c320 = arith.constant 320 : index
    %c0_126 = arith.constant 0 : index
    %168 = vector.load %arg9[%c320, %c0_126] : memref<576x384xbf16, #tpu.memory_space<vmem>>, vector<64x384xbf16>
    tpu.vector_store %arg9[%c320, %c0_126], %167 {strides = array<i32>} : memref<576x384xbf16, #tpu.memory_space<vmem>>, vector<64x384xbf16>,
    %c0_127 = arith.constant 0 : index
    %c36_128 = arith.constant 36 : index
    %169 = vector.load %arg11[%c0_127, %c36_128] : memref<64x512xbf16, #tpu.memory_space<vmem>>, vector<64x384xbf16>
    %c384 = arith.constant 384 : index
    %c0_129 = arith.constant 0 : index
    %170 = vector.load %arg9[%c384, %c0_129] : memref<576x384xbf16, #tpu.memory_space<vmem>>, vector<64x384xbf16>
    tpu.vector_store %arg9[%c384, %c0_129], %169 {strides = array<i32>} : memref<576x384xbf16, #tpu.memory_space<vmem>>, vector<64x384xbf16>,
    %c0_130 = arith.constant 0 : index
    %c37_131 = arith.constant 37 : index
    %171 = vector.load %arg11[%c0_130, %c37_131] : memref<64x512xbf16, #tpu.memory_space<vmem>>, vector<64x384xbf16>
    %c448 = arith.constant 448 : index
    %c0_132 = arith.constant 0 : index
    %172 = vector.load %arg9[%c448, %c0_132] : memref<576x384xbf16, #tpu.memory_space<vmem>>, vector<64x384xbf16>
    tpu.vector_store %arg9[%c448, %c0_132], %171 {strides = array<i32>} : memref<576x384xbf16, #tpu.memory_space<vmem>>, vector<64x384xbf16>,
    %c0_133 = arith.constant 0 : index
    %c38_134 = arith.constant 38 : index
    %173 = vector.load %arg11[%c0_133, %c38_134] : memref<64x512xbf16, #tpu.memory_space<vmem>>, vector<64x384xbf16>
    %c512 = arith.constant 512 : index
    %c0_135 = arith.constant 0 : index
    %174 = vector.load %arg9[%c512, %c0_135] : memref<576x384xbf16, #tpu.memory_space<vmem>>, vector<64x384xbf16>
    tpu.vector_store %arg9[%c512, %c0_135], %173 {strides = array<i32>} : memref<576x384xbf16, #tpu.memory_space<vmem>>, vector<64x384xbf16>,
    %c0_136 = arith.constant 0 : index
    %c0_137 = arith.constant 0 : index
    %175 = vector.load %arg6[%c0_136, %c0_137] : memref<32x576xbf16, #tpu.memory_space<vmem>>, vector<32x576xbf16>
    %c0_138 = arith.constant 0 : index
    %c0_139 = arith.constant 0 : index
    %176 = vector.load %arg9[%c0_138, %c0_139] : memref<576x384xbf16, #tpu.memory_space<vmem>>, vector<576x384xbf16>
    %cst_140 = arith.constant dense<0.000000e+00> : vector<32x384xf32>
    %177 = tpu.matmul %175, %176, %cst_140 {dimension_numbers = #tpu.dot_dimension_numbers<[1], [0], [0], [1], [0, 0, 1, 1], [], []>} : vector<32x576xbf16>, vector<576x384xbf16>, vector<32x384xf32> -> vector<32x384xf32>
    %c0_141 = arith.constant 0 : index
    %c0_142 = arith.constant 0 : index
    %178 = vector.load %arg7[%c0_141, %c0_142] : memref<32x1xf32, #tpu.memory_space<vmem>>, vector<32x1xf32>
    %179 = vector.broadcast %178 : vector<32x1xf32> to vector<32x384xf32>
    %180 = arith.addf %177, %179 : vector<32x384xf32>
    %c0_143 = arith.constant 0 : index
    %c0_144 = arith.constant 0 : index
    %c0_145 = arith.constant 0 : index
    %181 = vector.load %arg8[%c0_143, %c0_144, %c0_145] : memref<1x32x384xf32, #tpu.memory_space<vmem>>, vector<1x32x384xf32>
    %182 = vector.shape_cast %181 : vector<1x32x384xf32> to vector<32x384xf32>
    %183 = vector.shape_cast %180 : vector<32x384xf32> to vector<1x32x384xf32>
    tpu.vector_store %arg8[%c0_143, %c0_144, %c0_145], %183 {strides = array<i32>} : memref<1x32x384xf32, #tpu.memory_space<vmem>>, vector<1x32x384xf32>,
    return
  }
  func.func @transform_0(%arg0: i32) -> (i32, i32, i32) {
    %c0_i32 = arith.constant 0 : i32
    %c0_i32_0 = arith.constant 0 : i32
    %c0_i32_1 = arith.constant 0 : i32
    return %arg0, %c0_i32, %c0_i32_0 : i32, i32, i32
  }
  func.func @transform_1(%arg0: i32) -> (i32, i32) {
    %c0_i32 = arith.constant 0 : i32
    %c0_i32_0 = arith.constant 0 : i32
    %c0_i32_1 = arith.constant 0 : i32
    return %c0_i32, %c0_i32_0 : i32, i32
  }
  func.func @transform_2(%arg0: i32) -> (i32, i32) {
    %c0_i32 = arith.constant 0 : i32
    %c0_i32_0 = arith.constant 0 : i32
    %c0_i32_1 = arith.constant 0 : i32
    return %c0_i32, %c0_i32_0 : i32, i32
  }
  func.func @transform_3(%arg0: i32) -> (i32, i32) {
    %c0_i32 = arith.constant 0 : i32
    %c0_i32_0 = arith.constant 0 : i32
    %c0_i32_1 = arith.constant 0 : i32
    return %c0_i32, %c0_i32_0 : i32, i32
  }
  func.func @transform_4(%arg0: i32) -> (i32, i32) {
    %c0_i32 = arith.constant 0 : i32
    %c0_i32_0 = arith.constant 0 : i32
    %c0_i32_1 = arith.constant 0 : i32
    return %c0_i32, %c0_i32_0 : i32, i32
  }
  func.func @transform_5(%arg0: i32) -> (i32, i32) {
    %c0_i32 = arith.constant 0 : i32
    %c0_i32_0 = arith.constant 0 : i32
    %c0_i32_1 = arith.constant 0 : i32
    return %c0_i32, %c0_i32_0 : i32, i32
  }
  func.func @transform_6(%arg0: i32) -> (i32, i32) {
    %c0_i32 = arith.constant 0 : i32
    %c0_i32_0 = arith.constant 0 : i32
    %c0_i32_1 = arith.constant 0 : i32
    return %c0_i32, %c0_i32_0 : i32, i32
  }
  func.func @transform_7(%arg0: i32) -> (i32, i32, i32) {
    %c0_i32 = arith.constant 0 : i32
    %c0_i32_0 = arith.constant 0 : i32
    %c0_i32_1 = arith.constant 0 : i32
    return %arg0, %c0_i32, %c0_i32_0 : i32, i32, i32
  }
}

</mosaic_0001>

<bundles_post_ra>
// kernel: sgdepth_seg_forward.1
= control target key start
LH: loop header
LB: loop body
LE: loop exit
PB: predicated region body
PF: predicated region fallthrough
CT: control target
= control target key end

     0   :  { %s6035_s0 = inlined_call_operand.hbm [shape: bf16[2,8,512], index: 0, kind: input, shape index: {}]   ;;  %s6036_s1 = inlined_call_operand.hbm [shape: bf16[16,72], index: 1, kind: input, shape index: {}]   ;;  %s6037_s2 = inlined_call_operand.hbm [shape: f32[16,1], index: 2, kind: input, shape index: {}]   ;;  %s6038_s3 = inlined_call_operand.hbm [shape: bf16[64,144], index: 3, kind: input, shape index: {}]   ;;  %s6039_s4 = inlined_call_operand.hbm [shape: f32[64,1], index: 4, kind: input, shape index: {}]   ;;  %s6040_s5 = inlined_call_operand.hbm [shape: bf16[32,576], index: 5, kind: input, shape index: {}]   ;;  %s6041_s6 = inlined_call_operand.hbm [shape: f32[32,1], index: 6, kind: input, shape index: {}]   ;;  %s6042_s7 = inlined_call_operand.hbm [shape: f32[2,32,384], index: 7, kind: output, shape index: {}]  }
   0x1   :  { %6064 = sst [smem:[#allocation33_spill]] %s6036_s1 }
   0x2   :  { %12 = vsyncpa [#allocation6], 0 }
   0x3   :  { %14 = vsyncpa [#allocation6 + $0x1], 0 }
   0x4   :  { %15 = vsyncpa [#allocation9], 0 }
   0x5   :  { %16 = vsyncpa [#allocation12], 0 }
   0x6   :  { %17 = vsyncpa [#allocation15], 0 }
   0x7   :  { %18 = vsyncpa [#allocation7], 0 }
   0x8   :  { %20 = vsyncpa [#allocation7 + $0x1], 0  ;;  %s4292_s24 = smov 0   ;;  %s4294_s25 = smov 0  }
   0x9   :  { %s4296_s26 = smov 0   ;;  %s4298_s27 = smov 0  }
   0xa LB: > { %s4222_s28 = smov [#allocation8]   ;;  %s4313_s30 = sadd.s32 4294967295, %s4220_s27   ;;  %s4220_s27 = sphi %s4298_s27, %s6286_s27   ;;  %s4216_s26 = sphi %s4296_s26, %s6285_s26   ;;  %s4212_s25 = sphi %s4294_s25, %s6284_s25   ;;  %s4208_s24 = sphi %s4292_s24, %s6283_s24  }
   0xb   : > { %s221_s29 = sshll.u32 %s4222_s28, 4  ;;  %p3471_p0 = scmp.ge.s32.totalorder %s4220_s27, 1  ;;  %s4318_s29 = int_to_ptr.vmem [resolvable:$true] %s221_s29 }
   0xc   : > { %p6043_p1 = scmp.eq.s32.totalorder %s4313_s30, 0  ;;  %p209_p2 = scmp.lt.s32.totalorder %s4220_s27, 3 }
   0xd   : > { %s4223_s10 = smov [#allocation11]   ;;  %s4224_s12 = smov [#allocation14]  }
   0xe   : > { %p4320_p3 = pnand %p3471_p0, %p209_p2  ;;  %s247_s11 = sshll.u32 %s4223_s10, 4  ;;  %s4333_s11 = int_to_ptr.vmem [resolvable:$true] %s247_s11 }
   0xf   : > { %s4335_s13 = sshll.u32 %s4224_s12, 4  ;;  %s6067_s1 = sld [smem:[#allocation33_spill]]  ;;  %s274_s13 = int_to_ptr.vmem [resolvable:$true] %s4335_s13 }
  0x10   : > { %s6065_s8 = scalar_select %p4320_p3, 1, 0 }
  0x11   : > { %p3749_p5 = pneg %p4320_p3 }
  0x13   : > { %p4329_p6 = pnand %p3749_p5, %p6043_p1 }
  0x15   : > { %s3944_s16 = scalar_lea.hbm %s6067_s1, 128  ;;  %p4345_p8 = pneg %p4329_p6 }
  0x16   : > { %p3945_p7 = scmp.ne.s32.totalorder %s6067_s1, %s3944_s16  ;;  %p3951_p11 = scmp.lt.u32.totalorder %s3944_s16, %s6067_s1 }
  0x18   : > { %p3947_p9 = pnand %p4345_p8, %p3945_p7 }
  0x1a   : > { %p3948_p10 = pneg %p3947_p9 }
  0x1c   : > { %p3953_p12 = pnand %p3951_p11, %p3948_p10 }
  0x1e   : > { %3956 = shalt.err (!%p3953_p12)
}
  0x1f   : > { %s3957_s22 = scalar_lea.vmem %s4318_s29, 128  ;;  %p3965_p5 = scmp.lt.s32.totalorder %s4318_s29, %s4318_s29 }
  0x20   : > { %p3958_p13 = scmp.ne.s32.totalorder %s4318_s29, %s3957_s22  ;;  %p3966_p4 = scmp.lt.s32.totalorder %s3957_s22, %s3957_s22 }
  0x22   : > { %p3960_p0 = pnand %p3958_p13, %p4345_p8  ;;  %p3967_p7 = por %p3966_p4, %p3965_p5 }
  0x24   : > { %p3961_p2 = pneg %p3960_p0 }
  0x26   : > { %p3968_p9 = pnand %p3967_p7, %p3961_p2 }
  0x28   : > { %3971 = shalt.err (!%p3968_p9)
}
  0x29   : > { %s4225_s23 = smov 64   ;;  %s4226_s28 = smov 4  }
  0x2a   : > { %3752 = dma.hbm_to_vmem [thread:$0]  (!%p4329_p6), %s6067_s1, 128, %s4318_s29, [#allocation9], %s4225_s23, %s4225_s23, %s4226_s28  }
  0x2b   : > { %s3972_s16 = scalar_lea.hbm %s6038_s3, 1024 }
  0x2c   : > { %p3973_p4 = scmp.ne.s32.totalorder %s6038_s3, %s3972_s16  ;;  %p3979_p12 = scmp.lt.u32.totalorder %s3972_s16, %s6038_s3 }
  0x2e   : > { %p3975_p10 = pnand %p3973_p4, %p4345_p8 }
  0x30   : > { %p3976_p11 = pneg %p3975_p10 }
  0x32   : > { %p3981_p13 = pnand %p3979_p12, %p3976_p11 }
  0x34   : > { %3984 = shalt.err (!%p3981_p13)
}
  0x35   : > { %s3985_s29 = scalar_lea.vmem %s4333_s11, 1024  ;;  %p3993_p7 = scmp.lt.s32.totalorder %s4333_s11, %s4333_s11 }
  0x36   : > { %p3986_p0 = scmp.ne.s32.totalorder %s4333_s11, %s3985_s29  ;;  %p3994_p9 = scmp.lt.s32.totalorder %s3985_s29, %s3985_s29 }
  0x38   : > { %p3988_p2 = pnand %p3986_p0, %p4345_p8  ;;  %p3995_p4 = por %p3994_p9, %p3993_p7 }
  0x3a   : > { %p3989_p5 = pneg %p3988_p2 }
  0x3c   : > { %p3996_p10 = pnand %p3995_p4, %p3989_p5 }
  0x3e   : > { %3999 = shalt.err (!%p3996_p10)
}
  0x3f   : > { %s6045_s22 = smov 128   ;;  %s6047_s23 = smov 8  }
  0x40   : > { %3758 = dma.hbm_to_vmem [thread:$0]  (!%p4329_p6), %s6038_s3, 1024, %s4333_s11, [#allocation12], %s6045_s22, %s6045_s22, %s6047_s23  }
  0x41   : > { %s4000_s15 = scalar_lea.hbm %s6040_s5, 1280 }
  0x42   : > { %p4001_p11 = scmp.ne.s32.totalorder %s6040_s5, %s4000_s15  ;;  %p4007_p0 = scmp.lt.u32.totalorder %s4000_s15, %s6040_s5 }
  0x44   : > { %p4003_p12 = pnand %p4001_p11, %p4345_p8 }
  0x46   : > { %p4004_p13 = pneg %p4003_p12 }
  0x48   : > { %p4009_p2 = pnand %p4007_p0, %p4004_p13 }
  0x4a   : > { %4012 = shalt.err (!%p4009_p2)
}
  0x4b   : > { %s4013_s21 = scalar_lea.vmem %s274_s13, 1280  ;;  %p4021_p4 = scmp.lt.s32.totalorder %s274_s13, %s274_s13 }
  0x4c   : > { %p4014_p5 = scmp.ne.s32.totalorder %s274_s13, %s4013_s21  ;;  %p4022_p10 = scmp.lt.s32.totalorder %s4013_s21, %s4013_s21 }
  0x4e   : > { %p4016_p7 = pnand %p4014_p5, %p4345_p8  ;;  %p4023_p1 = por %p4022_p10, %p4021_p4 }
  0x50   : > { %p4017_p9 = pneg %p4016_p7 }
  0x52   : > { %p4024_p3 = pnand %p4023_p1, %p4017_p9 }
  0x54   : > { %4027 = shalt.err (!%p4024_p3)
}
  0x55   : > { %s4229_s11 = smov 320   ;;  %s4230_s29 = smov 20  }
  0x56   : > { %3764 = dma.hbm_to_vmem [thread:$0]  (!%p4329_p6), %s6040_s5, 1280, %s274_s13, [#allocation15], %s4229_s11, %s4229_s11, %s4230_s29  }
  0x57   : > { %s4231_s12 = smov [#allocation10]   ;;  %s4232_s15 = smov [#allocation13]  }
  0x58   : > { %s234_s14 = sshll.u32 %s4231_s12, 4  ;;  %s260_s16 = sshll.u32 %s4232_s15, 4  ;;  %s235_s14 = int_to_ptr.vmem [resolvable:$true] %s234_s14  ;;  %s261_s16 = int_to_ptr.vmem [resolvable:$true] %s260_s16 }
  0x59   : > { %s4028_s20 = scalar_lea.hbm %s6037_s2, 256 }
  0x5a   : > { %p4029_p1 = scmp.ne.s32.totalorder %s6037_s2, %s4028_s20  ;;  %p4035_p12 = scmp.lt.u32.totalorder %s4028_s20, %s6037_s2 }
  0x5c   : > { %p4031_p3 = pnand %p4029_p1, %p4345_p8 }
  0x5e   : > { %p4032_p11 = pneg %p4031_p3 }
  0x60   : > { %p4037_p13 = pnand %p4035_p12, %p4032_p11 }
  0x62   : > { %4040 = shalt.err (!%p4037_p13)
}
  0x63   : > { %s4041_s13 = scalar_lea.vmem %s235_s14, 256  ;;  %p4049_p7 = scmp.lt.s32.totalorder %s235_s14, %s235_s14 }
  0x64   : > { %p4042_p0 = scmp.ne.s32.totalorder %s235_s14, %s4041_s13  ;;  %p4050_p9 = scmp.lt.s32.totalorder %s4041_s13, %s4041_s13 }
  0x66   : > { %p4044_p2 = pnand %p4042_p0, %p4345_p8  ;;  %p4051_p4 = por %p4050_p9, %p4049_p7 }
  0x68   : > { %p4045_p5 = pneg %p4044_p2 }
  0x6a   : > { %p4052_p10 = pnand %p4051_p4, %p4045_p5 }
  0x6c   : > { %4055 = shalt.err (!%p4052_p10)
}
  0x6d   : > { %s6069_s22 = smov 8   ;;  %s6070_s11 = smov 128  }
  0x6e   : > { %3755 = dma.hbm_to_vmem [thread:$0]  (!%p4329_p6), %s6037_s2, 256, %s235_s14, [#allocation9], %s6070_s11, %s6070_s11, %s6069_s22  }
  0x6f   : > { %s4056_s10 = scalar_lea.hbm %s6039_s4, 1024 }
  0x70   : > { %p4057_p1 = scmp.ne.s32.totalorder %s6039_s4, %s4056_s10  ;;  %p4063_p12 = scmp.lt.u32.totalorder %s4056_s10, %s6039_s4 }
  0x72   : > { %p4059_p3 = pnand %p4057_p1, %p4345_p8 }
  0x74   : > { %p4060_p11 = pneg %p4059_p3 }
  0x76   : > { %p4065_p13 = pnand %p4063_p12, %p4060_p11 }
  0x78   : > { %4068 = shalt.err (!%p4065_p13)
}
  0x79   : > { %s4069_s20 = scalar_lea.vmem %s261_s16, 1024  ;;  %p4077_p7 = scmp.lt.s32.totalorder %s261_s16, %s261_s16 }
  0x7a   : > { %p4070_p0 = scmp.ne.s32.totalorder %s261_s16, %s4069_s20  ;;  %p4078_p9 = scmp.lt.s32.totalorder %s4069_s20, %s4069_s20 }
  0x7c   : > { %p4072_p2 = pnand %p4070_p0, %p4345_p8  ;;  %p4079_p4 = por %p4078_p9, %p4077_p7 }
  0x7e   : > { %p4073_p5 = pneg %p4072_p2 }
  0x80   : > { %p4080_p10 = pnand %p4079_p4, %p4073_p5 }
  0x82   : > { %4083 = shalt.err (!%p4080_p10)
}
  0x83   : > { %3761 = dma.hbm_to_vmem [thread:$0]  (!%p4329_p6), %s6039_s4, 1024, %s261_s16, [#allocation12], %s6070_s11, %s6070_s11, %s6069_s22  }
  0x84   : > { %s4233_s13 = smov [#allocation16]   ;;  %s4084_s28 = scalar_lea.hbm %s6041_s6, 512 }
  0x85   : > { %s286_s1 = sshll.u32 %s4233_s13, 4  ;;  %p4085_p1 = scmp.ne.s32.totalorder %s6041_s6, %s4084_s28  ;;  %s287_s1 = int_to_ptr.vmem [resolvable:$true] %s286_s1 }
  0x86   : > { %p4091_p12 = scmp.lt.u32.totalorder %s4084_s28, %s6041_s6 }
  0x87   : > { %p4087_p3 = pnand %p4085_p1, %p4345_p8 }
  0x89   : > { %p4088_p11 = pneg %p4087_p3 }
  0x8b   : > { %p4093_p13 = pnand %p4091_p12, %p4088_p11 }
  0x8d   : > { %4096 = shalt.err (!%p4093_p13)
}
  0x8e   : > { %s4097_s16 = scalar_lea.vmem %s287_s1, 512  ;;  %p4105_p7 = scmp.lt.s32.totalorder %s287_s1, %s287_s1 }
  0x8f   : > { %p4098_p0 = scmp.ne.s32.totalorder %s287_s1, %s4097_s16  ;;  %p4106_p9 = scmp.lt.s32.totalorder %s4097_s16, %s4097_s16 }
  0x91   : > { %p4100_p2 = pnand %p4098_p0, %p4345_p8  ;;  %p4107_p4 = por %p4106_p9, %p4105_p7 }
  0x93   : > { %p4101_p5 = pneg %p4100_p2 }
  0x95   : > { %p4108_p10 = pnand %p4107_p4, %p4101_p5 }
  0x97   : > { %4111 = shalt.err (!%p4108_p10)
}
  0x98   : > { %3767 = dma.hbm_to_vmem [thread:$0]  (!%p4329_p6), %s6041_s6, 512, %s287_s1, [#allocation15], %s6070_s11, %s6070_s11, %s6069_s22  }
  0x99   : > { %s3470_s9 = sadd.s32 4294967294, %s4220_s27   ;;  %s4476_s19 = sadd.s32 1, %s4220_s27  }
  0x9a   : > { %s30_s14 = ssub.s32 %s4220_s27, %s4476_s19  ;;  %s33_s21 = sadd.s32 1, %s4216_s26 }
  0x9b   : > { %p31_p8 = scmp.eq.s32.totalorder %s30_s14, 0  ;;  %p40_p1 = scmp.ne.s32.totalorder %s4216_s26, %s4212_s25 }
  0x9c   : > { %p41_p3 = scmp.eq.s32.totalorder %s4220_s27, 0  ;;  %p46_p11 = scmp.ne.s32.totalorder %s4212_s25, %s4208_s24 }
  0x9d   : > { %s4487_s13 = scalar_select %p31_p8, %s4216_s26, %s33_s21  }
  0x9e   : > { %p4489_p12 = por %p41_p3, %p40_p1  ;;  %p6072_p13 = scmp.eq.s32.totalorder %s4313_s30, 0 }
  0x9f   : > { %p196_p0 = scmp.eq.s32.totalorder %s4313_s30, 1  ;;  %p202_p2 = scmp.eq.s32.totalorder %s3470_s9, 1 }
  0xa0   : > { %p4495_p6 = por %p6072_p13, %p46_p11  ;;  %p3782_p5 = scmp.lt.s32.totalorder %s4220_s27, 2 }
  0xa1   : > { %s300_s11 = sand.u32 1, %s4216_s26   ;;  %p4502_p7 = por %p196_p0, %p40_p1 }
  0xa2   : > { %p4506_p9 = por %p202_p2, %p46_p11  ;;  %s3479_s28 = sshll.u32 %s300_s11, 4 }
  0xa3   : > { %s6074_s1 = scalar_select %p4502_p7, 1, 0 }
  0xa4   : > { %s6075_s29 = scalar_select %p4506_p9, 1, 0 }
  0xa5   : > { %s3592_s10 = sshll.u32 %s4220_s27, 8  ;;  %s304_s16 = scalar_lea.vmem [#allocation5], %s3479_s28 }
  0xa6   : > { %s4514_s17 = scalar_lea.hbm %s6035_s0, %s3592_s10  ;;  %s312_s18 = sshll.u32 %s304_s16, 4  ;;  %s4516_s18 = int_to_ptr.vmem [resolvable:$true] %s312_s18 }
  0xa7   : > { %p4520_p4 = pnand %p3782_p5, %p4489_p12  ;;  %s301_s9 = scalar_lea.sflag [#allocation6], %s300_s11 }
  0xa8   : > { %s4112_s14 = scalar_lea.hbm %s4514_s17, 256  ;;  %s4117_s10 = scalar_lea.hbm %s6035_s0, 512 }
  0xa9   : > { %p4113_p10 = scmp.ne.s32.totalorder %s4514_s17, %s4112_s14  ;;  %p4114_p8 = pneg %p4520_p4 }
  0xaa   : > { %p4118_p11 = scmp.lt.u32.totalorder %s4514_s17, %s6035_s0  ;;  %p4119_p12 = scmp.lt.u32.totalorder %s4117_s10, %s4112_s14 }
  0xab   : > { %p4115_p1 = pnand %p4114_p8, %p4113_p10  ;;  %p4121_p0 = scmp.lt.u32.totalorder %s4112_s14, %s4514_s17 }
  0xac   : > { %p4120_p13 = por %p4119_p12, %p4118_p11 }
  0xad   : > { %p4116_p3 = pneg %p4115_p1 }
  0xae   : > { %p4122_p2 = por %p4121_p0, %p4120_p13 }
  0xb0   : > { %p4123_p5 = pnand %p4122_p2, %p4116_p3 }
  0xb2   : > { %4126 = shalt.err (!%p4123_p5)
}
  0xb3   : > { %s4127_s11 = scalar_lea.vmem %s4516_s18, 256  ;;  %s4234_s15 = smov [#allocation5]  }
  0xb4   : > { %p4128_p10 = scmp.ne.s32.totalorder %s4516_s18, %s4127_s11  ;;  %s4132_s16 = sshll.u32 %s4234_s15, 4  ;;  %s4133_s16 = int_to_ptr.vmem [resolvable:$false] %s4132_s16 }
  0xb5   : > { %s4134_s21 = scalar_lea.vmem %s4133_s16, 512  ;;  %p4135_p7 = scmp.lt.s32.totalorder %s4516_s18, %s4133_s16 }
  0xb6   : > { %p4130_p1 = pnand %p4128_p10, %p4114_p8  ;;  %p4136_p11 = scmp.lt.s32.totalorder %s4134_s21, %s4127_s11 }
  0xb8   : > { %p4131_p9 = pneg %p4130_p1  ;;  %p4137_p12 = por %p4136_p11, %p4135_p7 }
  0xba   : > { %p4138_p13 = pnand %p4137_p12, %p4131_p9 }
  0xbc   : > { %4141 = shalt.err (!%p4138_p13)
}
  0xbd   : > { %3771 = dma.hbm_to_vmem [thread:$0]  (!%p4520_p4), %s4514_s17, 256, %s4516_s18, %s301_s9  }
  0xbe   : > { %p6077_p3 = scmp.ne.s32.totalorder %s6065_s8, 0 }
  0xc0   : > { %321 = sbr.rel (%p6077_p3) target bundleno = 2324 (0x914), region = 48 }
  0xc7   : > { %s4552_s14 = sand.u32 1, %s4212_s25  }
  0xc8   : > { %s3483_s28 = sshll.u32 %s4552_s14, 4  ;;  %s324_s10 = scalar_lea.sflag [#allocation6], %s4552_s14 }
  0xc9   : > { %s327_s23 = scalar_lea.vmem [#allocation5], %s3483_s28 }
  0xca   : > { %4187 = dma.done.wait (%p4495_p6), %s324_s10, 256  }
  0xcb   : > { %4189 = vsyncadd (%p4495_p6), %s324_s10, 4294967040  ;;  %p6078_p7 = scmp.eq.s32.totalorder %s4313_s30, 0 }
  0xcd   : > { %4191 = dma.done.wait (%p6078_p7), [#allocation9], 384   ;;  %p6079_p9 = pmov %p6078_p7 }
  0xce   : > { %p6080_p4 = pmov %p6078_p7 }
  0xcf   : > { %4193 = vsyncadd (%p6079_p9), [#allocation9], 4294966912 }
  0xd0   : > { %4195 = dma.done.wait (%p6080_p4), [#allocation12], 2048   ;;  %p6081_p8 = pmov %p6080_p4 }
  0xd1   : > { %p6082_p0 = pmov %p6080_p4 }
  0xd2   : > { %4197 = vsyncadd (%p6081_p8), [#allocation12], 4294965248 }
  0xd3   : > { %4199 = dma.done.wait (%p6082_p0), [#allocation15], 1792   ;;  %p6083_p2 = pmov %p6082_p0 }
  0xd4   : > { %v401_v0 = vld [vmem:[%s327_s23] sm:$0xff]  ;;  %v402_v1 = vld [vmem:[%s327_s23 + $0x8] sm:$0xff]  ;;  %s4235_s8 = smov 127   ;;  %v4236_v7 = vmov 0.0   ;;  %s4237_s22 = smov 126   ;;  %v6061_v8 = vmov 0  }
  0xd5   : > { %4201 = vsyncadd (%p6083_p2), [#allocation15], 4294965504  ;;  %v3494_v2 = vcombine.high %v401_v0, %v401_v0  ;;  %v3493_v3 = vcombine.low %v401_v0, %v401_v0  ;;  %v3856_v4 = vld [vmem:[%s327_s23 + $0x8] ss:$0 sps:$4 sm:$0xff]   ;;  %v3495_v5 = vcombine.low %v402_v1, %v402_v1  ;;  %v3496_v6 = vcombine.high %v402_v1, %v402_v1  ;;  %3661 = vmatprep.subr.bf16.mxu1 %v4236_v7  ;;  %s4238_s17 = smov 110   ;;  %s4239_s18 = smov 109  }
  0xd6   : > { %400 = vst [vmem:[#allocation2 + $0x10] sm:$0xf] %v3856_v4  ;;  %s4240_s20 = smov 108   ;;  %s4241_s9 = smov 92   ;;  %721 = vmatprep.mubr.bf16.mxu0 %v6061_v8  ;;  %vm4245_vm0 = vmmov 0   ;;  %3850 = vset.pattern.permute.xlu0 %v6061_v8  ;;  %v658_v9 = vld [vmem:[#allocation10] sm:$0xff] }
  0xd7   : > { %415 = vrot.lane.b32.xlu0 %v3494_v2, %s4235_s8  ;;  %413 = vrot.lane.b32.xlu1 %v3493_v3, %s4235_s8  ;;  %399 = vst [vmem:[#allocation2 + $0x8] sm:$0xf] %v3494_v2  ;;  %398 = vst [vmem:[#allocation2] sm:$0xf] %v3493_v3  ;;  %s4242_s12 = smov 91   ;;  %s4243_s11 = smov 90  }
  0xd8   : > { %3671 = vmatprep.mubr.msk.bf16.mxu1 %vm4245_vm0, %v4236_v7  ;;  %3851 = vset.pattern.permute.xlu1 %v6061_v8  ;;  %v659_v10 = vld [vmem:[#allocation10 + $0x8] sm:$0xff]  ;;  %vm6058_vm1 = vcmask 1039360   ;;  %vm6057_vm2 = vcmask 1031168   ;;  %vm6056_vm3 = vcmask 900096   ;;  %vm6055_vm4 = vcmask 891904   ;;  %s4246_s15 = smov 19  }
  0xd9   : > { %vm6054_vm5 = vcmask 883712   ;;  %vm6053_vm6 = vcmask 752640   ;;  %vm6052_vm7 = vcmask 744448   ;;  %vm6051_vm8 = vcmask 736256   ;;  %s4247_s16 = smov 1   ;;  %s4248_s21 = smov 18  }
  0xda   : > { %vm679_vm9 = vcmask 1043456   ;;  %vm675_vm10 = vcmask 588800   ;;  %s3711_s28 = smul.u32 96, %s4552_s14  ;;  %p6280_p5 = scmp.ne.s32.totalorder %s6074_s1, 0 }
  0xdb   : > { %417 = vrot.lane.b32.xlu0 %v3495_v5, %s4235_s8  ;;  %419 = vrot.lane.b32.xlu1 %v3496_v6, %s4235_s8  ;;  %s3720_s23 = smul.u32 1536, %s4313_s30 }
  0xdc   : > { %s5970_s10 = scalar_lea.vmem [#allocation17], %s3711_s28 }
  0xdf   : > { %445 = vrot.lane.b32.xlu0 %v3494_v2, %s4237_s22  ;;  %447 = vrot.lane.b32.xlu1 %v3495_v5, %s4237_s22 }
  0xe3   : > { %475 = vrot.lane.b32.xlu0 %v3494_v2, %s4238_s17  ;;  %477 = vrot.lane.b32.xlu1 %v3495_v5, %s4238_s17 }
  0xe7   : > { %443 = vrot.lane.b32.xlu0 %v3493_v3, %s4237_s22  ;;  %473 = vrot.lane.b32.xlu1 %v3493_v3, %s4238_s17 }
  0xeb   : > { %449 = vrot.lane.b32.xlu0 %v3496_v6, %s4237_s22  ;;  %479 = vrot.lane.b32.xlu1 %v3496_v6, %s4238_s17 }
  0xef   : > { %505 = vrot.lane.b32.xlu0 %v3494_v2, %s4239_s18  ;;  %507 = vrot.lane.b32.xlu1 %v3495_v5, %s4239_s18 }
  0xf3   : > { %535 = vrot.lane.b32.xlu0 %v3494_v2, %s4240_s20  ;;  %537 = vrot.lane.b32.xlu1 %v3495_v5, %s4240_s20 }
  0xf7   : > { %503 = vrot.lane.b32.xlu0 %v3493_v3, %s4239_s18  ;;  %533 = vrot.lane.b32.xlu1 %v3493_v3, %s4240_s20 }
  0xfb   : > { %509 = vrot.lane.b32.xlu0 %v3496_v6, %s4239_s18  ;;  %539 = vrot.lane.b32.xlu1 %v3496_v6, %s4240_s20 }
  0xff   : > { %565 = vrot.lane.b32.xlu0 %v3494_v2, %s4241_s9  ;;  %567 = vrot.lane.b32.xlu1 %v3495_v5, %s4241_s9 }
 0x103   : > { %595 = vrot.lane.b32.xlu0 %v3494_v2, %s4242_s12  ;;  %597 = vrot.lane.b32.xlu1 %v3495_v5, %s4242_s12 }
 0x107   : > { %563 = vrot.lane.b32.xlu0 %v3493_v3, %s4241_s9  ;;  %593 = vrot.lane.b32.xlu1 %v3493_v3, %s4242_s12 }
 0x10b   : > { %569 = vrot.lane.b32.xlu0 %v3496_v6, %s4241_s9  ;;  %599 = vrot.lane.b32.xlu1 %v3496_v6, %s4242_s12 }
 0x10f   : > { %623 = vrot.lane.b32.xlu0 %v3493_v3, %s4243_s11  ;;  %625 = vrot.lane.b32.xlu1 %v3494_v2, %s4243_s11 }
 0x113   : > { %627 = vrot.lane.b32.xlu0 %v3495_v5, %s4243_s11  ;;  %629 = vrot.lane.b32.xlu1 %v3496_v6, %s4243_s11 }
 0x117   : > { %662 = vperm.xlu0 %3850, %v658_v9   ;;  %667 = vperm.xlu1 %3851, %v659_v10  }
 0x149   : > { %v416_v11 = vpop.permute.xlu0 %415  ;;  %v414_v12 = vpop.permute.xlu1 %413 }
 0x14a   : > { %v422_v13 = vsel %vm6058_vm1, %v414_v12, %v416_v11 }
 0x14b   : > { %428 = vst [vmem:[#allocation2] sm:$0xf0] %v422_v13 }
 0x14d   : > { %v418_v14 = vpop.permute.xlu0 %417  ;;  %v420_v15 = vpop.permute.xlu1 %419 }
 0x14e   : > { %v423_v16 = vsel %vm6058_vm1, %v416_v11, %v418_v14  ;;  %v424_v17 = vsel %vm6058_vm1, %v418_v14, %v420_v15 }
 0x14f   : > { %429 = vst [vmem:[#allocation2 + $0x8] sm:$0xf0] %v423_v16  ;;  %430 = vst [vmem:[#allocation2 + $0x10] sm:$0xf0] %v424_v17 }
 0x151   : > { %v446_v18 = vpop.permute.xlu0 %445  ;;  %v448_v19 = vpop.permute.xlu1 %447 }
 0x152   : > { %v453_v20 = vsel %vm6057_vm2, %v446_v18, %v448_v19  ;;  %v643_v26 = vld [vmem:[#allocation2] sm:$0xff] }
 0x153   : > { %459 = vst [vmem:[#allocation2 + $0x20] sm:$0xf] %v453_v20 }
 0x155   : > { %v476_v21 = vpop.permute.xlu0 %475  ;;  %v478_v22 = vpop.permute.xlu1 %477 }
 0x156   : > { %v483_v23 = vsel %vm6056_vm3, %v476_v21, %v478_v22  ;;  %v644_v24 = vld [vmem:[#allocation2 + $0x8] sm:$0xff]  ;;  %v645_v25 = vld [vmem:[#allocation2 + $0x10] sm:$0xff] }
 0x157   : > { %489 = vst [vmem:[#allocation2 + $0x20] sm:$0xf0] %v483_v23  ;;  %689 = vmatprep.subr.bf16.mxu0 %v644_v24  ;;  %3662 = vmatpush3.bf16.msra.mxu1 %v645_v25 }
 0x158   : > { %690 = vmatpush1.bf16.msra.mxu0 %v643_v26  ;;  %3663 = vmatprep.subr.bf16.mxu1 %v4236_v7 }
 0x159   : > { %v444_v27 = vpop.permute.xlu0 %443  ;;  %v474_v28 = vpop.permute.xlu1 %473 }
 0x15a   : > { %v452_v29 = vsel %vm6057_vm2, %v444_v27, %v446_v18  ;;  %v482_v30 = vsel %vm6056_vm3, %v474_v28, %v476_v21 }
 0x15b   : > { %458 = vst [vmem:[#allocation2 + $0x18] sm:$0xf] %v452_v29  ;;  %488 = vst [vmem:[#allocation2 + $0x18] sm:$0xf0] %v482_v30 }
 0x15d   : > { %v450_v31 = vpop.permute.xlu0 %449  ;;  %v480_v32 = vpop.permute.xlu1 %479 }
 0x15e   : > { %v454_v33 = vsel %vm6057_vm2, %v448_v19, %v450_v31  ;;  %v484_v34 = vsel %vm6056_vm3, %v478_v22, %v480_v32  ;;  %v647_v35 = vld [vmem:[#allocation2 + $0x20] sm:$0xff] }
 0x15f   : > { %460 = vst [vmem:[#allocation2 + $0x28] sm:$0xf] %v454_v33  ;;  %490 = vst [vmem:[#allocation2 + $0x28] sm:$0xf0] %v484_v34  ;;  %691 = vmatprep.subr.bf16.mxu0 %v647_v35  ;;  %v3857_v22 = vld [vmem:[#allocation8] sm:$0xff]  }
 0x161   : > { %v506_v36 = vpop.permute.xlu0 %505  ;;  %v508_v37 = vpop.permute.xlu1 %507 }
 0x162   : > { %v513_v38 = vsel %vm6055_vm4, %v506_v36, %v508_v37  ;;  %v646_v39 = vld [vmem:[#allocation2 + $0x18] sm:$0xff] }
 0x163   : > { %519 = vst [vmem:[#allocation2 + $0x38] sm:$0xf] %v513_v38  ;;  %692 = vmatpush1.bf16.msra.mxu0 %v646_v39 }
 0x165   : > { %v536_v40 = vpop.permute.xlu0 %535  ;;  %v538_v41 = vpop.permute.xlu1 %537 }
 0x166   : > { %v543_v42 = vsel %vm6054_vm5, %v536_v40, %v538_v41  ;;  %v648_v43 = vld [vmem:[#allocation2 + $0x28] sm:$0xff] }
 0x167   : > { %549 = vst [vmem:[#allocation2 + $0x38] sm:$0xf0] %v543_v42  ;;  %3664 = vmatpush3.bf16.msra.mxu1 %v648_v43 }
 0x168   : > { %3665 = vmatprep.subr.bf16.mxu1 %v4236_v7 }
 0x169   : > { %v504_v44 = vpop.permute.xlu0 %503  ;;  %v534_v45 = vpop.permute.xlu1 %533 }
 0x16a   : > { %v512_v46 = vsel %vm6055_vm4, %v504_v44, %v506_v36  ;;  %v542_v47 = vsel %vm6054_vm5, %v534_v45, %v536_v40 }
 0x16b   : > { %518 = vst [vmem:[#allocation2 + $0x30] sm:$0xf] %v512_v46  ;;  %548 = vst [vmem:[#allocation2 + $0x30] sm:$0xf0] %v542_v47 }
 0x16d   : > { %v510_v48 = vpop.permute.xlu0 %509  ;;  %v540_v49 = vpop.permute.xlu1 %539 }
 0x16e   : > { %v514_v50 = vsel %vm6055_vm4, %v508_v37, %v510_v48  ;;  %v544_v51 = vsel %vm6054_vm5, %v538_v41, %v540_v49  ;;  %v650_v52 = vld [vmem:[#allocation2 + $0x38] sm:$0xff] }
 0x16f   : > { %520 = vst [vmem:[#allocation2 + $0x40] sm:$0xf] %v514_v50  ;;  %550 = vst [vmem:[#allocation2 + $0x40] sm:$0xf0] %v544_v51  ;;  %693 = vmatprep.subr.bf16.mxu0 %v650_v52 }
 0x171   : > { %v566_v53 = vpop.permute.xlu0 %565  ;;  %v568_v54 = vpop.permute.xlu1 %567 }
 0x172   : > { %v573_v55 = vsel %vm6053_vm6, %v566_v53, %v568_v54  ;;  %v649_v56 = vld [vmem:[#allocation2 + $0x30] sm:$0xff] }
 0x173   : > { %579 = vst [vmem:[#allocation2 + $0x50] sm:$0xf] %v573_v55  ;;  %694 = vmatpush1.bf16.msra.mxu0 %v649_v56 }
 0x175   : > { %v596_v57 = vpop.permute.xlu0 %595  ;;  %v598_v58 = vpop.permute.xlu1 %597 }
 0x176   : > { %v603_v59 = vsel %vm6052_vm7, %v596_v57, %v598_v58  ;;  %v651_v60 = vld [vmem:[#allocation2 + $0x40] sm:$0xff] }
 0x177   : > { %609 = vst [vmem:[#allocation2 + $0x50] sm:$0xf0] %v603_v59  ;;  %3666 = vmatpush3.bf16.msra.mxu1 %v651_v60 }
 0x178   : > { %3667 = vmatprep.subr.bf16.mxu1 %v4236_v7 }
 0x179   : > { %v564_v61 = vpop.permute.xlu0 %563  ;;  %v594_v62 = vpop.permute.xlu1 %593 }
 0x17a   : > { %v572_v63 = vsel %vm6053_vm6, %v564_v61, %v566_v53  ;;  %v602_v0 = vsel %vm6052_vm7, %v594_v62, %v596_v57 }
 0x17b   : > { %578 = vst [vmem:[#allocation2 + $0x48] sm:$0xf] %v572_v63  ;;  %608 = vst [vmem:[#allocation2 + $0x48] sm:$0xf0] %v602_v0 }
 0x17d   : > { %v570_v1 = vpop.permute.xlu0 %569  ;;  %v600_v2 = vpop.permute.xlu1 %599 }
 0x17e   : > { %v574_v3 = vsel %vm6053_vm6, %v568_v54, %v570_v1  ;;  %v604_v4 = vsel %vm6052_vm7, %v598_v58, %v600_v2  ;;  %v653_v5 = vld [vmem:[#allocation2 + $0x50] sm:$0xff] }
 0x17f   : > { %580 = vst [vmem:[#allocation2 + $0x58] sm:$0xf] %v574_v3  ;;  %610 = vst [vmem:[#allocation2 + $0x58] sm:$0xf0] %v604_v4  ;;  %695 = vmatprep.subr.bf16.mxu0 %v653_v5 }
 0x181   : > { %v624_v6 = vpop.permute.xlu0 %623  ;;  %v626_v9 = vpop.permute.xlu1 %625 }
 0x182   : > { %v632_v10 = vsel %vm6051_vm8, %v624_v6, %v626_v9  ;;  %v652_v11 = vld [vmem:[#allocation2 + $0x48] sm:$0xff] }
 0x183   : > { %638 = vst [vmem:[#allocation2 + $0x60] sm:$0xf] %v632_v10  ;;  %696 = vmatpush1.bf16.msra.mxu0 %v652_v11 }
 0x185   : > { %v628_v12 = vpop.permute.xlu0 %627  ;;  %v630_v13 = vpop.permute.xlu1 %629 }
 0x186   : > { %v633_v14 = vsel %vm6051_vm8, %v626_v9, %v628_v12  ;;  %v634_v15 = vsel %vm6051_vm8, %v628_v12, %v630_v13  ;;  %v654_v16 = vld [vmem:[#allocation2 + $0x58] sm:$0xff] }
 0x187   : > { %639 = vst [vmem:[#allocation2 + $0x68] sm:$0xf] %v633_v14  ;;  %640 = vst [vmem:[#allocation2 + $0x70] sm:$0xf] %v634_v15  ;;  %3668 = vmatpush3.bf16.msra.mxu1 %v654_v16  ;;  %v874_v16 = vlaneseq }
 0x188   : > { %3669 = vmatprep.subr.bf16.mxu1 %v4236_v7 }
 0x18a   : > { %v655_v17 = vld [vmem:[#allocation2 + $0x60] sm:$0xf] }
 0x18b   : > { %v681_v20 = vsel %vm679_vm9, %v655_v17, 0  ;;  %v875_v17 = vand.u32 127, %v874_v16 }
 0x18e   : > { %v656_v18 = vld [vmem:[#allocation2 + $0x68] sm:$0xf]  ;;  %v657_v19 = vld [vmem:[#allocation2 + $0x70] sm:$0xf] }
 0x18f   : > { %3526 = vmatprep.subr.msk.bf16.mxu0 %vm679_vm9, %v656_v18  ;;  %v687_v21 = vsel %vm679_vm9, %v657_v19, 0  ;;  %vm6050_vm9 = vcmask 154624   ;;  %v877_v18 = vadd.s32 256, %v875_v17  ;;  %v878_v19 = vadd.s32 384, %v875_v17 }
 0x190   : > { %698 = vmatpush1.bf16.msra.mxu0 %v681_v20  ;;  %3670 = vmatpush3.bf16.msra.mxu1 %v687_v21  ;;  %v876_v20 = vadd.s32 128, %v875_v17 }
 0x193   : > { %3527 = vmatmul.mubr.msk.bf16.vlgmr.msra.gmra.mrb[0].mxu0 %vm675_vm10, %v3857_v22  ;;  %3672 = vmatmul.mubr.msk.bf16.vlgmr.msra.gmra.mrb[0].mxu1 %vm675_vm10, %v3857_v22  ;;  %v4666_v21 = vmul.u32.u64.low 3817748708, %v877_v18  ;;  %v4667_v22 = vmul.u32.u64.high 3817748708, %v877_v18, %v4666_v21 }
 0x196   : > { %v663_v23 = vpop.permute.xlu0 %662  ;;  %v668_v24 = vpop.permute.xlu1 %667 }
 0x266   : > { %v723_v25 = vpop.f32.mrb[0].mxu0  ;;  %v766_v26 = vpop.f32.mrb[0].mxu1 }
 0x267   : > { %v724_v27 = vadd.f32 %v723_v25, %v663_v23  ;;  %v767_v28 = vadd.f32 %v766_v26, %v663_v23  ;;  %v725_v7 = vpop.f32.mrb[1].mxu0  ;;  %v3673_v29 = vpop.f32.mrb[1].mxu1  ;;  %v4672_v25 = vmul.u32.u64.low 3817748708, %v875_v17  ;;  %v4673_v26 = vmul.u32.u64.high 3817748708, %v875_v17, %v4672_v25 }
 0x268   : > { %v726_v30 = vadd.f32 %v725_v7, %v663_v23  ;;  %v727_v31 = vpop.f32.mrb[2].mxu0  ;;  %v769_v32 = vpop.f32.mrb[2].mxu1  ;;  %v907_v7 = vshrl.u32 %v4667_v22, 4 }
 0x269   : > { %v779_v33 = vmin.f32 %v724_v27, 0.0  ;;  %v781_v34 = vmin.f32 %v767_v28, 0.0  ;;  %v729_v35 = vpop.f32.mrb[3].mxu0  ;;  %v3674_v36 = vpop.f32.mrb[3].mxu1  ;;  %v728_v38 = vadd.f32 %v727_v31, %v668_v24  ;;  %v770_v39 = vadd.f32 %v769_v32, %v668_v24 }
 0x26a   : > { %v780_v37 = vmin.f32 %v726_v30, 0.0  ;;  %v730_v42 = vadd.f32 %v729_v35, %v668_v24  ;;  %vm773_vm11 = vcmp.gt.f32.partialorder %v724_v27, 0.0  ;;  %vm775_vm12 = vcmp.gt.f32.partialorder %v767_v28, 0.0 }
 0x26b   : > { %v785_v40 = vmul.f32 1.442695, %v779_v33  ;;  %v789_v41 = vmul.f32 1.442695, %v781_v34  ;;  %v782_v44 = vmin.f32 %v728_v38, 0.0  ;;  %v784_v45 = vmin.f32 %v770_v39, 0.0 }
 0x26c   : > { %v787_v43 = vmul.f32 1.442695, %v780_v37  ;;  %v783_v46 = vmin.f32 %v730_v42, 0.0  ;;  %vm774_vm13 = vcmp.gt.f32.partialorder %v726_v30, 0.0  ;;  %vm776_vm14 = vcmp.gt.f32.partialorder %v728_v38, 0.0 }
 0x26d   : > { %3884 = vpow2.f32 %v785_v40  ;;  %v791_v47 = vmul.f32 1.442695, %v782_v44  ;;  %v795_v48 = vmul.f32 1.442695, %v784_v45  ;;  %vm778_vm15 = vcmp.gt.f32.partialorder %v770_v39, 0.0 }
 0x26e   : > { %3886 = vpow2.f32 %v789_v41  ;;  %v793_v49 = vmul.f32 1.442695, %v783_v46  ;;  %vm777_vm0 = vcmp.gt.f32.partialorder %v730_v42, 0.0  ;;  %v908_v32 = vmul.u32 18, %v907_v7 }
 0x26f   : > { %3888 = vpow2.f32 %v787_v43  ;;  %v4669_v23 = vmul.u32.u64.low 3817748708, %v878_v19  ;;  %v4670_v24 = vmul.u32.u64.high 3817748708, %v878_v19, %v4669_v23 }
 0x270   : > { %3890 = vpow2.f32 %v791_v47  ;;  %v909_v36 = vsub.s32 %v877_v18, %v908_v32 }
 0x271   : > { %3892 = vpow2.f32 %v795_v48  ;;  %v918_v29 = vshrl.u32 %v4670_v24, 4  ;;  %v964_v48 = vshrl.u32 %v874_v16, 7 }
 0x272   : > { %3894 = vpow2.f32 %v793_v49  ;;  %vm925_vm10 = vcmp.ne.s32.totalorder %v909_v36, 0  ;;  %v937_v40 = vadd.s32 18, %v909_v36 }
 0x273   : > { %v919_v33 = vmul.u32 18, %v918_v29 }
 0x275   : > { %v920_v37 = vsub.s32 %v878_v19, %v919_v33 }
 0x277   : > { %v3885_v50 = vpop.eup %3884  ;;  %v938_v41 = vadd.s32 18, %v920_v37 }
 0x278   : > { %v3887_v51 = vpop.eup %3886  ;;  %v3529_v53 = vadd.f32 -1.0, %v3885_v50 }
 0x279   : > { %v3889_v52 = vpop.eup %3888  ;;  %v3531_v55 = vadd.f32 -1.0, %v3887_v51  ;;  %v965_v51 = vsub.s32 0, %v964_v48 }
 0x27a   : > { %v3891_v54 = vpop.eup %3890  ;;  %v3530_v57 = vadd.f32 -1.0, %v3889_v52  ;;  %v803_v62 = vsel %vm773_vm11, %v724_v27, %v3529_v53  ;;  %vm929_vm11 = vcmp.lt.s32.totalorder %v909_v36, 0 }
 0x27b   : > { %v3893_v56 = vpop.eup %3892  ;;  %v3532_v58 = vadd.f32 -1.0, %v3891_v54  ;;  %v805_v1 = vsel %vm775_vm12, %v767_v28, %v3531_v55  ;;  %v4675_v27 = vmul.u32.u64.low 3817748708, %v876_v20  ;;  %v4676_v28 = vmul.u32.u64.high 3817748708, %v876_v20, %v4675_v27  ;;  %vm933_vm8 = vmand %vm929_vm11, %vm925_vm10 }
 0x27c   : > { %v3895_v59 = vpop.eup %3894  ;;  %v3534_v60 = vadd.f32 -1.0, %v3893_v56  ;;  %v804_v3 = vsel %vm774_vm13, %v726_v30, %v3530_v57  ;;  %v885_v30 = vshrl.u32 %v4673_v26, 4  ;;  %vm926_vm12 = vcmp.ne.s32.totalorder %v920_v37, 0 }
 0x27d   : > { %v3533_v61 = vadd.f32 -1.0, %v3895_v59  ;;  %v806_v63 = vsel %vm776_vm14, %v728_v38, %v3532_v58  ;;  %v896_v31 = vshrl.u32 %v4676_v28, 4  ;;  %vm930_vm13 = vcmp.lt.s32.totalorder %v920_v37, 0 }
 0x27e   : > { %v809_v0 = vpack.c.bf16 %v806_v63, %v803_v62  ;;  %v808_v2 = vsel %vm778_vm15, %v770_v39, %v3534_v60  ;;  %v886_v34 = vmul.u32 18, %v885_v30  ;;  %vm934_vm7 = vmand %vm930_vm13, %vm926_vm12  ;;  %v941_v44 = vsel %vm933_vm8, %v937_v40, %v909_v36  ;;  %v1282_v40 = vld [vmem:[#allocation13 + $0x10] sm:$0xff] }
 0x27f   : > { %v807_v4 = vsel %vm777_vm0, %v730_v42, %v3533_v61  ;;  %v811_v5 = vpack.c.bf16 %v808_v2, %v805_v1  ;;  %v897_v35 = vmul.u32 18, %v896_v31  ;;  %v942_v45 = vsel %vm934_vm7, %v938_v41, %v920_v37  ;;  %v1281_v37 = vld [vmem:[#allocation13 + $0x8] sm:$0xff] }
 0x280   : > { %815 = vrot.lane.b32.xlu1 %v809_v0, %s4246_s15  ;;  %v810_v6 = vpack.c.bf16 %v807_v4, %v804_v3  ;;  %v887_v38 = vsub.s32 %v875_v17, %v886_v34  ;;  %vm949_vm4 = vcmp.eq.s32.totalorder %v941_v44, 17  ;;  %vm950_vm3 = vcmp.eq.s32.totalorder %v942_v45, 17  ;;  %v1285_v41 = vld [vmem:[#allocation13 + $0x28] sm:$0xff] }
 0x281   : > { %v898_v39 = vsub.s32 %v876_v20, %v897_v35  ;;  %vm945_vm2 = vcmp.eq.s32.totalorder %v941_v44, 0  ;;  %vm946_vm1 = vcmp.eq.s32.totalorder %v942_v45, 0  ;;  %vm960_vm12 = vmpackc.low %vm950_vm3, %vm949_vm4  ;;  %v969_v54 = vsub.s32 4, %v964_v48  ;;  %v1286_v44 = vld [vmem:[#allocation13 + $0x30] sm:$0xff] }
 0x282   : > { %817 = vrot.lane.b32.xlu0 %v810_v6, %s4246_s15  ;;  %vm923_vm14 = vcmp.ne.s32.totalorder %v887_v38, 0  ;;  %vm927_vm15 = vcmp.lt.s32.totalorder %v887_v38, 0  ;;  %v935_v42 = vadd.s32 18, %v887_v38  ;;  %v962_v50 = vsel %vm960_vm12, 65537, %v6061_v8 }
 0x283   : > { %vm924_vm0 = vcmp.ne.s32.totalorder %v898_v39, 0  ;;  %vm931_vm6 = vmand %vm927_vm15, %vm923_vm14  ;;  %v936_v43 = vadd.s32 18, %v898_v39  ;;  %v974_v55 = vrot.slane %v962_v50, %v965_v51  ;;  %vm6088_vm4 = vcmask 1039360  }
 0x284   : > { %819 = vrot.lane.b32.xlu1 %v811_v5, %s4246_s15  ;;  %v939_v46 = vsel %vm931_vm6, %v935_v42, %v887_v38  ;;  %vm996_vm15 = vmpackc.low %vm946_vm1, %vm945_vm2  ;;  %vm863_vm1 = vcmask 7168   ;;  %vm6059_vm12 = vcmask 556432   ;;  %v1280_v38 = vld [vmem:[#allocation13] sm:$0xff] }
 0x285   : > { %vm947_vm10 = vcmp.eq.s32.totalorder %v939_v46, 17  ;;  %vm943_vm13 = vcmp.eq.s32.totalorder %v939_v46, 0  ;;  %v998_v52 = vsel %vm996_vm15, 65537, %v6061_v8  ;;  %vm4686_vm2 = vcmp.ne.s16.totalorder %v974_v55, 0  ;;  %v1284_v42 = vld [vmem:[#allocation13 + $0x20] sm:$0xff] }
 0x286   : > { %v1010_v59 = vrot.slane %v998_v52, %v965_v51 }
 0x288   : > { %vm4690_vm3 = vcmp.ne.s16.totalorder %v1010_v59, 0 }
 0x2f2   : > { %v816_v9 = vpop.permute.xlu1 %815 }
 0x2f3   : > { %v4641_v10 = vsel %vm6050_vm9, 0, %v816_v9 }
 0x2f4   : > { %v818_v11 = vpop.permute.xlu0 %817  ;;  %855 = vrot.lane.b32.xlu0 %v4641_v10, %s4247_s16 }
 0x2f5   : > { %v4646_v13 = vsel %vm6050_vm9, %v816_v9, %v818_v11 }
 0x2f6   : > { %v820_v12 = vpop.permute.xlu1 %819 }
 0x2f7   : > { %v4649_v14 = vsel %vm6050_vm9, %v820_v12, 0  ;;  %v4656_v15 = vsel %vm6050_vm9, %v818_v11, %v820_v12  ;;  %vm928_vm9 = vcmp.lt.s32.totalorder %v898_v39, 0 }
 0x2f8   : > { %857 = vrot.lane.b32.xlu0 %v4646_v13, %s4247_s16  ;;  %842 = vrot.lane.b32.xlu1 %v4649_v14, %s4235_s8  ;;  %vm932_vm5 = vmand %vm928_vm9, %vm924_vm0 }
 0x2f9   : > { %v940_v47 = vsel %vm932_vm5, %v936_v43, %v898_v39  ;;  %v1283_v39 = vld [vmem:[#allocation13 + $0x18] sm:$0xff] }
 0x2fa   : > { %vm948_vm11 = vcmp.eq.s32.totalorder %v940_v47, 17  ;;  %vm944_vm14 = vcmp.eq.s32.totalorder %v940_v47, 0  ;;  %v1287_v43 = vld [vmem:[#allocation13 + $0x38] sm:$0xff] }
 0x2fb   : > { %vm959_vm0 = vmpackc.low %vm948_vm11, %vm947_vm10 }
 0x2fc   : > { %840 = vrot.lane.b32.xlu0 %v4656_v15, %s4235_s8  ;;  %859 = vrot.lane.b32.xlu1 %v4656_v15, %s4247_s16  ;;  %vm995_vm9 = vmpackc.low %vm944_vm14, %vm943_vm13  ;;  %v961_v53 = vsel %vm959_vm0, 65537, %v6061_v8  ;;  %vm6060_vm13 = vcmask 146432  }
 0x2fd   : > { %v997_v58 = vsel %vm995_vm9, 65537, %v6061_v8  ;;  %v966_v60 = vrot.slane %v961_v53, %v965_v51  ;;  %v970_v61 = vrot.slane %v961_v53, %v969_v54  ;;  %vm6097_vm10 = vmmov %vm6088_vm4  ;;  %vm1364_vm9 = vcmask 130048  }
 0x2fe   : > { %v1006_v62 = vrot.slane %v997_v58, %v969_v54  ;;  %v1002_v0 = vrot.slane %v997_v58, %v965_v51  ;;  %vm6098_vm11 = vmmov %vm6088_vm4 }
 0x2ff   : > { %vm4696_vm5 = vcmp.ne.s16.totalorder %v966_v60, 0  ;;  %vm4702_vm6 = vcmp.ne.s16.totalorder %v970_v61, 0  ;;  %vm6103_vm0 = vmmov %vm6088_vm4 }
 0x300   : > { %838 = vrot.lane.b32.xlu0 %v4646_v13, %s4235_s8  ;;  %836 = vrot.lane.b32.xlu1 %v4641_v10, %s4235_s8  ;;  %vm4710_vm7 = vcmp.ne.s16.totalorder %v1006_v62, 0  ;;  %vm4716_vm8 = vcmp.ne.s16.totalorder %v1002_v0, 0 }
 0x366   : > { %v856_v49 = vpop.permute.xlu0 %855 }
 0x367   : > { %v872_v9 = vsel %vm863_vm1, %v4641_v10, %v856_v49 }
 0x368   : > { %v983_v24 = vsel %vm4696_vm5, %v872_v9, %v4641_v10  ;;  %v978_v10 = vrot.slane %v962_v50, %v969_v54 }
 0x36a   : > { %v858_v56 = vpop.permute.xlu0 %857  ;;  %v843_v57 = vpop.permute.xlu1 %842  ;;  %vm4741_vm14 = vcmp.ne.s16.totalorder %v978_v10, 0 }
 0x36b   : > { %v864_v12 = vsel %vm863_vm1, %v856_v49, %v858_v56 }
 0x36e   : > { %v841_v1 = vpop.permute.xlu0 %840  ;;  %v860_v2 = vpop.permute.xlu1 %859 }
 0x36f   : > { %v846_v4 = vsel %vm6088_vm4, %v841_v1, %v843_v57  ;;  %v865_v5 = vsel %vm863_vm1, %v858_v56, %v860_v2  ;;  %vm6104_vm4 = vmmov %vm6103_vm0 }
 0x370   : > { %v985_v16 = vsel %vm4686_vm2, %v865_v5, %v4656_v15  ;;  %v984_v15 = vsel %vm4702_vm6, %v864_v12, %v4646_v13  ;;  %v1014_v13 = vrot.slane %v998_v52, %v969_v54 }
 0x371   : > { %v1021_v18 = vsel %vm4690_vm3, %v846_v4, %v985_v16 }
 0x372   : > { %v839_v20 = vpop.permute.xlu0 %838  ;;  %1034 = vrot.lane.b32.xlu1 %v1021_v18, %s4248_s21  ;;  %1025 = vst [vmem:[#allocation3 + $0x10] sm:$0xff] %v1021_v18  ;;  %v837_v21 = vpop.permute.xlu1 %836  ;;  %vm4745_vm15 = vcmp.ne.s16.totalorder %v1014_v13, 0 }
 0x373   : > { %v845_v22 = vsel %vm6097_vm10, %v839_v20, %v841_v1  ;;  %v844_v23 = vsel %vm6098_vm11, %v837_v21, %v839_v20  ;;  %v853_v32 = vsel %vm6103_vm0, %v843_v57, %v837_v21  ;;  %vm6105_vm10 = vmmov %vm6103_vm0  ;;  %vm6106_vm11 = vcmask 1031168  }
 0x374   : > { %v1020_v25 = vsel %vm4710_vm7, %v845_v22, %v984_v15  ;;  %v1019_v26 = vsel %vm4716_vm8, %v844_v23, %v983_v24  ;;  %vm6107_vm0 = vmmov %vm6106_vm11 }
 0x375   : > { %1028 = vrot.lane.b32.xlu0 %v1019_v26, %s4238_s17  ;;  %1023 = vst [vmem:[#allocation3] sm:$0xff] %v1019_v26  ;;  %1377 = vmatprep.subr.bf16.mxu1 %v1020_v25 }
 0x376   : > { %861 = vrot.lane.b32.xlu1 %v4649_v14, %s4247_s16 }
 0x379   : > { %1055 = vrot.lane.b32.xlu0 %v1020_v25, %s4235_s8 }
 0x37a   : > { %1080 = vrot.lane.b32.xlu1 %v1020_v25, %s4237_s22 }
 0x37d   : > { %1105 = vrot.lane.b32.xlu0 %v1020_v25, %s4238_s17 }
 0x37e   : > { %1130 = vrot.lane.b32.xlu1 %v1020_v25, %s4239_s18 }
 0x3e4   : > { %v1035_v27 = vpop.permute.xlu1 %1034 }
 0x3e5   : > { %1038 = vst.msk [vmem:[#allocation3 + $0x10] sm:$0xff] %vm6059_vm12, %v1035_v27  ;;  %vm6108_vm12 = vcmask 900096  }
 0x3e7   : > { %v1029_v28 = vpop.permute.xlu0 %1028 }
 0x3e8   : > { %1032 = vst.msk [vmem:[#allocation3] sm:$0xff] %vm6060_vm13, %v1029_v28  ;;  %v862_v30 = vpop.permute.xlu1 %861 }
 0x3e9   : > { %v866_v31 = vsel %vm863_vm1, %v860_v2, %v862_v30 }
 0x3ea   : > { %v986_v33 = vsel %vm4741_vm14, %v866_v31, %v4649_v14  ;;  %v4778_v14 = vld [vmem:[#allocation11 + $0x4] ss:$8 sps:$4 sm:$0xff]   ;;  %v3860_v31 = vld [vmem:[#allocation11] ss:$8 sps:$4 sm:$0xff]  }
 0x3eb   : > { %v1022_v34 = vsel %vm4745_vm15, %v853_v32, %v986_v33  ;;  %3543 = vmatprep.mubr.msk.bf16.mxu1 %vm1364_vm9, %v4778_v14  ;;  %v1056_v45 = vpop.permute.xlu0 %1055  ;;  %v3861_v32 = vld [vmem:[#allocation11 + $0x14] ss:$8 sps:$4 sm:$0xff]  }
 0x3ec   : > { %v4759_v36 = vld [vmem:[#allocation3 + $0x10] sm:$0xff]  ;;  %v1081_v46 = vpop.permute.xlu1 %1080 }
 0x3ef   : > { %v1039_v35 = vld [vmem:[#allocation3] sm:$0xff]  ;;  %v1106_v47 = vpop.permute.xlu0 %1105 }
 0x3f0   : > { %1078 = vrot.lane.b32.xlu1 %v1039_v35, %s4237_s22  ;;  %1053 = vrot.lane.b32.xlu0 %v1039_v35, %s4235_s8  ;;  %v1131_v48 = vpop.permute.xlu1 %1130 }
 0x3f1   : > { %1378 = vmatpush1.bf16.msra.mxu1 %v1039_v35 }
 0x3f4   : > { %1103 = vrot.lane.b32.xlu0 %v1039_v35, %s4238_s17  ;;  %1057 = vrot.lane.b32.xlu1 %v4759_v36, %s4235_s8 }
 0x3f8   : > { %1155 = vrot.lane.b32.xlu0 %v1020_v25, %s4240_s20  ;;  %1128 = vrot.lane.b32.xlu1 %v1039_v35, %s4239_s18 }
 0x3fc   : > { %1082 = vrot.lane.b32.xlu0 %v4759_v36, %s4237_s22  ;;  %1107 = vrot.lane.b32.xlu1 %v4759_v36, %s4238_s17 }
 0x400   : > { %1153 = vrot.lane.b32.xlu0 %v1039_v35, %s4240_s20  ;;  %1180 = vrot.lane.b32.xlu1 %v1020_v25, %s4241_s9 }
 0x404   : > { %1132 = vrot.lane.b32.xlu0 %v4759_v36, %s4239_s18  ;;  %1157 = vrot.lane.b32.xlu1 %v4759_v36, %s4240_s20 }
 0x408   : > { %1205 = vrot.lane.b32.xlu0 %v1020_v25, %s4242_s12  ;;  %1178 = vrot.lane.b32.xlu1 %v1039_v35, %s4241_s9 }
 0x40c   : > { %1182 = vrot.lane.b32.xlu0 %v4759_v36, %s4241_s9  ;;  %1207 = vrot.lane.b32.xlu1 %v4759_v36, %s4242_s12 }
 0x410   : > { %1203 = vrot.lane.b32.xlu0 %v1039_v35, %s4242_s12  ;;  %1230 = vrot.lane.b32.xlu1 %v1020_v25, %s4243_s11 }
 0x414   : > { %1232 = vrot.lane.b32.xlu0 %v4759_v36, %s4243_s11  ;;  %1228 = vrot.lane.b32.xlu1 %v1039_v35, %s4243_s11  ;;  %v3863_v35 = vld [vmem:[#allocation11 + $0x10] ss:$8 sps:$4 sm:$0xff]  }
 0x418   : > { %1084 = vrot.lane.b32.xlu1 %v1022_v34, %s4237_s22  ;;  %1059 = vrot.lane.b32.xlu0 %v1022_v34, %s4235_s8 }
 0x41c   : > { %1134 = vrot.lane.b32.xlu1 %v1022_v34, %s4239_s18  ;;  %1109 = vrot.lane.b32.xlu0 %v1022_v34, %s4238_s17 }
 0x420   : > { %1184 = vrot.lane.b32.xlu1 %v1022_v34, %s4241_s9  ;;  %1159 = vrot.lane.b32.xlu0 %v1022_v34, %s4240_s20 }
 0x424   : > { %1234 = vrot.lane.b32.xlu1 %v1022_v34, %s4243_s11  ;;  %1209 = vrot.lane.b32.xlu0 %v1022_v34, %s4242_s12 }
 0x428   : > { %1295 = vperm.xlu1 %3851, %v1281_v37   ;;  %1290 = vperm.xlu0 %3850, %v1280_v38   ;;  %v3864_v38 = vld [vmem:[#allocation11 + $0x24] ss:$8 sps:$4 sm:$0xff]  }
 0x42c   : > { %1305 = vperm.xlu1 %3851, %v1283_v39   ;;  %1300 = vperm.xlu0 %3850, %v1282_v40  }
 0x430   : > { %1315 = vperm.xlu1 %3851, %v1285_v41   ;;  %1310 = vperm.xlu0 %3850, %v1284_v42   ;;  %v3866_v41 = vld [vmem:[#allocation11 + $0x20] ss:$8 sps:$4 sm:$0xff]  }
 0x434   : > { %1325 = vperm.xlu1 %3851, %v1287_v43   ;;  %1320 = vperm.xlu0 %3850, %v1286_v44   ;;  %v3867_v43 = vld [vmem:[#allocation11 + $0x34] ss:$8 sps:$4 sm:$0xff]  }
 0x462   : > { %v1054_v49 = vpop.permute.xlu0 %1053  ;;  %v1079_v50 = vpop.permute.xlu1 %1078 }
 0x463   : > { %v1061_v54 = vsel %vm6105_vm10, %v1054_v49, %v1056_v45  ;;  %v1086_v60 = vsel %vm6107_vm0, %v1079_v50, %v1081_v46  ;;  %vm6110_vm10 = vcmask 891904   ;;  %vm6114_vm0 = vcmask 752640  }
 0x464   : > { %vm6111_vm13 = vmmov %vm6110_vm10 }
 0x466   : > { %v1104_v51 = vpop.permute.xlu0 %1103  ;;  %v1058_v52 = vpop.permute.xlu1 %1057 }
 0x467   : > { %v1062_v53 = vsel %vm6104_vm4, %v1056_v45, %v1058_v52  ;;  %vm6109_vm4 = vmmov %vm6108_vm12 }
 0x468   : > { %1379 = vmatprep.subr.bf16.mxu1 %v1062_v53  ;;  %v1111_v1 = vsel %vm6109_vm4, %v1104_v51, %v1106_v47  ;;  %vm6115_vm4 = vmmov %vm6114_vm0 }
 0x469   : > { %1380 = vmatpush1.bf16.msra.mxu1 %v1061_v54 }
 0x46a   : > { %v1156_v55 = vpop.permute.xlu0 %1155  ;;  %v1129_v56 = vpop.permute.xlu1 %1128 }
 0x46b   : > { %v1136_v9 = vsel %vm6111_vm13, %v1129_v56, %v1131_v48 }
 0x46e   : > { %v1083_v57 = vpop.permute.xlu0 %1082  ;;  %v1108_v58 = vpop.permute.xlu1 %1107 }
 0x46f   : > { %v1087_v59 = vsel %vm6106_vm11, %v1081_v46, %v1083_v57  ;;  %v1112_v61 = vsel %vm6108_vm12, %v1106_v47, %v1108_v58  ;;  %vm6112_vm11 = vcmask 883712   ;;  %v3869_v47 = vld [vmem:[#allocation11 + $0x30] ss:$8 sps:$4 sm:$0xff]  }
 0x470   : > { %1381 = vmatprep.subr.bf16.mxu1 %v1087_v59  ;;  %vm6113_vm12 = vmmov %vm6112_vm11 }
 0x471   : > { %1382 = vmatpush1.bf16.msra.mxu1 %v1086_v60 }
 0x472   : > { %v1154_v62 = vpop.permute.xlu0 %1153  ;;  %v1181_v0 = vpop.permute.xlu1 %1180  ;;  %1383 = vmatprep.subr.bf16.mxu1 %v1112_v61 }
 0x473   : > { %v1161_v20 = vsel %vm6113_vm12, %v1154_v62, %v1156_v55 }
 0x475   : > { %1384 = vmatpush1.bf16.msra.mxu1 %v1111_v1 }
 0x476   : > { %v1133_v2 = vpop.permute.xlu0 %1132  ;;  %v1158_v4 = vpop.permute.xlu1 %1157 }
 0x477   : > { %v1137_v5 = vsel %vm6110_vm10, %v1131_v48, %v1133_v2  ;;  %v1162_v12 = vsel %vm6112_vm11, %v1156_v55, %v1158_v4  ;;  %vm6116_vm10 = vcmask 744448   ;;  %vm6118_vm11 = vcmask 736256  }
 0x478   : > { %1385 = vmatprep.subr.bf16.mxu1 %v1137_v5  ;;  %vm6117_vm13 = vmmov %vm6116_vm10 }
 0x479   : > { %1386 = vmatpush1.bf16.msra.mxu1 %v1136_v9  ;;  %vm6119_vm12 = vmmov %vm6118_vm11 }
 0x47a   : > { %v1206_v16 = vpop.permute.xlu0 %1205  ;;  %v1179_v18 = vpop.permute.xlu1 %1178  ;;  %1387 = vmatprep.subr.bf16.mxu1 %v1162_v12 }
 0x47b   : > { %v1186_v23 = vsel %vm6115_vm4, %v1179_v18, %v1181_v0  ;;  %vm6121_vm4 = vcmask 1031168  }
 0x47d   : > { %1388 = vmatpush1.bf16.msra.mxu1 %v1161_v20 }
 0x47e   : > { %v1183_v21 = vpop.permute.xlu0 %1182  ;;  %v1208_v15 = vpop.permute.xlu1 %1207 }
 0x47f   : > { %v1187_v22 = vsel %vm6114_vm0, %v1181_v0, %v1183_v21  ;;  %v1212_v24 = vsel %vm6116_vm10, %v1206_v16, %v1208_v15  ;;  %vm6120_vm0 = vcmask 1039360   ;;  %vm6122_vm10 = vcmask 900096  }
 0x480   : > { %1389 = vmatprep.subr.bf16.mxu1 %v1187_v22 }
 0x481   : > { %1390 = vmatpush1.bf16.msra.mxu1 %v1186_v23 }
 0x482   : > { %v1204_v25 = vpop.permute.xlu0 %1203  ;;  %v1231_v26 = vpop.permute.xlu1 %1230  ;;  %1391 = vmatprep.subr.bf16.mxu1 %v1212_v24 }
 0x483   : > { %v1211_v10 = vsel %vm6117_vm13, %v1204_v25, %v1206_v16  ;;  %vm6123_vm13 = vcmask 891904  }
 0x485   : > { %1392 = vmatpush1.bf16.msra.mxu1 %v1211_v10 }
 0x486   : > { %v1233_v13 = vpop.permute.xlu0 %1232  ;;  %v1229_v27 = vpop.permute.xlu1 %1228 }
 0x487   : > { %v1237_v28 = vsel %vm6118_vm11, %v1231_v26, %v1233_v13  ;;  %v1236_v30 = vsel %vm6119_vm12, %v1229_v27, %v1231_v26  ;;  %vm6124_vm11 = vcmask 883712   ;;  %vm6125_vm12 = vcmask 752640  }
 0x488   : > { %1393 = vmatprep.subr.bf16.mxu1 %v1237_v28 }
 0x489   : > { %1394 = vmatpush1.bf16.msra.mxu1 %v1236_v30 }
 0x48a   : > { %1450 = vmatprep.subr.bf16.mxu1 %v6061_v8  ;;  %v1060_v33 = vpop.permute.xlu0 %1059  ;;  %v1085_v37 = vpop.permute.xlu1 %1084 }
 0x48b   : > { %v1063_v34 = vsel %vm6120_vm0, %v1058_v52, %v1060_v33  ;;  %v1088_v39 = vsel %vm6121_vm4, %v1083_v57, %v1085_v37  ;;  %vm6126_vm0 = vcmask 744448   ;;  %vm6127_vm4 = vcmask 736256  }
 0x48c   : > { %1410 = vmatmul.mubr.bf16.vlgmr.msra.gmra.mrb[4].mxu1 %v3860_v31 }
 0x48d   : > { %1451 = vmatpush1.bf16.msra.mxu1 %v4759_v36  ;;  %3544 = vmatprep.mubr.msk.bf16.mxu1 %vm1364_vm9, %v3861_v32 }
 0x48e   : > { %1452 = vmatprep.subr.bf16.mxu1 %v6061_v8  ;;  %v1110_v40 = vpop.permute.xlu0 %1109  ;;  %v1135_v42 = vpop.permute.xlu1 %1134 }
 0x48f   : > { %v1113_v36 = vsel %vm6122_vm10, %v1108_v58, %v1110_v40  ;;  %v1138_v44 = vsel %vm6123_vm13, %v1133_v2, %v1135_v42 }
 0x491   : > { %1453 = vmatpush1.bf16.msra.mxu1 %v1063_v34 }
 0x492   : > { %1454 = vmatprep.subr.bf16.mxu1 %v6061_v8  ;;  %v1160_v45 = vpop.permute.xlu0 %1159  ;;  %v1185_v48 = vpop.permute.xlu1 %1184 }
 0x493   : > { %v1163_v46 = vsel %vm6124_vm11, %v1158_v4, %v1160_v45  ;;  %v1188_v49 = vsel %vm6125_vm12, %v1183_v21, %v1185_v48 }
 0x494   : > { %1420 = vmatmul.mubr.bf16.gmra.mrb[8].mxu1 %v3863_v35 }
 0x495   : > { %1455 = vmatpush1.bf16.msra.mxu1 %v1088_v39  ;;  %3545 = vmatprep.mubr.msk.bf16.mxu1 %vm1364_vm9, %v3864_v38 }
 0x496   : > { %1456 = vmatprep.subr.bf16.mxu1 %v6061_v8  ;;  %v1210_v50 = vpop.permute.xlu0 %1209  ;;  %v1235_v52 = vpop.permute.xlu1 %1234 }
 0x497   : > { %v1213_v51 = vsel %vm6126_vm0, %v1208_v15, %v1210_v50  ;;  %v1238_v53 = vsel %vm6127_vm4, %v1233_v13, %v1235_v52 }
 0x499   : > { %1457 = vmatpush1.bf16.msra.mxu1 %v1113_v36 }
 0x49a   : > { %1458 = vmatprep.subr.bf16.mxu1 %v6061_v8 }
 0x49c   : > { %1430 = vmatmul.mubr.bf16.gmra.mrb[12].mxu1 %v3866_v41 }
 0x49d   : > { %1459 = vmatpush1.bf16.msra.mxu1 %v1138_v44  ;;  %3546 = vmatprep.mubr.msk.bf16.mxu1 %vm1364_vm9, %v3867_v43 }
 0x49e   : > { %1460 = vmatprep.subr.bf16.mxu1 %v6061_v8 }
 0x4a1   : > { %1461 = vmatpush1.bf16.msra.mxu1 %v1163_v46 }
 0x4a2   : > { %1462 = vmatprep.subr.bf16.mxu1 %v6061_v8 }
 0x4a4   : > { %1440 = vmatmul.mubr.bf16.gmra.mrb[16].mxu1 %v3869_v47 }
 0x4a5   : > { %1463 = vmatpush1.bf16.msra.mxu1 %v1188_v49  ;;  %3547 = vmatprep.mubr.msk.bf16.mxu1 %vm1364_vm9, %v4778_v14 }
 0x4a6   : > { %1464 = vmatprep.subr.bf16.mxu1 %v6061_v8 }
 0x4a7   : > { %v4841_v14 = vpop.permute.xlu0 %1290  ;;  %v4846_v57 = vpop.permute.xlu1 %1295 }
 0x4a9   : > { %1465 = vmatpush1.bf16.msra.mxu1 %v1213_v51 }
 0x4aa   : > { %1466 = vmatprep.subr.bf16.mxu1 %v6061_v8 }
 0x4ab   : > { %v4861_v16 = vpop.permute.xlu0 %1300  ;;  %v4866_v22 = vpop.permute.xlu1 %1305 }
 0x4ad   : > { %1467 = vmatpush1.bf16.msra.mxu1 %v1238_v53 }
 0x4af   : > { %v4881_v34 = vpop.permute.xlu0 %1310 }
 0x4b0   : > { %1483 = vmatmul.mubr.bf16.vlgmr.msra.gmra.mrb[20].mxu1 %v3860_v31 }
 0x4b1   : > { %3548 = vmatprep.mubr.msk.bf16.mxu1 %vm1364_vm9, %v3861_v32 }
 0x4b8   : > { %1491 = vmatmul.mubr.bf16.gmra.mrb[24].mxu1 %v3863_v35 }
 0x4b9   : > { %3549 = vmatprep.mubr.msk.bf16.mxu1 %vm1364_vm9, %v3864_v38 }
 0x4c0   : > { %1499 = vmatmul.mubr.bf16.gmra.mrb[28].mxu1 %v3866_v41  ;;  %v4886_v41 = vpop.permute.xlu1 %1315 }
 0x4c1   : > { %3550 = vmatprep.mubr.msk.bf16.mxu1 %vm1364_vm9, %v3867_v43 }
 0x4c8   : > { %1507 = vmatmul.mubr.bf16.gmra.mrb[32].mxu1 %v3869_v47 }
 0x55f   : > { %v1411_v54 = vpop.f32.mrb[4].mxu1 }
 0x560   : > { %v4844_v55 = vadd.f32 %v1411_v54, %v4841_v14  ;;  %v1413_v56 = vpop.f32.mrb[5].mxu1 }
 0x561   : > { %v4849_v58 = vadd.f32 %v1413_v56, %v4841_v14  ;;  %v1415_v59 = vpop.f32.mrb[6].mxu1 }
 0x562   : > { %v1539_v60 = vmin.f32 %v4844_v55, 0.0  ;;  %v4853_v61 = vadd.f32 %v1415_v59, %v4846_v57  ;;  %v1417_v62 = vpop.f32.mrb[7].mxu1  ;;  %vm1515_vm9 = vcmp.gt.f32.partialorder %v4844_v55, 0.0 }
 0x563   : > { %v1540_v0 = vmin.f32 %v4849_v58, 0.0  ;;  %v4857_v1 = vadd.f32 %v1417_v62, %v4846_v57  ;;  %vm1516_vm10 = vcmp.gt.f32.partialorder %v4849_v58, 0.0 }
 0x564   : > { %v1563_v2 = vmul.f32 1.442695, %v1539_v60  ;;  %v1542_v4 = vmin.f32 %v4853_v61, 0.0  ;;  %vm1518_vm13 = vcmp.gt.f32.partialorder %v4853_v61, 0.0 }
 0x565   : > { %v1565_v5 = vmul.f32 1.442695, %v1540_v0  ;;  %v1543_v9 = vmin.f32 %v4857_v1, 0.0  ;;  %vm1519_vm11 = vcmp.gt.f32.partialorder %v4857_v1, 0.0 }
 0x566   : > { %3896 = vpow2.f32 %v1563_v2  ;;  %v1569_v12 = vmul.f32 1.442695, %v1542_v4 }
 0x567   : > { %3898 = vpow2.f32 %v1565_v5  ;;  %v1571_v18 = vmul.f32 1.442695, %v1543_v9  ;;  %v1421_v20 = vpop.f32.mrb[8].mxu1  ;;  %v4910_v9 = vpop.permute.xlu0 %1320 }
 0x568   : > { %3900 = vpow2.f32 %v1569_v12  ;;  %v4864_v21 = vadd.f32 %v1421_v20, %v4861_v16  ;;  %v1423_v15 = vpop.f32.mrb[9].mxu1 }
 0x569   : > { %3902 = vpow2.f32 %v1571_v18  ;;  %v4869_v23 = vadd.f32 %v1423_v15, %v4861_v16  ;;  %v1425_v24 = vpop.f32.mrb[10].mxu1 }
 0x56a   : > { %v1545_v25 = vmin.f32 %v4864_v21, 0.0  ;;  %v4873_v26 = vadd.f32 %v1425_v24, %v4866_v22  ;;  %v1427_v10 = vpop.f32.mrb[11].mxu1  ;;  %vm1521_vm12 = vcmp.gt.f32.partialorder %v4864_v21, 0.0 }
 0x56b   : > { %v1546_v13 = vmin.f32 %v4869_v23, 0.0  ;;  %v4877_v27 = vadd.f32 %v1427_v10, %v4866_v22  ;;  %vm1522_vm0 = vcmp.gt.f32.partialorder %v4869_v23, 0.0 }
 0x56c   : > { %v1575_v28 = vmul.f32 1.442695, %v1545_v25  ;;  %v1548_v30 = vmin.f32 %v4873_v26, 0.0  ;;  %vm1524_vm4 = vcmp.gt.f32.partialorder %v4873_v26, 0.0 }
 0x56d   : > { %v1577_v31 = vmul.f32 1.442695, %v1546_v13  ;;  %v1549_v32 = vmin.f32 %v4877_v27, 0.0 }
 0x56e   : > { %3904 = vpow2.f32 %v1575_v28  ;;  %v1581_v33 = vmul.f32 1.442695, %v1548_v30  ;;  %v4916_v28 = vpop.permute.xlu1 %1325 }
 0x56f   : > { %3906 = vpow2.f32 %v1577_v31  ;;  %v1583_v35 = vmul.f32 1.442695, %v1549_v32  ;;  %v1431_v37 = vpop.f32.mrb[12].mxu1 }
 0x570   : > { %v3897_v38 = vpop.eup %3896  ;;  %3908 = vpow2.f32 %v1581_v33  ;;  %v4884_v39 = vadd.f32 %v1431_v37, %v4881_v34  ;;  %v1433_v40 = vpop.f32.mrb[13].mxu1 }
 0x571   : > { %v3899_v36 = vpop.eup %3898  ;;  %v3551_v42 = vadd.f32 -1.0, %v3897_v38  ;;  %3910 = vpow2.f32 %v1583_v35  ;;  %v4889_v43 = vadd.f32 %v1433_v40, %v4881_v34  ;;  %v1435_v44 = vpop.f32.mrb[14].mxu1 }
 0x572   : > { %v3901_v45 = vpop.eup %3900  ;;  %v3552_v46 = vadd.f32 -1.0, %v3899_v36  ;;  %v1551_v47 = vmin.f32 %v4884_v39, 0.0  ;;  %v4894_v48 = vadd.f32 %v1435_v44, %v4886_v41  ;;  %v1437_v49 = vpop.f32.mrb[15].mxu1 }
 0x573   : > { %v3903_v50 = vpop.eup %3902  ;;  %v3554_v51 = vadd.f32 -1.0, %v3901_v45  ;;  %v1552_v52 = vmin.f32 %v4889_v43, 0.0  ;;  %v4899_v53 = vadd.f32 %v1437_v49, %v4886_v41  ;;  %v1635_v0 = vsel %vm1515_vm9, %v4844_v55, %v3551_v42 }
 0x574   : > { %v3555_v54 = vadd.f32 -1.0, %v3903_v50  ;;  %v1587_v56 = vmul.f32 1.442695, %v1551_v47  ;;  %v1554_v59 = vmin.f32 %v4894_v48, 0.0  ;;  %v1636_v5 = vsel %vm1516_vm10, %v4849_v58, %v3552_v46 }
 0x575   : > { %v1589_v60 = vmul.f32 1.442695, %v1552_v52  ;;  %v1555_v62 = vmin.f32 %v4899_v53, 0.0  ;;  %v1638_v4 = vsel %vm1518_vm13, %v4853_v61, %v3554_v51  ;;  %vm1525_vm9 = vcmp.gt.f32.partialorder %v4877_v27, 0.0 }
 0x576   : > { %3912 = vpow2.f32 %v1587_v56  ;;  %v1593_v2 = vmul.f32 1.442695, %v1554_v59  ;;  %v1659_v20 = vpack.c.bf16 %v1638_v4, %v1635_v0  ;;  %v1639_v15 = vsel %vm1519_vm11, %v4857_v1, %v3555_v54 }
 0x577   : > { %3914 = vpow2.f32 %v1589_v60  ;;  %v1595_v12 = vmul.f32 1.442695, %v1555_v62  ;;  %v1441_v18 = vpop.f32.mrb[16].mxu1  ;;  %v1660_v10 = vpack.c.bf16 %v1639_v15, %v1636_v5  ;;  %vm1527_vm10 = vcmp.gt.f32.partialorder %v4884_v39, 0.0 }
 0x578   : > { %v3905_v24 = vpop.eup %3904  ;;  %3916 = vpow2.f32 %v1593_v2  ;;  %v4914_v25 = vadd.f32 %v1441_v18, %v4910_v9  ;;  %v1443_v55 = vpop.f32.mrb[17].mxu1  ;;  %1683 = vrot.lane.b32.xlu0 %v1659_v20, %s4246_s15  ;;  %vm1530_vm13 = vcmp.gt.f32.partialorder %v4894_v48, 0.0  ;;  %vm1528_vm11 = vcmp.gt.f32.partialorder %v4889_v43, 0.0 }
 0x579   : > { %v3907_v13 = vpop.eup %3906  ;;  %v3557_v61 = vadd.f32 -1.0, %v3905_v24  ;;  %3918 = vpow2.f32 %v1595_v12  ;;  %v4919_v58 = vadd.f32 %v1443_v55, %v4910_v9  ;;  %v1445_v30 = vpop.f32.mrb[18].mxu1  ;;  %1685 = vrot.lane.b32.xlu1 %v1660_v10, %s4246_s15 }
 0x57a   : > { %v3909_v31 = vpop.eup %3908  ;;  %v3558_v1 = vadd.f32 -1.0, %v3907_v13  ;;  %v1557_v32 = vmin.f32 %v4914_v25, 0.0  ;;  %v4925_v33 = vadd.f32 %v1445_v30, %v4916_v28  ;;  %v1447_v35 = vpop.f32.mrb[19].mxu1 }
 0x57b   : > { %v3911_v37 = vpop.eup %3910  ;;  %v3560_v38 = vadd.f32 -1.0, %v3909_v31  ;;  %v1558_v40 = vmin.f32 %v4919_v58, 0.0  ;;  %v4931_v36 = vadd.f32 %v1447_v35, %v4916_v28  ;;  %v1641_v49 = vsel %vm1521_vm12, %v4864_v21, %v3557_v61 }
 0x57c   : > { %v3561_v42 = vadd.f32 -1.0, %v3911_v37  ;;  %v1599_v44 = vmul.f32 1.442695, %v1557_v32  ;;  %v1560_v45 = vmin.f32 %v4925_v33, 0.0  ;;  %v1642_v52 = vsel %vm1522_vm0, %v4869_v23, %v3558_v1 }
 0x57d   : > { %v1601_v46 = vmul.f32 1.442695, %v1558_v40  ;;  %v1561_v47 = vmin.f32 %v4931_v36, 0.0  ;;  %v1644_v51 = vsel %vm1524_vm4, %v4873_v26, %v3560_v38  ;;  %vm1531_vm12 = vcmp.gt.f32.partialorder %v4899_v53, 0.0 }
 0x57e   : > { %3920 = vpow2.f32 %v1599_v44  ;;  %v1605_v50 = vmul.f32 1.442695, %v1560_v45  ;;  %v1662_v56 = vpack.c.bf16 %v1644_v51, %v1641_v49  ;;  %v1645_v59 = vsel %vm1525_vm9, %v4877_v27, %v3561_v42 }
 0x57f   : > { %3922 = vpow2.f32 %v1601_v46  ;;  %v1607_v54 = vmul.f32 1.442695, %v1561_v47  ;;  %v1663_v62 = vpack.c.bf16 %v1645_v59, %v1642_v52  ;;  %vm1533_vm0 = vcmp.gt.f32.partialorder %v4914_v25, 0.0 }
 0x580   : > { %v3913_v60 = vpop.eup %3912  ;;  %3924 = vpow2.f32 %v1605_v50  ;;  %1689 = vrot.lane.b32.xlu1 %v1662_v56, %s4246_s15  ;;  %vm1536_vm4 = vcmp.gt.f32.partialorder %v4925_v33, 0.0  ;;  %vm1534_vm9 = vcmp.gt.f32.partialorder %v4919_v58, 0.0 }
 0x581   : > { %v3915_v0 = vpop.eup %3914  ;;  %v3563_v2 = vadd.f32 -1.0, %v3913_v60  ;;  %3926 = vpow2.f32 %v1607_v54  ;;  %1691 = vrot.lane.b32.xlu0 %v1663_v62, %s4246_s15 }
 0x582   : > { %v3917_v21 = vpop.eup %3916  ;;  %v3564_v26 = vadd.f32 -1.0, %v3915_v0 }
 0x583   : > { %v3919_v4 = vpop.eup %3918  ;;  %v3566_v5 = vadd.f32 -1.0, %v3917_v21  ;;  %v1484_v23 = vpop.f32.mrb[20].mxu1  ;;  %v1647_v15 = vsel %vm1527_vm10, %v4884_v39, %v3563_v2  ;;  %vm1537_vm10 = vcmp.gt.f32.partialorder %v4931_v36, 0.0 }
 0x584   : > { %v3567_v27 = vadd.f32 -1.0, %v3919_v4  ;;  %v4948_v12 = vadd.f32 %v1484_v23, %v4841_v14  ;;  %v1486_v18 = vpop.f32.mrb[21].mxu1  ;;  %v1648_v30 = vsel %vm1528_vm11, %v4889_v43, %v3564_v26 }
 0x585   : > { %v1487_v20 = vpop.f32.mrb[22].mxu1  ;;  %v1650_v24 = vsel %vm1530_vm13, %v4894_v48, %v3566_v5 }
 0x586   : > { %v1541_v55 = vmin.f32 %v4948_v12, 0.0  ;;  %v1488_v10 = vadd.f32 %v1487_v20, %v4846_v57  ;;  %v1489_v13 = vpop.f32.mrb[23].mxu1  ;;  %v1665_v61 = vpack.c.bf16 %v1650_v24, %v1647_v15  ;;  %v1651_v14 = vsel %vm1531_vm12, %v4899_v53, %v3567_v27 }
 0x587   : > { %v1666_v39 = vpack.c.bf16 %v1651_v14, %v1648_v30  ;;  %vm1517_vm13 = vcmp.gt.f32.partialorder %v4948_v12, 0.0 }
 0x588   : > { %v3921_v31 = vpop.eup %3920  ;;  %v1567_v1 = vmul.f32 1.442695, %v1541_v55  ;;  %v1544_v32 = vmin.f32 %v1488_v10, 0.0  ;;  %1695 = vrot.lane.b32.xlu0 %v1665_v61, %s4246_s15  ;;  %vm1520_vm11 = vcmp.gt.f32.partialorder %v1488_v10, 0.0 }
 0x589   : > { %v3923_v35 = vpop.eup %3922  ;;  %v3569_v48 = vadd.f32 -1.0, %v3921_v31  ;;  %1697 = vrot.lane.b32.xlu1 %v1666_v39, %s4246_s15 }
 0x58a   : > { %v3925_v37 = vpop.eup %3924  ;;  %3928 = vpow2.f32 %v1567_v1  ;;  %v1573_v38 = vmul.f32 1.442695, %v1544_v32  ;;  %v3570_v40 = vadd.f32 -1.0, %v3923_v35 }
 0x58b   : > { %v3927_v57 = vpop.eup %3926  ;;  %v3572_v43 = vadd.f32 -1.0, %v3925_v37  ;;  %v1492_v42 = vpop.f32.mrb[24].mxu1  ;;  %v1653_v47 = vsel %vm1533_vm0, %v4914_v25, %v3569_v48 }
 0x58c   : > { %v3573_v53 = vadd.f32 -1.0, %v3927_v57  ;;  %3930 = vpow2.f32 %v1573_v38  ;;  %v1493_v44 = vadd.f32 %v1492_v42, %v4861_v16  ;;  %v1494_v45 = vpop.f32.mrb[25].mxu1  ;;  %v1654_v56 = vsel %vm1534_vm9, %v4919_v58, %v3570_v40 }
 0x58d   : > { %v1495_v46 = vpop.f32.mrb[26].mxu1  ;;  %v1656_v49 = vsel %vm1536_vm4, %v4925_v33, %v3572_v43 }
 0x58e   : > { %v1547_v50 = vmin.f32 %v1493_v44, 0.0  ;;  %v1496_v51 = vadd.f32 %v1495_v46, %v4866_v22  ;;  %v1668_v52 = vpack.c.bf16 %v1656_v49, %v1653_v47  ;;  %v1497_v54 = vpop.f32.mrb[27].mxu1  ;;  %v1657_v59 = vsel %vm1537_vm10, %v4931_v36, %v3573_v53 }
 0x58f   : > { %v1669_v62 = vpack.c.bf16 %v1657_v59, %v1654_v56  ;;  %vm1523_vm12 = vcmp.gt.f32.partialorder %v1493_v44, 0.0 }
 0x590   : > { %v1579_v16 = vmul.f32 1.442695, %v1547_v50  ;;  %v1550_v60 = vmin.f32 %v1496_v51, 0.0  ;;  %1701 = vrot.lane.b32.xlu1 %v1668_v52, %s4246_s15  ;;  %vm1526_vm0 = vcmp.gt.f32.partialorder %v1496_v51, 0.0 }
 0x591   : > { %1703 = vrot.lane.b32.xlu0 %v1669_v62, %s4246_s15 }
 0x592   : > { %3932 = vpow2.f32 %v1579_v16  ;;  %v1585_v25 = vmul.f32 1.442695, %v1550_v60 }
 0x593   : > { %v1500_v33 = vpop.f32.mrb[28].mxu1 }
 0x594   : > { %v3929_v0 = vpop.eup %3928  ;;  %3934 = vpow2.f32 %v1585_v25  ;;  %v1501_v22 = vadd.f32 %v1500_v33, %v4881_v34  ;;  %v1502_v2 = vpop.f32.mrb[29].mxu1 }
 0x595   : > { %v3553_v21 = vadd.f32 -1.0, %v3929_v0  ;;  %v1503_v4 = vpop.f32.mrb[30].mxu1 }
 0x596   : > { %v3931_v58 = vpop.eup %3930  ;;  %v1553_v26 = vmin.f32 %v1501_v22, 0.0  ;;  %v1504_v36 = vadd.f32 %v1503_v4, %v4886_v41  ;;  %v1505_v5 = vpop.f32.mrb[31].mxu1  ;;  %vm1529_vm4 = vcmp.gt.f32.partialorder %v1501_v22, 0.0 }
 0x597   : > { %v3556_v23 = vadd.f32 -1.0, %v3931_v58  ;;  %v1637_v20 = vsel %vm1517_vm13, %v4948_v12, %v3553_v21 }
 0x598   : > { %v1591_v27 = vmul.f32 1.442695, %v1553_v26  ;;  %v1556_v18 = vmin.f32 %v1504_v36, 0.0  ;;  %vm1532_vm9 = vcmp.gt.f32.partialorder %v1504_v36, 0.0 }
 0x599   : > { %v1640_v15 = vsel %vm1520_vm11, %v1488_v10, %v3556_v23  ;;  %vm6128_vm11 = vcmask 154624  }
 0x59a   : > { %3936 = vpow2.f32 %v1591_v27  ;;  %v1597_v24 = vmul.f32 1.442695, %v1556_v18  ;;  %v1661_v34 = vpack.c.bf16 %v1640_v15, %v1637_v20 }
 0x59b   : > { %v1508_v55 = vpop.f32.mrb[32].mxu1 }
 0x59c   : > { %v3933_v13 = vpop.eup %3932  ;;  %3938 = vpow2.f32 %v1597_v24  ;;  %v1509_v61 = vadd.f32 %v1508_v55, %v4910_v9  ;;  %v1510_v30 = vpop.f32.mrb[33].mxu1  ;;  %1687 = vrot.lane.b32.xlu0 %v1661_v34, %s4246_s15 }
 0x59d   : > { %v3559_v41 = vadd.f32 -1.0, %v3933_v13  ;;  %v1511_v14 = vpop.f32.mrb[34].mxu1 }
 0x59e   : > { %v3935_v31 = vpop.eup %3934  ;;  %v1559_v1 = vmin.f32 %v1509_v61, 0.0  ;;  %v1512_v32 = vadd.f32 %v1511_v14, %v4916_v28  ;;  %v1513_v39 = vpop.f32.mrb[35].mxu1  ;;  %vm1535_vm10 = vcmp.gt.f32.partialorder %v1509_v61, 0.0 }
 0x59f   : > { %v3562_v12 = vadd.f32 -1.0, %v3935_v31  ;;  %v1643_v48 = vsel %vm1523_vm12, %v1493_v44, %v3559_v41  ;;  %vm6129_vm12 = vmmov %vm6128_vm11 }
 0x5a0   : > { %v1603_v10 = vmul.f32 1.442695, %v1559_v1  ;;  %v1562_v35 = vmin.f32 %v1512_v32, 0.0  ;;  %vm1538_vm13 = vcmp.gt.f32.partialorder %v1512_v32, 0.0 }
 0x5a1   : > { %v1646_v37 = vsel %vm1526_vm0, %v1496_v51, %v3562_v12  ;;  %vm6130_vm0 = vmmov %vm6128_vm11 }
 0x5a2   : > { %3940 = vpow2.f32 %v1603_v10  ;;  %v1609_v38 = vmul.f32 1.442695, %v1562_v35  ;;  %v1664_v9 = vpack.c.bf16 %v1646_v37, %v1643_v48 }
 0x5a4   : > { %v3937_v57 = vpop.eup %3936  ;;  %3942 = vpow2.f32 %v1609_v38  ;;  %1693 = vrot.lane.b32.xlu1 %v1664_v9, %s4246_s15 }
 0x5a5   : > { %v3565_v40 = vadd.f32 -1.0, %v3937_v57 }
 0x5a6   : > { %v3939_v43 = vpop.eup %3938 }
 0x5a7   : > { %v3568_v42 = vadd.f32 -1.0, %v3939_v43  ;;  %v1649_v28 = vsel %vm1529_vm4, %v1501_v22, %v3565_v40  ;;  %vm6131_vm4 = vmmov %vm6130_vm0 }
 0x5a9   : > { %v1652_v53 = vsel %vm1532_vm9, %v1504_v36, %v3568_v42  ;;  %vm6132_vm9 = vmmov %vm6130_vm0 }
 0x5aa   : > { %v1667_v45 = vpack.c.bf16 %v1652_v53, %v1649_v28 }
 0x5ac   : > { %v3941_v46 = vpop.eup %3940  ;;  %1699 = vrot.lane.b32.xlu0 %v1667_v45, %s4246_s15 }
 0x5ad   : > { %v3571_v44 = vadd.f32 -1.0, %v3941_v46 }
 0x5ae   : > { %v3943_v47 = vpop.eup %3942 }
 0x5af   : > { %v3574_v49 = vadd.f32 -1.0, %v3943_v47  ;;  %v1655_v50 = vsel %vm1535_vm10, %v1509_v61, %v3571_v44  ;;  %vm6133_vm10 = vmmov %vm6130_vm0 }
 0x5b1   : > { %v1658_v51 = vsel %vm1538_vm13, %v1512_v32, %v3574_v49  ;;  %vm6134_vm13 = vmmov %vm6130_vm0 }
 0x5b2   : > { %v1670_v52 = vpack.c.bf16 %v1658_v51, %v1655_v50 }
 0x5b4   : > { %1705 = vrot.lane.b32.xlu1 %v1670_v52, %s4246_s15 }
 0x5ea   : > { %v1684_v54 = vpop.permute.xlu0 %1683 }
 0x5eb   : > { %v4983_v56 = vsel %vm6128_vm11, 0, %v1684_v54  ;;  %v1686_v59 = vpop.permute.xlu1 %1685  ;;  %vm6135_vm11 = vmmov %vm6130_vm0 }
 0x5ec   : > { %1827 = vrot.lane.b32.xlu0 %v4983_v56, %s4247_s16  ;;  %1755 = vrot.lane.b32.xlu1 %v4983_v56, %s4235_s8  ;;  %v4990_v16 = vsel %vm6129_vm12, %v1684_v54, %v1686_v59  ;;  %vm6136_vm12 = vmmov %vm6130_vm0 }
 0x5f0   : > { %1829 = vrot.lane.b32.xlu0 %v4990_v16, %s4247_s16 }
 0x5f2   : > { %v1690_v60 = vpop.permute.xlu1 %1689 }
 0x5f3   : > { %v4995_v62 = vsel %vm6130_vm0, 0, %v1690_v60  ;;  %v1692_v25 = vpop.permute.xlu0 %1691 }
 0x5f4   : > { %1757 = vrot.lane.b32.xlu0 %v4990_v16, %s4235_s8  ;;  %1835 = vrot.lane.b32.xlu1 %v4995_v62, %s4247_s16  ;;  %v5002_v33 = vsel %vm6131_vm4, %v1690_v60, %v1692_v25  ;;  %vm6137_vm4 = vmmov %vm6130_vm0 }
 0x5f8   : > { %1763 = vrot.lane.b32.xlu0 %v4995_v62, %s4235_s8  ;;  %1837 = vrot.lane.b32.xlu1 %v5002_v33, %s4247_s16 }
 0x5fa   : > { %v1696_v0 = vpop.permute.xlu0 %1695 }
 0x5fb   : > { %v5009_v22 = vsel %vm6132_vm9, 0, %v1696_v0  ;;  %v1698_v2 = vpop.permute.xlu1 %1697  ;;  %vm6138_vm9 = vmmov %vm6130_vm0 }
 0x5fc   : > { %1843 = vrot.lane.b32.xlu0 %v5009_v22, %s4247_s16  ;;  %1765 = vrot.lane.b32.xlu1 %v5002_v33, %s4235_s8  ;;  %v5016_v21 = vsel %vm6133_vm10, %v1696_v0, %v1698_v2  ;;  %vm6139_vm10 = vmmov %vm6130_vm0 }
 0x600   : > { %1771 = vrot.lane.b32.xlu1 %v5009_v22, %s4235_s8  ;;  %1845 = vrot.lane.b32.xlu0 %v5016_v21, %s4247_s16 }
 0x602   : > { %v1702_v4 = vpop.permute.xlu1 %1701 }
 0x603   : > { %v5023_v58 = vsel %vm6134_vm13, 0, %v1702_v4  ;;  %v1704_v26 = vpop.permute.xlu0 %1703  ;;  %vm6140_vm13 = vmmov %vm6130_vm0 }
 0x604   : > { %1773 = vrot.lane.b32.xlu0 %v5016_v21, %s4235_s8  ;;  %1851 = vrot.lane.b32.xlu1 %v5023_v58, %s4247_s16  ;;  %v5030_v36 = vsel %vm6135_vm11, %v1702_v4, %v1704_v26  ;;  %vm6141_vm11 = vmmov %vm6130_vm0 }
 0x608   : > { %1779 = vrot.lane.b32.xlu0 %v5023_v58, %s4235_s8  ;;  %1853 = vrot.lane.b32.xlu1 %v5030_v36, %s4247_s16 }
 0x60c   : > { %1781 = vrot.lane.b32.xlu1 %v5030_v36, %s4235_s8 }
 0x60e   : > { %v1688_v5 = vpop.permute.xlu0 %1687 }
 0x60f   : > { %v5039_v23 = vsel %vm6136_vm12, %v1686_v59, %v1688_v5  ;;  %v5046_v27 = vsel %vm6130_vm0, %v1688_v5, 0  ;;  %vm6142_vm12 = vmmov %vm6130_vm0  ;;  %vm6143_vm0 = vcmask 1039360  }
 0x610   : > { %1759 = vrot.lane.b32.xlu0 %v5039_v23, %s4235_s8  ;;  %1831 = vrot.lane.b32.xlu1 %v5039_v23, %s4247_s16 }
 0x614   : > { %1833 = vrot.lane.b32.xlu0 %v5046_v27, %s4247_s16  ;;  %1761 = vrot.lane.b32.xlu1 %v5046_v27, %s4235_s8 }
 0x616   : > { %v1694_v18 = vpop.permute.xlu1 %1693 }
 0x617   : > { %v5053_v20 = vsel %vm6137_vm4, %v1692_v25, %v1694_v18  ;;  %v5060_v15 = vsel %vm6138_vm9, %v1694_v18, 0  ;;  %vm6144_vm4 = vmmov %vm6143_vm0 }
 0x618   : > { %1839 = vrot.lane.b32.xlu0 %v5053_v20, %s4247_s16  ;;  %1767 = vrot.lane.b32.xlu1 %v5053_v20, %s4235_s8  ;;  %vm6145_vm9 = vmmov %vm6143_vm0 }
 0x61c   : > { %1769 = vrot.lane.b32.xlu0 %v5060_v15, %s4235_s8  ;;  %1841 = vrot.lane.b32.xlu1 %v5060_v15, %s4247_s16 }
 0x61e   : > { %v1700_v24 = vpop.permute.xlu0 %1699 }
 0x61f   : > { %v5067_v34 = vsel %vm6139_vm10, %v1698_v2, %v1700_v24  ;;  %v5074_v55 = vsel %vm6140_vm13, %v1700_v24, 0  ;;  %vm6146_vm10 = vmmov %vm6143_vm0 }
 0x620   : > { %1775 = vrot.lane.b32.xlu0 %v5067_v34, %s4235_s8  ;;  %1847 = vrot.lane.b32.xlu1 %v5067_v34, %s4247_s16  ;;  %vm6147_vm13 = vmmov %vm6143_vm0 }
 0x624   : > { %1849 = vrot.lane.b32.xlu0 %v5074_v55, %s4247_s16  ;;  %1777 = vrot.lane.b32.xlu1 %v5074_v55, %s4235_s8 }
 0x626   : > { %v1706_v13 = vpop.permute.xlu1 %1705 }
 0x627   : > { %v5081_v61 = vsel %vm6141_vm11, %v1704_v26, %v1706_v13  ;;  %v5088_v30 = vsel %vm6142_vm12, %v1706_v13, 0  ;;  %vm6150_vm11 = vmmov %vm6143_vm0 }
 0x628   : > { %1855 = vrot.lane.b32.xlu0 %v5081_v61, %s4247_s16  ;;  %1783 = vrot.lane.b32.xlu1 %v5081_v61, %s4235_s8  ;;  %vm6151_vm12 = vmmov %vm6143_vm0 }
 0x62c   : > { %1785 = vrot.lane.b32.xlu0 %v5088_v30, %s4235_s8  ;;  %1857 = vrot.lane.b32.xlu1 %v5088_v30, %s4247_s16 }
 0x65e   : > { %v1828_v41 = vpop.permute.xlu0 %1827  ;;  %v1756_v14 = vpop.permute.xlu1 %1755 }
 0x65f   : > { %v1884_v1 = vsel %vm863_vm1, %v4983_v56, %v1828_v41 }
 0x660   : > { %v1895_v10 = vsel %vm4696_vm5, %v1884_v1, %v4983_v56 }
 0x662   : > { %v1830_v31 = vpop.permute.xlu0 %1829 }
 0x663   : > { %v1859_v59 = vsel %vm863_vm1, %v1828_v41, %v1830_v31 }
 0x666   : > { %v1758_v32 = vpop.permute.xlu0 %1757  ;;  %v1836_v39 = vpop.permute.xlu1 %1835 }
 0x667   : > { %v1787_v12 = vsel %vm6143_vm0, %v1756_v14, %v1758_v32  ;;  %v1887_v38 = vsel %vm863_vm1, %v4995_v62, %v1836_v39 }
 0x668   : > { %v1911_v35 = vsel %vm4716_vm8, %v1787_v12, %v1895_v10  ;;  %v1899_v43 = vsel %vm4696_vm5, %v1887_v38, %v4995_v62 }
 0x669   : > { %1947 = vrot.lane.b32.xlu1 %v1911_v35, %s4238_s17  ;;  %1927 = vst [vmem:[#allocation4] sm:$0xff] %v1911_v35 }
 0x66a   : > { %v5103_v48 = vpop.permute.xlu0 %1763  ;;  %v1838_v37 = vpop.permute.xlu1 %1837 }
 0x66b   : > { %v1862_v41 = vsel %vm863_vm1, %v1836_v39, %v1838_v37 }
 0x66e   : > { %v5107_v9 = vpop.permute.xlu0 %1843  ;;  %v1766_v57 = vpop.permute.xlu1 %1765 }
 0x66f   : > { %v1790_v40 = vsel %vm6144_vm4, %v5103_v48, %v1766_v57  ;;  %v1890_v45 = vsel %vm863_vm1, %v5009_v22, %v5107_v9  ;;  %vm6152_vm4 = vmmov %vm6143_vm0 }
 0x670   : > { %v1915_v42 = vsel %vm4716_vm8, %v1790_v40, %v1899_v43  ;;  %v1903_v49 = vsel %vm4696_vm5, %v1890_v45, %v5009_v22  ;;  %v1896_v22 = vsel %vm4702_vm6, %v1859_v59, %v4990_v16 }
 0x671   : > { %1949 = vrot.lane.b32.xlu1 %v1915_v42, %s4238_s17  ;;  %1931 = vst [vmem:[#allocation4 + $0x20] sm:$0xff] %v1915_v42 }
 0x672   : > { %v5117_v28 = vpop.permute.xlu0 %1845  ;;  %v5119_v53 = vpop.permute.xlu1 %1771 }
 0x676   : > { %v5124_v46 = vpop.permute.xlu0 %1773  ;;  %v5126_v44 = vpop.permute.xlu1 %1851 }
 0x677   : > { %v1793_v47 = vsel %vm6145_vm9, %v5119_v53, %v5124_v46  ;;  %v1893_v52 = vsel %vm863_vm1, %v5023_v58, %v5126_v44  ;;  %vm6153_vm9 = vmmov %vm6143_vm0 }
 0x678   : > { %v1919_v50 = vsel %vm4716_vm8, %v1793_v47, %v1903_v49  ;;  %v1907_v62 = vsel %vm4696_vm5, %v1893_v52, %v5023_v58  ;;  %vm6148_vm5 = vmmov %vm6143_vm0 }
 0x679   : > { %1951 = vrot.lane.b32.xlu1 %v1919_v50, %s4238_s17  ;;  %1935 = vst [vmem:[#allocation4 + $0x40] sm:$0xff] %v1919_v50 }
 0x67a   : > { %v5137_v51 = vpop.permute.xlu1 %1853  ;;  %v5142_v54 = vpop.permute.xlu0 %1779 }
 0x67e   : > { %v5144_v56 = vpop.permute.xlu1 %1781 }
 0x67f   : > { %v1796_v60 = vsel %vm6146_vm10, %v5142_v54, %v5144_v56  ;;  %vm6154_vm10 = vmmov %vm6143_vm0 }
 0x680   : > { %v1923_v25 = vsel %vm4716_vm8, %v1796_v60, %v1907_v62  ;;  %vm6149_vm8 = vmmov %vm6143_vm0  ;;  %v1868_v62 = vsel %vm863_vm1, %v5126_v44, %v5137_v51 }
 0x681   : > { %1953 = vrot.lane.b32.xlu1 %v1923_v25, %s4238_s17  ;;  %1939 = vst [vmem:[#allocation4 + $0x60] sm:$0xff] %v1923_v25  ;;  %v1908_v44 = vsel %vm4702_vm6, %v1868_v62, %v5030_v36 }
 0x682   : > { %v1760_v0 = vpop.permute.xlu0 %1759  ;;  %v1832_v4 = vpop.permute.xlu1 %1831 }
 0x683   : > { %v1788_v2 = vsel %vm6147_vm13, %v1758_v32, %v1760_v0  ;;  %v1860_v6 = vsel %vm863_vm1, %v1830_v31, %v1832_v4  ;;  %vm6155_vm13 = vmmov %vm6143_vm0 }
 0x684   : > { %v5162_v26 = vsel %vm4710_vm7, %v1788_v2, %v1896_v22  ;;  %v1897_v13 = vsel %vm4686_vm2, %v1860_v6, %v5039_v23  ;;  %v1900_v23 = vsel %vm4702_vm6, %v1862_v41, %v5002_v33 }
 0x685   : > { %1996 = vst [vmem:[#allocation2 + $0x8] sm:$0xff] %v5162_v26  ;;  %3008 = vmatprep.subr.bf16.mxu0 %v5162_v26  ;;  %2441 = vrot.lane.b32.xlu1 %v5162_v26, %s4240_s20 }
 0x686   : > { %v1834_v19 = vpop.permute.xlu0 %1833  ;;  %v1762_v16 = vpop.permute.xlu1 %1761 }
 0x687   : > { %v1861_v58 = vsel %vm863_vm1, %v1832_v4, %v1834_v19  ;;  %v1789_v18 = vsel %vm6148_vm5, %v1760_v0, %v1762_v16  ;;  %v1813_v24 = vsel %vm6149_vm8, %v1762_v16, %v1756_v14  ;;  %vm6156_vm5 = vmmov %vm6143_vm0 }
 0x688   : > { %v1898_v5 = vsel %vm4741_vm14, %v1861_v58, %v5046_v27  ;;  %v1913_v1 = vsel %vm4690_vm3, %v1789_v18, %v1897_v13 }
 0x689   : > { %v5181_v31 = vsel %vm4745_vm15, %v1813_v24, %v1898_v5  ;;  %1967 = vrot.lane.b32.xlu0 %v1913_v1, %s4248_s21  ;;  %1929 = vst [vmem:[#allocation4 + $0x10] sm:$0xff] %v1913_v1  ;;  %2541 = vrot.lane.b32.xlu1 %v5162_v26, %s4241_s9 }
 0x68a   : > { %1930 = vst [vmem:[#allocation4 + $0x18] sm:$0xff] %v5181_v31  ;;  %v1840_v27 = vpop.permute.xlu0 %1839  ;;  %v1768_v14 = vpop.permute.xlu1 %1767 }
 0x68b   : > { %v1863_v32 = vsel %vm863_vm1, %v1838_v37, %v1840_v27  ;;  %v1791_v39 = vsel %vm6150_vm11, %v1766_v57, %v1768_v14  ;;  %v1865_v57 = vsel %vm863_vm1, %v5107_v9, %v5117_v28 }
 0x68c   : > { %v5196_v12 = vsel %vm4710_vm7, %v1791_v39, %v1900_v23  ;;  %v1901_v38 = vsel %vm4686_vm2, %v1863_v32, %v5053_v20  ;;  %v1904_v9 = vsel %vm4702_vm6, %v1865_v57, %v5016_v21  ;;  %vm6157_vm6 = vmmov %vm6143_vm0 }
 0x68d   : > { %2041 = vrot.lane.b32.xlu0 %v5162_v26, %s4235_s8  ;;  %2045 = vrot.lane.b32.xlu1 %v5181_v31, %s4235_s8  ;;  %1999 = vst [vmem:[#allocation2 + $0x20] sm:$0xff] %v5196_v12 }
 0x68e   : > { %v1770_v10 = vpop.permute.xlu0 %1769  ;;  %v1842_v37 = vpop.permute.xlu1 %1841 }
 0x68f   : > { %v1792_v35 = vsel %vm6151_vm12, %v1768_v14, %v1770_v10  ;;  %v1817_v33 = vsel %vm6143_vm0, %v1770_v10, %v5103_v48  ;;  %v1864_v40 = vsel %vm863_vm1, %v1840_v27, %v1842_v37  ;;  %vm6167_vm12 = vmmov %vm6143_vm0  ;;  %vm6168_vm0 = vcmask 883712  }
 0x690   : > { %v1917_v43 = vsel %vm4690_vm3, %v1792_v35, %v1901_v38  ;;  %v1902_v42 = vsel %vm4741_vm14, %v1864_v40, %v5060_v15 }
 0x691   : > { %1933 = vst [vmem:[#allocation4 + $0x30] sm:$0xff] %v1917_v43  ;;  %v5220_v48 = vsel %vm4745_vm15, %v1817_v33, %v1902_v42  ;;  %2141 = vrot.lane.b32.xlu0 %v5162_v26, %s4237_s22  ;;  %2049 = vrot.lane.b32.xlu1 %v5196_v12, %s4235_s8 }
 0x692   : > { %v1776_v20 = vpop.permute.xlu0 %1775  ;;  %1934 = vst [vmem:[#allocation4 + $0x38] sm:$0xff] %v5220_v48  ;;  %v1848_v45 = vpop.permute.xlu1 %1847 }
 0x693   : > { %v1794_v15 = vsel %vm6152_vm4, %v5124_v46, %v1776_v20  ;;  %v1866_v49 = vsel %vm863_vm1, %v5117_v28, %v1848_v45  ;;  %vm6170_vm4 = vcmask 1031168  }
 0x694   : > { %v5234_v47 = vsel %vm4710_vm7, %v1794_v15, %v1904_v9  ;;  %v1905_v60 = vsel %vm4686_vm2, %v1866_v49, %v5067_v34 }
 0x695   : > { %2002 = vst [vmem:[#allocation2 + $0x38] sm:$0xff] %v5234_v47  ;;  %2241 = vrot.lane.b32.xlu0 %v5162_v26, %s4238_s17  ;;  %2149 = vrot.lane.b32.xlu1 %v5196_v12, %s4237_s22 }
 0x696   : > { %v1850_v50 = vpop.permute.xlu0 %1849  ;;  %v1778_v46 = vpop.permute.xlu1 %1777 }
 0x697   : > { %v1867_v21 = vsel %vm863_vm1, %v1848_v45, %v1850_v50  ;;  %v1795_v59 = vsel %vm6153_vm9, %v1776_v20, %v1778_v46  ;;  %v1821_v28 = vsel %vm6154_vm10, %v1778_v46, %v5119_v53  ;;  %vm6171_vm9 = vcmask 900096   ;;  %vm6172_vm10 = vmmov %vm6156_vm5 }
 0x698   : > { %v1906_v52 = vsel %vm4741_vm14, %v1867_v21, %v5074_v55  ;;  %v1921_v55 = vsel %vm4690_vm3, %v1795_v59, %v1905_v60 }
 0x699   : > { %v5258_v25 = vsel %vm4745_vm15, %v1821_v28, %v1906_v52  ;;  %2341 = vrot.lane.b32.xlu0 %v5162_v26, %s4239_s18  ;;  %2249 = vrot.lane.b32.xlu1 %v5196_v12, %s4238_s17  ;;  %1937 = vst [vmem:[#allocation4 + $0x50] sm:$0xff] %v1921_v55 }
 0x69a   : > { %1938 = vst [vmem:[#allocation4 + $0x58] sm:$0xff] %v5258_v25  ;;  %v1856_v53 = vpop.permute.xlu0 %1855  ;;  %v1784_v34 = vpop.permute.xlu1 %1783 }
 0x69b   : > { %v1869_v0 = vsel %vm863_vm1, %v5137_v51, %v1856_v53  ;;  %v1797_v22 = vsel %vm6155_vm13, %v5144_v56, %v1784_v34  ;;  %vm6173_vm13 = vcmask 891904  }
 0x69c   : > { %v5276_v2 = vsel %vm4710_vm7, %v1797_v22, %v1908_v44  ;;  %v1909_v17 = vsel %vm4686_vm2, %v1869_v0, %v5081_v61 }
 0x69d   : > { %1969 = vrot.lane.b32.xlu0 %v1917_v43, %s4248_s21  ;;  %2349 = vrot.lane.b32.xlu1 %v5196_v12, %s4239_s18  ;;  %2005 = vst [vmem:[#allocation2 + $0x50] sm:$0xff] %v5276_v2 }
 0x69e   : > { %v1786_v4 = vpop.permute.xlu0 %1785  ;;  %v1858_v51 = vpop.permute.xlu1 %1857 }
 0x69f   : > { %v1798_v11 = vsel %vm6156_vm5, %v1784_v34, %v1786_v4  ;;  %v1825_v36 = vsel %vm6157_vm6, %v1786_v4, %v5142_v54  ;;  %v1870_v56 = vsel %vm863_vm1, %v1856_v53, %v1858_v51  ;;  %vm6158_vm1 = vcmask 146432   ;;  %v3872_v4 = vld [vmem:[#allocation14 + $0x4] ss:$20 sps:$4 sm:$0xff]   ;;  %vm6174_vm5 = vmmov %vm6170_vm4 }
 0x6a0   : > { %v1925_v6 = vsel %vm4690_vm3, %v1798_v11, %v1909_v17  ;;  %v1910_v19 = vsel %vm4741_vm14, %v1870_v56, %v5088_v30  ;;  %vm6159_vm2 = vmmov %vm6158_vm1  ;;  %vm6162_vm14 = vcmask 556432   ;;  %3199 = vmatprep.mubr.bf16.mxu1 %v3872_v4  ;;  %3040 = vmatprep.mubr.bf16.mxu0 %v3872_v4  ;;  %vm6175_vm6 = vcmask 752640  }
 0x6a1   : > { %1941 = vst [vmem:[#allocation4 + $0x70] sm:$0xff] %v1925_v6  ;;  %v5296_v58 = vsel %vm4745_vm15, %v1825_v36, %v1910_v19  ;;  %2145 = vrot.lane.b32.xlu0 %v5181_v31, %s4237_s22  ;;  %2449 = vrot.lane.b32.xlu1 %v5196_v12, %s4240_s20  ;;  %vm6160_vm3 = vmmov %vm6158_vm1 }
 0x6a2   : > { %vm6161_vm7 = vmmov %vm6158_vm1 }
 0x6a3   : > { %vm6163_vm15 = vmmov %vm6162_vm14 }
 0x6a4   : > { %vm6164_vm8 = vmmov %vm6162_vm14 }
 0x6a5   : > { %2245 = vrot.lane.b32.xlu0 %v5181_v31, %s4238_s17  ;;  %2253 = vrot.lane.b32.xlu1 %v5220_v48, %s4238_s17  ;;  %vm6165_vm11 = vmmov %vm6164_vm8 }
 0x6a9   : > { %1971 = vrot.lane.b32.xlu0 %v1921_v55, %s4248_s21  ;;  %2357 = vrot.lane.b32.xlu1 %v5234_v47, %s4239_s18 }
 0x6ad   : > { %2153 = vrot.lane.b32.xlu0 %v5220_v48, %s4237_s22  ;;  %2457 = vrot.lane.b32.xlu1 %v5234_v47, %s4240_s20 }
 0x6b1   : > { %2053 = vrot.lane.b32.xlu0 %v5220_v48, %s4235_s8  ;;  %2061 = vrot.lane.b32.xlu1 %v5258_v25, %s4235_s8 }
 0x6b5   : > { %2057 = vrot.lane.b32.xlu0 %v5234_v47, %s4235_s8  ;;  %2065 = vrot.lane.b32.xlu1 %v5276_v2, %s4235_s8 }
 0x6b9   : > { %2157 = vrot.lane.b32.xlu0 %v5234_v47, %s4237_s22  ;;  %2165 = vrot.lane.b32.xlu1 %v5276_v2, %s4237_s22 }
 0x6bd   : > { %2257 = vrot.lane.b32.xlu0 %v5234_v47, %s4238_s17  ;;  %2265 = vrot.lane.b32.xlu1 %v5276_v2, %s4238_s17 }
 0x6c1   : > { %1973 = vrot.lane.b32.xlu0 %v1925_v6, %s4248_s21  ;;  %2365 = vrot.lane.b32.xlu1 %v5276_v2, %s4239_s18 }
 0x6c5   : > { %2161 = vrot.lane.b32.xlu0 %v5258_v25, %s4237_s22 }
 0x6c9   : > { %2261 = vrot.lane.b32.xlu0 %v5258_v25, %s4238_s17 }
 0x6cd   : > { %2465 = vrot.lane.b32.xlu0 %v5276_v2, %s4240_s20 }
 0x6d1   : > { %2169 = vrot.lane.b32.xlu0 %v5296_v58, %s4237_s22 }
 0x6db   : > { %v1948_v63 = vpop.permute.xlu1 %1947 }
 0x6dc   : > { %1959 = vst.msk [vmem:[#allocation4] sm:$0xff] %vm6158_vm1, %v1948_v63  ;;  %vm6177_vm1 = vmmov %vm6171_vm9 }
 0x6e3   : > { %v5341_v3 = vld [vmem:[#allocation4] sm:$0xff]  ;;  %v1950_v7 = vpop.permute.xlu1 %1949 }
 0x6e4   : > { %1995 = vst [vmem:[#allocation2] sm:$0xff] %v5341_v3  ;;  %1960 = vst.msk [vmem:[#allocation4 + $0x20] sm:$0xff] %vm6159_vm2, %v1950_v7  ;;  %2439 = vrot.lane.b32.xlu1 %v5341_v3, %s4240_s20  ;;  %2039 = vrot.lane.b32.xlu0 %v5341_v3, %s4235_s8 }
 0x6e5   : > { %3009 = vmatpush1.bf16.msra.mxu0 %v5341_v3  ;;  %vm6178_vm2 = vmmov %vm6172_vm10 }
 0x6e6   : > { %3010 = vmatprep.subr.bf16.mxu0 %v5196_v12 }
 0x6e8   : > { %2139 = vrot.lane.b32.xlu0 %v5341_v3, %s4237_s22 }
 0x6eb   : > { %v5353_v29 = vld [vmem:[#allocation4 + $0x20] sm:$0xff]  ;;  %v1952_v61 = vpop.permute.xlu1 %1951 }
 0x6ec   : > { %1998 = vst [vmem:[#allocation2 + $0x18] sm:$0xff] %v5353_v29  ;;  %1961 = vst.msk [vmem:[#allocation4 + $0x40] sm:$0xff] %vm6160_vm3, %v1952_v61  ;;  %2239 = vrot.lane.b32.xlu0 %v5341_v3, %s4238_s17  ;;  %2047 = vrot.lane.b32.xlu1 %v5353_v29, %s4235_s8 }
 0x6ed   : > { %3011 = vmatpush1.bf16.msra.mxu0 %v5353_v29  ;;  %vm6179_vm3 = vmmov %vm6173_vm13 }
 0x6ee   : > { %3012 = vmatprep.subr.bf16.mxu0 %v5234_v47 }
 0x6f0   : > { %2339 = vrot.lane.b32.xlu0 %v5341_v3, %s4239_s18  ;;  %2147 = vrot.lane.b32.xlu1 %v5353_v29, %s4237_s22 }
 0x6f3   : > { %v5367_v30 = vld [vmem:[#allocation4 + $0x40] sm:$0xff]  ;;  %v1954_v54 = vpop.permute.xlu1 %1953 }
 0x6f4   : > { %2001 = vst [vmem:[#allocation2 + $0x30] sm:$0xff] %v5367_v30  ;;  %1962 = vst.msk [vmem:[#allocation4 + $0x60] sm:$0xff] %vm6161_vm7, %v1954_v54  ;;  %2539 = vrot.lane.b32.xlu0 %v5341_v3, %s4241_s9  ;;  %2247 = vrot.lane.b32.xlu1 %v5353_v29, %s4238_s17 }
 0x6f5   : > { %3013 = vmatpush1.bf16.msra.mxu0 %v5367_v30  ;;  %vm6181_vm7 = vmmov %vm6170_vm4 }
 0x6f6   : > { %3014 = vmatprep.subr.bf16.mxu0 %v5276_v2 }
 0x6f7   : > { %v5381_v16 = vpop.permute.xlu1 %2441 }
 0x6f8   : > { %2347 = vrot.lane.b32.xlu1 %v5353_v29, %s4239_s18  ;;  %2055 = vrot.lane.b32.xlu0 %v5367_v30, %s4235_s8 }
 0x6fb   : > { %v5383_v5 = vld [vmem:[#allocation4 + $0x60] sm:$0xff]  ;;  %v1968_v18 = vpop.permute.xlu0 %1967  ;;  %v5392_v24 = vpop.permute.xlu1 %2541 }
 0x6fc   : > { %2004 = vst [vmem:[#allocation2 + $0x48] sm:$0xff] %v5383_v5  ;;  %1979 = vst.msk [vmem:[#allocation4 + $0x10] sm:$0xff] %vm6162_vm14, %v1968_v18  ;;  %2447 = vrot.lane.b32.xlu1 %v5353_v29, %s4240_s20  ;;  %2155 = vrot.lane.b32.xlu0 %v5367_v30, %s4237_s22 }
 0x6fd   : > { %3015 = vmatpush1.bf16.msra.mxu0 %v5383_v5  ;;  %vm6182_vm14 = vmmov %vm6168_vm0 }
 0x6ff   : > { %v5394_v13 = vpop.permute.xlu0 %2041  ;;  %v5409_v27 = vpop.permute.xlu1 %2045 }
 0x700   : > { %2355 = vrot.lane.b32.xlu1 %v5367_v30, %s4239_s18  ;;  %2255 = vrot.lane.b32.xlu0 %v5367_v30, %s4238_s17 }
 0x703   : > { %v5400_v41 = vld [vmem:[#allocation4 + $0x10] sm:$0xff]  ;;  %v5402_v1 = vpop.permute.xlu0 %2141  ;;  %v5417_v23 = vpop.permute.xlu1 %2049 }
 0x704   : > { %1997 = vst [vmem:[#allocation2 + $0x10] sm:$0xff] %v5400_v41  ;;  %2455 = vrot.lane.b32.xlu0 %v5367_v30, %s4240_s20  ;;  %2063 = vrot.lane.b32.xlu1 %v5383_v5, %s4235_s8 }
 0x707   : > { %v5411_v14 = vpop.permute.xlu0 %2241  ;;  %v5426_v10 = vpop.permute.xlu1 %2149 }
 0x708   : > { %2443 = vrot.lane.b32.xlu0 %v5400_v41, %s4240_s20  ;;  %2163 = vrot.lane.b32.xlu1 %v5383_v5, %s4237_s22 }
 0x70b   : > { %v5419_v32 = vpop.permute.xlu0 %2341  ;;  %v5434_v33 = vpop.permute.xlu1 %2249 }
 0x70c   : > { %2543 = vrot.lane.b32.xlu0 %v5400_v41, %s4241_s9  ;;  %2263 = vrot.lane.b32.xlu1 %v5383_v5, %s4238_s17 }
 0x70f   : > { %v1970_v39 = vpop.permute.xlu0 %1969  ;;  %v5445_v40 = vpop.permute.xlu1 %2349 }
 0x710   : > { %1980 = vst.msk [vmem:[#allocation4 + $0x30] sm:$0xff] %vm6163_vm15, %v1970_v39  ;;  %2363 = vrot.lane.b32.xlu1 %v5383_v5, %s4239_s18  ;;  %vm6184_vm15 = vmmov %vm6177_vm1 }
 0x713   : > { %v5430_v35 = vpop.permute.xlu0 %2145  ;;  %v5458_v42 = vpop.permute.xlu1 %2449 }
 0x714   : > { %2463 = vrot.lane.b32.xlu1 %v5383_v5, %s4240_s20 }
 0x717   : > { %v5436_v37 = vld [vmem:[#allocation4 + $0x30] sm:$0xff]  ;;  %v5438_v38 = vpop.permute.xlu0 %2245  ;;  %v5471_v45 = vpop.permute.xlu1 %2253 }
 0x718   : > { %2000 = vst [vmem:[#allocation2 + $0x28] sm:$0xff] %v5436_v37  ;;  %2051 = vrot.lane.b32.xlu0 %v5436_v37, %s4235_s8  ;;  %2043 = vrot.lane.b32.xlu1 %v5400_v41, %s4235_s8 }
 0x71b   : > { %v1972_v57 = vpop.permute.xlu0 %1971  ;;  %v5483_v50 = vpop.permute.xlu1 %2357 }
 0x71c   : > { %1981 = vst.msk [vmem:[#allocation4 + $0x50] sm:$0xff] %vm6164_vm8, %v1972_v57  ;;  %2151 = vrot.lane.b32.xlu0 %v5436_v37, %s4237_s22  ;;  %2143 = vrot.lane.b32.xlu1 %v5400_v41, %s4237_s22  ;;  %vm6185_vm8 = vmmov %vm6179_vm3 }
 0x71f   : > { %v5452_v43 = vpop.permute.xlu0 %2153  ;;  %v5491_v52 = vpop.permute.xlu1 %2457 }
 0x720   : > { %2251 = vrot.lane.b32.xlu0 %v5436_v37, %s4238_s17  ;;  %2243 = vrot.lane.b32.xlu1 %v5400_v41, %s4238_s17 }
 0x723   : > { %v5460_v20 = vld [vmem:[#allocation4 + $0x50] sm:$0xff]  ;;  %v5462_v9 = vpop.permute.xlu0 %2053  ;;  %v5500_v59 = vpop.permute.xlu1 %2061 }
 0x724   : > { %2003 = vst [vmem:[#allocation2 + $0x40] sm:$0xff] %v5460_v20  ;;  %2351 = vrot.lane.b32.xlu0 %v5436_v37, %s4239_s18  ;;  %2343 = vrot.lane.b32.xlu1 %v5400_v41, %s4239_s18 }
 0x727   : > { %v5469_v15 = vpop.permute.xlu0 %2057  ;;  %v5509_v60 = vpop.permute.xlu1 %2065 }
 0x728   : > { %2451 = vrot.lane.b32.xlu0 %v5436_v37, %s4240_s20  ;;  %2059 = vrot.lane.b32.xlu1 %v5460_v20, %s4235_s8 }
 0x72b   : > { %v5477_v49 = vpop.permute.xlu0 %2157  ;;  %v5521_v55 = vpop.permute.xlu1 %2165 }
 0x72c   : > { %2549 = vrot.lane.b32.xlu0 %v5196_v12, %s4241_s9  ;;  %2269 = vrot.lane.b32.xlu1 %v5296_v58, %s4238_s17 }
 0x72f   : > { %v5485_v21 = vpop.permute.xlu0 %2257  ;;  %v5529_v34 = vpop.permute.xlu1 %2265 }
 0x730   : > { %2359 = vrot.lane.b32.xlu0 %v5460_v20, %s4239_s18  ;;  %2551 = vrot.lane.b32.xlu1 %v5436_v37, %s4241_s9 }
 0x733   : > { %v1974_v46 = vpop.permute.xlu0 %1973  ;;  %v5541_v0 = vpop.permute.xlu1 %2365 }
 0x734   : > { %1982 = vst.msk [vmem:[#allocation4 + $0x70] sm:$0xff] %vm6165_vm11, %v1974_v46  ;;  %2459 = vrot.lane.b32.xlu0 %v5460_v20, %s4240_s20  ;;  %2159 = vrot.lane.b32.xlu1 %v5460_v20, %s4237_s22  ;;  %6166 = vst [vmem:[#allocation23_spill] sm:$0xff] %v5541_v0 }
 0x735   : > { %vm6187_vm11 = vmmov %vm6168_vm0 }
 0x737   : > { %v5511_v62 = vpop.permute.xlu0 %2161 }
 0x738   : > { %2259 = vrot.lane.b32.xlu1 %v5460_v20, %s4238_s17 }
 0x73b   : > { %v5502_v28 = vld [vmem:[#allocation4 + $0x70] sm:$0xff]  ;;  %v5523_v53 = vpop.permute.xlu0 %2261 }
 0x73c   : > { %2006 = vst [vmem:[#allocation2 + $0x58] sm:$0xff] %v5502_v28  ;;  %2067 = vrot.lane.b32.xlu0 %v5502_v28, %s4235_s8  ;;  %2547 = vrot.lane.b32.xlu1 %v5353_v29, %s4241_s9 }
 0x73f   : > { %v5531_v44 = vpop.permute.xlu0 %2465 }
 0x740   : > { %2069 = vrot.lane.b32.xlu0 %v5296_v58, %s4235_s8  ;;  %2557 = vrot.lane.b32.xlu1 %v5234_v47, %s4241_s9  ;;  %s3340_s8 = sshll.u32 %s5970_s10, 4  ;;  %s5985_s8 = int_to_ptr.vmem [resolvable:$true] %s3340_s8 }
 0x743   : > { %v5543_v22 = vpop.permute.xlu0 %2169 }
 0x744   : > { %2545 = vrot.lane.b32.xlu0 %v5181_v31, %s4241_s9  ;;  %2345 = vrot.lane.b32.xlu1 %v5181_v31, %s4239_s18 }
 0x748   : > { %2559 = vrot.lane.b32.xlu0 %v5460_v20, %s4241_s9  ;;  %2553 = vrot.lane.b32.xlu1 %v5220_v48, %s4241_s9 }
 0x74c   : > { %2167 = vrot.lane.b32.xlu0 %v5502_v28, %s4237_s22  ;;  %2563 = vrot.lane.b32.xlu1 %v5383_v5, %s4241_s9 }
 0x750   : > { %2555 = vrot.lane.b32.xlu0 %v5367_v30, %s4241_s9  ;;  %2641 = vrot.lane.b32.xlu1 %v5162_v26, %s4242_s12 }
 0x754   : > { %2565 = vrot.lane.b32.xlu0 %v5276_v2, %s4241_s9  ;;  %2361 = vrot.lane.b32.xlu1 %v5258_v25, %s4239_s18 }
 0x756   : > { %v2040_v11 = vpop.permute.xlu0 %2039  ;;  %v2440_v36 = vpop.permute.xlu1 %2439 }
 0x757   : > { %v5551_v51 = vsel %vm6167_vm12, %v2040_v11, %v5394_v13  ;;  %v5555_v17 = vsel %vm6168_vm0, %v2440_v36, %v5381_v16  ;;  %vm6189_vm12 = vmmov %vm6178_vm2 }
 0x758   : > { %6169 = vst [vmem:[#allocation24_spill] sm:$0xff] %v5555_v17  ;;  %2095 = vst [vmem:[#allocation2 + $0x60] sm:$0xff] %v5551_v51  ;;  %2353 = vrot.lane.b32.xlu0 %v5220_v48, %s4239_s18  ;;  %2569 = vrot.lane.b32.xlu1 %v5296_v58, %s4241_s9 }
 0x75a   : > { %v2140_v56 = vpop.permute.xlu0 %2139 }
 0x75b   : > { %v5564_v6 = vsel %vm6170_vm4, %v2140_v56, %v5402_v1 }
 0x75c   : > { %2267 = vrot.lane.b32.xlu0 %v5502_v28, %s4238_s17  ;;  %2651 = vrot.lane.b32.xlu1 %v5436_v37, %s4242_s12  ;;  %s5983_s17 = scalar_lea.hbm %s6042_s7, %s3720_s23 }
 0x75e   : > { %v2240_v19 = vpop.permute.xlu0 %2239  ;;  %v2048_v63 = vpop.permute.xlu1 %2047 }
 0x75f   : > { %v5572_v7 = vsel %vm6171_vm9, %v2240_v19, %v5411_v14  ;;  %v5576_v61 = vsel %vm6172_vm10, %v2048_v63, %v5417_v23  ;;  %vm6191_vm9 = vmmov %vm6175_vm6 }
 0x760   : > { %2561 = vrot.lane.b32.xlu0 %v5258_v25, %s4241_s9  ;;  %2647 = vrot.lane.b32.xlu1 %v5353_v29, %s4242_s12  ;;  %vm6193_vm10 = vmmov %vm6177_vm1 }
 0x762   : > { %v2340_v54 = vpop.permute.xlu0 %2339  ;;  %v2148_v18 = vpop.permute.xlu1 %2147 }
 0x763   : > { %v5584_v39 = vsel %vm6173_vm13, %v2340_v54, %v5419_v32  ;;  %v5588_v57 = vsel %vm6174_vm5, %v2148_v18, %v5426_v10  ;;  %vm6194_vm13 = vmmov %vm6179_vm3 }
 0x764   : > { %2643 = vrot.lane.b32.xlu0 %v5400_v41, %s4242_s12  ;;  %2657 = vrot.lane.b32.xlu1 %v5234_v47, %s4242_s12  ;;  %vm6196_vm5 = vmmov %vm6168_vm0 }
 0x766   : > { %v2540_v46 = vpop.permute.xlu0 %2539  ;;  %v2248_v4 = vpop.permute.xlu1 %2247 }
 0x767   : > { %v5596_v11 = vsel %vm6175_vm6, %v2540_v46, %v5392_v24  ;;  %v5600_v36 = vsel %vm6177_vm1, %v2248_v4, %v5434_v33  ;;  %vm6197_vm6 = vmmov %vm6178_vm2 }
 0x768   : > { %6176 = vst [vmem:[#allocation25_spill] sm:$0xff] %v5596_v11  ;;  %2639 = vrot.lane.b32.xlu0 %v5341_v3, %s4242_s12  ;;  %2445 = vrot.lane.b32.xlu1 %v5181_v31, %s4240_s20  ;;  %vm6198_vm1 = vmmov %vm6178_vm2 }
 0x76a   : > { %v2056_v56 = vpop.permute.xlu0 %2055  ;;  %v2348_v19 = vpop.permute.xlu1 %2347 }
 0x76b   : > { %v5608_v63 = vsel %vm6178_vm2, %v2056_v56, %v5469_v15  ;;  %v5612_v54 = vsel %vm6179_vm3, %v2348_v19, %v5445_v40  ;;  %vm6199_vm2 = vmmov %vm6198_vm1 }
 0x76c   : > { %6180 = vst [vmem:[#allocation26_spill] sm:$0xff] %v5612_v54  ;;  %2367 = vrot.lane.b32.xlu0 %v5502_v28, %s4239_s18  ;;  %2467 = vrot.lane.b32.xlu1 %v5502_v28, %s4240_s20  ;;  %vm6200_vm3 = vmmov %vm6198_vm1 }
 0x76e   : > { %v2156_v18 = vpop.permute.xlu0 %2155  ;;  %v2448_v46 = vpop.permute.xlu1 %2447 }
 0x76f   : > { %v5620_v4 = vsel %vm6181_vm7, %v2156_v18, %v5477_v49  ;;  %v5624_v56 = vsel %vm6182_vm14, %v2448_v46, %v5458_v42  ;;  %vm6201_vm7 = vmmov %vm6170_vm4 }
 0x770   : > { %6183 = vst [vmem:[#allocation27_spill] sm:$0xff] %v5624_v56  ;;  %2649 = vrot.lane.b32.xlu0 %v5196_v12, %s4242_s12  ;;  %2653 = vrot.lane.b32.xlu1 %v5220_v48, %s4242_s12  ;;  %vm6202_vm14 = vmmov %vm6170_vm4 }
 0x772   : > { %v2256_v19 = vpop.permute.xlu0 %2255  ;;  %v2356_v8 = vpop.permute.xlu1 %2355 }
 0x773   : > { %v5632_v11 = vsel %vm6184_vm15, %v2256_v19, %v5485_v21  ;;  %v5636_v18 = vsel %vm6185_vm8, %v2356_v8, %v5483_v50  ;;  %vm6203_vm15 = vmmov %vm6170_vm4 }
 0x774   : > { %6186 = vst [vmem:[#allocation28_spill] sm:$0xff] %v5636_v18  ;;  %2369 = vrot.lane.b32.xlu0 %v5296_v58, %s4239_s18  ;;  %2663 = vrot.lane.b32.xlu1 %v5383_v5, %s4242_s12  ;;  %vm6204_vm8 = vmmov %vm6170_vm4  ;;  %s3327_s18 = scalar_lea.sflag [#allocation7], %s4552_s14 }
 0x776   : > { %v2456_v46 = vpop.permute.xlu0 %2455  ;;  %v2064_v56 = vpop.permute.xlu1 %2063 }
 0x777   : > { %v5644_v17 = vsel %vm6187_vm11, %v2456_v46, %v5491_v52  ;;  %v5648_v19 = vsel %vm6189_vm12, %v2064_v56, %v5509_v60  ;;  %vm6205_vm11 = vmmov %vm6193_vm10 }
 0x778   : > { %6188 = vst [vmem:[#allocation29_spill] sm:$0xff] %v5644_v17  ;;  %2645 = vrot.lane.b32.xlu0 %v5181_v31, %s4242_s12  ;;  %2741 = vrot.lane.b32.xlu1 %v5162_v26, %s4243_s11  ;;  %vm6206_vm12 = vmmov %vm6193_vm10 }
 0x77a   : > { %v5654_v8 = vpop.permute.xlu0 %2443  ;;  %v2164_v18 = vpop.permute.xlu1 %2163 }
 0x77b   : > { %v5659_v54 = vsel %vm6168_vm0, %v5381_v16, %v5654_v8  ;;  %v5663_v46 = vsel %vm6170_vm4, %v2164_v18, %v5521_v55  ;;  %vm6207_vm0 = vmmov %vm6193_vm10 }
 0x77c   : > { %6190 = vst [vmem:[#allocation30_spill] sm:$0xff] %v5659_v54  ;;  %2659 = vrot.lane.b32.xlu0 %v5460_v20, %s4242_s12  ;;  %2567 = vrot.lane.b32.xlu1 %v5502_v28, %s4241_s9  ;;  %vm6208_vm4 = vmmov %vm6207_vm0  ;;  %s4249_s9 = smov [#allocation17]  }
 0x77e   : > { %v5669_v31 = vpop.permute.xlu0 %2543  ;;  %v2264_v26 = vpop.permute.xlu1 %2263 }
 0x77f   : > { %v5674_v56 = vsel %vm6191_vm9, %v5392_v24, %v5669_v31  ;;  %v5678_v16 = vsel %vm6193_vm10, %v2264_v26, %v5529_v34  ;;  %vm6209_vm9 = vmmov %vm6194_vm13 }
 0x780   : > { %6192 = vst [vmem:[#allocation31_spill] sm:$0xff] %v5674_v56  ;;  %2655 = vrot.lane.b32.xlu0 %v5367_v30, %s4242_s12  ;;  %2461 = vrot.lane.b32.xlu1 %v5258_v25, %s4240_s20  ;;  %vm6210_vm10 = vmmov %vm6209_vm9 }
 0x782   : > { %v2364_v18 = vpop.permute.xlu1 %2363 }
 0x783   : > { %v5686_v17 = vsel %vm6194_vm13, %v2364_v18, %v5541_v0  ;;  %vm6211_vm13 = vmmov %vm6196_vm5 }
 0x784   : > { %6195 = vst [vmem:[#allocation32_spill] sm:$0xff] %v5686_v17  ;;  %2665 = vrot.lane.b32.xlu0 %v5276_v2, %s4242_s12  ;;  %2669 = vrot.lane.b32.xlu1 %v5296_v58, %s4242_s12 }
 0x786   : > { %v2464_v24 = vpop.permute.xlu1 %2463 }
 0x787   : > { %v5694_v26 = vsel %vm6196_vm5, %v2464_v24, %v5531_v44  ;;  %vm6212_vm5 = vmmov %vm6198_vm1 }
 0x788   : > { %2453 = vrot.lane.b32.xlu0 %v5220_v48, %s4240_s20  ;;  %2751 = vrot.lane.b32.xlu1 %v5436_v37, %s4243_s11 }
 0x78a   : > { %v2052_v56 = vpop.permute.xlu0 %2051  ;;  %v2044_v18 = vpop.permute.xlu1 %2043 }
 0x78b   : > { %v2075_v54 = vsel %vm6197_vm6, %v5417_v23, %v2052_v56  ;;  %v5704_v17 = vsel %vm6198_vm1, %v2052_v56, %v5462_v9  ;;  %v2072_v0 = vsel %vm6199_vm2, %v5394_v13, %v2044_v18  ;;  %v5710_v24 = vsel %vm6200_vm3, %v2044_v18, %v5409_v27  ;;  %vm6213_vm6 = vmmov %vm6198_vm1  ;;  %v2714_v56 = vld [vmem:[#allocation4 + $0x38] sm:$0xff] }
 0x78c   : > { %2096 = vst [vmem:[#allocation2 + $0x68] sm:$0xff] %v2072_v0  ;;  %2097 = vst [vmem:[#allocation2 + $0x70] sm:$0xff] %v5710_v24  ;;  %2661 = vrot.lane.b32.xlu0 %v5258_v25, %s4242_s12  ;;  %2667 = vrot.lane.b32.xlu1 %v5502_v28, %s4242_s12  ;;  %vm6215_vm2 = vcmask 752640   ;;  %s4146_s12 = sshll.u32 %s4249_s9, 4  ;;  %s4147_s12 = int_to_ptr.vmem [resolvable:$false] %s4146_s12 }
 0x78d   : > { %3016 = vmatprep.subr.bf16.mxu0 %v2072_v0  ;;  %vm6214_vm1 = vmmov %vm6209_vm9  ;;  %p4149_p11 = scmp.lt.s32.totalorder %s5985_s8, %s4147_s12 }
 0x78e   : > { %v2152_v48 = vpop.permute.xlu0 %2151  ;;  %v2144_v23 = vpop.permute.xlu1 %2143  ;;  %3017 = vmatpush1.bf16.msra.mxu0 %v5551_v51  ;;  %v2928_v51 = vld [vmem:[#allocation16 + $0x8] sm:$0xff]  ;;  %vm6216_vm3 = vmmov %vm6211_vm13 }
 0x78f   : > { %v5720_v13 = vsel %vm6201_vm7, %v5426_v10, %v2152_v48  ;;  %v2176_v27 = vsel %vm6202_vm14, %v2152_v48, %v5452_v43  ;;  %v5726_v9 = vsel %vm6203_vm15, %v5402_v1, %v2144_v23  ;;  %v2173_v25 = vsel %vm6204_vm8, %v2144_v23, %v5430_v35  ;;  %3018 = vmatprep.subr.bf16.mxu0 %v2075_v54  ;;  %vm6217_vm14 = vmmov %vm6201_vm7 }
 0x790   : > { %2743 = vrot.lane.b32.xlu0 %v5400_v41, %s4243_s11  ;;  %2747 = vrot.lane.b32.xlu1 %v5353_v29, %s4243_s11  ;;  %vm6218_vm15 = vmmov %vm6207_vm0 }
 0x791   : > { %3599 = vmatprep.subr.bf16.mxu1 %v2173_v25  ;;  %vm6219_vm8 = vmmov %vm6207_vm0  ;;  %v2718_v25 = vld [vmem:[#allocation4 + $0x58] sm:$0xff] }
 0x792   : > { %v2252_v10 = vpop.permute.xlu0 %2251  ;;  %v2244_v0 = vpop.permute.xlu1 %2243  ;;  %3019 = vmatpush1.bf16.msra.mxu0 %v5576_v61  ;;  %3600 = vmatpush3.bf16.msra.mxu1 %v5400_v41 }
 0x793   : > { %v5738_v1 = vsel %vm6205_vm11, %v5434_v33, %v2252_v10  ;;  %v5742_v35 = vsel %vm6206_vm12, %v2252_v10, %v5471_v45  ;;  %v5746_v43 = vsel %vm6207_vm0, %v5411_v14, %v2244_v0  ;;  %v5750_v29 = vsel %vm6208_vm4, %v2244_v0, %v5438_v38  ;;  %3601 = vmatprep.subr.bf16.mxu1 %v2176_v27  ;;  %vm6220_vm11 = vmmov %vm6212_vm5  ;;  %v2929_v0 = vld [vmem:[#allocation16 + $0x10] sm:$0xff] }
 0x794   : > { %2739 = vrot.lane.b32.xlu0 %v5341_v3, %s4243_s11  ;;  %2757 = vrot.lane.b32.xlu1 %v5234_v47, %s4243_s11  ;;  %vm6221_vm12 = vmmov %vm6215_vm2 }
 0x795   : > { %vm6222_vm0 = vmmov %vm6212_vm5 }
 0x796   : > { %v5756_v41 = vpop.permute.xlu0 %2351  ;;  %v5758_v33 = vpop.permute.xlu1 %2343  ;;  %3602 = vmatpush3.bf16.msra.mxu1 %v5436_v37  ;;  %vm6223_vm4 = vmmov %vm6215_vm2 }
 0x797   : > { %v5764_v14 = vsel %vm6209_vm9, %v5445_v40, %v5756_v41  ;;  %v5769_v38 = vsel %vm6210_vm10, %v5419_v32, %v5758_v33  ;;  %vm6224_vm9 = vmmov %vm6214_vm1 }
 0x798   : > { %2749 = vrot.lane.b32.xlu0 %v5196_v12, %s4243_s11  ;;  %2755 = vrot.lane.b32.xlu1 %v5367_v30, %s4243_s11  ;;  %vm6225_vm10 = vmmov %vm6215_vm2 }
 0x79a   : > { %v5775_v47 = vpop.permute.xlu0 %2451  ;;  %v2060_v3 = vpop.permute.xlu1 %2059 }
 0x79b   : > { %v5780_v37 = vsel %vm6211_vm13, %v5458_v42, %v5775_v47  ;;  %v2078_v40 = vsel %vm6212_vm5, %v5469_v15, %v2060_v3  ;;  %v5786_v32 = vsel %vm6213_vm6, %v2060_v3, %v5500_v59  ;;  %v2710_v42 = vld [vmem:[#allocation4 + $0x18] sm:$0xff]  ;;  %vm6226_vm13 = vmmov %vm6215_vm2 }
 0x79c   : > { %2469 = vrot.lane.b32.xlu0 %v5296_v58, %s4240_s20  ;;  %2765 = vrot.lane.b32.xlu1 %v5276_v2, %s4243_s11  ;;  %vm6227_vm5 = vmmov %vm6201_vm7  ;;  %s4142_s20 = scalar_lea.vmem %s5985_s8, 1536 }
 0x79d   : > { %3020 = vmatprep.subr.bf16.mxu0 %v2078_v40  ;;  %vm6228_vm6 = vmmov %vm6227_vm5  ;;  %p4143_p6 = scmp.ne.s32.totalorder %s5985_s8, %s4142_s20 }
 0x79e   : > { %v2550_v12 = vpop.permute.xlu0 %2549  ;;  %v5792_v30 = vpop.permute.xlu1 %2269  ;;  %3021 = vmatpush1.bf16.msra.mxu0 %v5608_v63 }
 0x79f   : > { %p4144_p10 = pnand %p4143_p6, %p6280_p5 }
 0x7a0   : > { %2745 = vrot.lane.b32.xlu0 %v2710_v42, %s4243_s11  ;;  %2763 = vrot.lane.b32.xlu1 %v5383_v5, %s4243_s11 }
 0x7a1   : > { %p4145_p1 = pneg %p4144_p10 }
 0x7a2   : > { %v5798_v15 = vpop.permute.xlu0 %2359  ;;  %v2552_v45 = vpop.permute.xlu1 %2551 }
 0x7a3   : > { %v5803_v59 = vsel %vm6214_vm1, %v5483_v50, %v5798_v15  ;;  %v5806_v2 = vsel %vm6215_vm2, %v2550_v12, %v2552_v45  ;;  %vm6229_vm1 = vmmov %vm6215_vm2 }
 0x7a4   : > { %2759 = vrot.lane.b32.xlu0 %v5460_v20, %s4243_s11  ;;  %2769 = vrot.lane.b32.xlu1 %v5296_v58, %s4243_s11  ;;  %v2930_v58 = vld [vmem:[#allocation16 + $0x18] sm:$0xff]  ;;  %vm6230_vm2 = vmmov %vm6229_vm1 }
 0x7a6   : > { %v5812_v61 = vpop.permute.xlu0 %2459  ;;  %v2160_v5 = vpop.permute.xlu1 %2159 }
 0x7a7   : > { %v5817_v63 = vsel %vm6216_vm3, %v5491_v52, %v5812_v61  ;;  %v2178_v50 = vsel %vm6201_vm7, %v5477_v49, %v2160_v5  ;;  %v2179_v54 = vsel %vm6217_vm14, %v2160_v5, %v5511_v62  ;;  %vm6231_vm3 = vmmov %vm6224_vm9 }
 0x7a8   : > { %2753 = vrot.lane.b32.xlu0 %v2714_v56, %s4243_s11  ;;  %2938 = vperm.xlu1 %3851, %v2928_v51   ;;  %vm6232_vm7 = vmmov %vm6231_vm3 }
 0x7a9   : > { %3603 = vmatprep.subr.bf16.mxu1 %v2179_v54  ;;  %vm6233_vm14 = vmmov %vm6219_vm8 }
 0x7aa   : > { %v2260_v18 = vpop.permute.xlu1 %2259  ;;  %3604 = vmatpush3.bf16.msra.mxu1 %v5460_v20  ;;  %v2927_v20 = vld [vmem:[#allocation16] sm:$0xff] }
 0x7ab   : > { %v2278_v48 = vsel %vm6218_vm15, %v5485_v21, %v2260_v18  ;;  %v2279_v52 = vsel %vm6219_vm8, %v2260_v18, %v5523_v53  ;;  %vm6234_vm15 = vmmov %vm6219_vm8 }
 0x7ac   : > { %2767 = vrot.lane.b32.xlu0 %v5502_v28, %s4243_s11  ;;  %2948 = vperm.xlu1 %3851, %v2930_v58   ;;  %vm6235_vm8 = vmmov %vm6229_vm1  ;;  %v6240_v58 = vld [vmem:[#allocation28_spill] sm:$0xff] }
 0x7ae   : > { %v2068_v49 = vpop.permute.xlu0 %2067  ;;  %v2548_v62 = vpop.permute.xlu1 %2547 }
 0x7af   : > { %v2081_v23 = vsel %vm6220_vm11, %v5509_v60, %v2068_v49  ;;  %v5834_v27 = vsel %vm6221_vm12, %v2548_v62, %v2550_v12  ;;  %vm6236_vm11 = vcmask 744448   ;;  %v6244_v62 = vld [vmem:[#allocation32_spill] sm:$0xff] }
 0x7b0   : > { %2761 = vrot.lane.b32.xlu0 %v2718_v25, %s4243_s11  ;;  %3022 = vmatprep.subr.bf16.mxu0 %v2081_v23  ;;  %vm6238_vm12 = vmmov %vm6236_vm11  ;;  %v6245_v25 = vld [vmem:[#allocation30_spill] sm:$0xff]  ;;  %s4148_s11 = scalar_lea.vmem %s4147_s12, 3072 }
 0x7b1   : > { %3023 = vmatpush1.bf16.msra.mxu0 %v5648_v19  ;;  %p4150_p12 = scmp.lt.s32.totalorder %s4148_s11, %s4142_s20 }
 0x7b2   : > { %v2070_v21 = vpop.permute.xlu0 %2069  ;;  %v2558_v53 = vpop.permute.xlu1 %2557  ;;  %3024 = vmatprep.subr.bf16.mxu0 %v5726_v9 }
 0x7b3   : > { %v2082_v10 = vsel %vm6222_vm0, %v2068_v49, %v2070_v21  ;;  %vm6239_vm0 = vcmask 883712   ;;  %p4151_p13 = por %p4150_p12, %p4149_p11 }
 0x7b4   : > { %2933 = vperm.xlu0 %3850, %v2927_v20  }
 0x7b5   : > { %3025 = vmatpush1.bf16.msra.mxu0 %v5564_v6  ;;  %p4152_p3 = pnand %p4151_p13, %p4145_p1 }
 0x7b6   : > { %v2546_v60 = vpop.permute.xlu0 %2545  ;;  %v2346_v3 = vpop.permute.xlu1 %2345  ;;  %3026 = vmatprep.subr.bf16.mxu0 %v5720_v13 }
 0x7b7   : > { %v2573_v40 = vsel %vm6223_vm4, %v5669_v31, %v2546_v60  ;;  %v2373_v19 = vsel %vm6224_vm9, %v5758_v33, %v2346_v3  ;;  %vm6242_vm4 = vmmov %vm6231_vm3  ;;  %v6251_v3 = vld [vmem:[#allocation27_spill] sm:$0xff] }
 0x7b8   : > { %2943 = vperm.xlu0 %3850, %v2929_v0   ;;  %vm6243_vm9 = vmmov %vm6239_vm0 }
 0x7b9   : > { %3027 = vmatpush1.bf16.msra.mxu0 %v5588_v57 }
 0x7ba   : > { %v2560_v9 = vpop.permute.xlu0 %2559  ;;  %v2554_v12 = vpop.permute.xlu1 %2553  ;;  %3028 = vmatprep.subr.bf16.mxu0 %v2178_v50 }
 0x7bb   : > { %v5848_v42 = vsel %vm6225_vm10, %v2558_v53, %v2560_v9  ;;  %v2576_v6 = vsel %vm6226_vm13, %v2552_v45, %v2554_v12  ;;  %v6237_v45 = vld [vmem:[#allocation26_spill] sm:$0xff]  ;;  %vm6246_vm10 = vmmov %vm6236_vm11  ;;  %v6253_v12 = vld [vmem:[#allocation29_spill] sm:$0xff] }
 0x7bc   : > { %vm6247_vm13 = vmmov %vm6246_vm10 }
 0x7bd   : > { %3029 = vmatpush1.bf16.msra.mxu0 %v5620_v4 }
 0x7be   : > { %v2168_v13 = vpop.permute.xlu0 %2167  ;;  %v2564_v51 = vpop.permute.xlu1 %2563 }
 0x7bf   : > { %v2181_v31 = vsel %vm6227_vm5, %v5521_v55, %v2168_v13  ;;  %v2182_v33 = vsel %vm6228_vm6, %v2168_v13, %v5543_v22  ;;  %vm6248_vm5 = vmmov %vm6246_vm10 }
 0x7c0   : > { %3030 = vmatprep.subr.bf16.mxu0 %v2181_v31  ;;  %3605 = vmatprep.subr.bf16.mxu1 %v2182_v33  ;;  %vm6250_vm6 = vmmov %vm6231_vm3 }
 0x7c1   : > { %3031 = vmatpush1.bf16.msra.mxu0 %v5663_v46  ;;  %3606 = vmatpush3.bf16.msra.mxu1 %v5502_v28 }
 0x7c2   : > { %v2556_v57 = vpop.permute.xlu0 %2555  ;;  %v2642_v5 = vpop.permute.xlu1 %2641  ;;  %3032 = vmatprep.subr.bf16.mxu0 %v5746_v43  ;;  %3607 = vmatprep.subr.bf16.mxu1 %v5750_v29 }
 0x7c3   : > { %v5861_v4 = vsel %vm6229_vm1, %v2556_v57, %v2558_v53  ;;  %vm6252_vm1 = vmmov %vm6248_vm5  ;;  %v6257_v57 = vld [vmem:[#allocation31_spill] sm:$0xff] }
 0x7c5   : > { %3033 = vmatpush1.bf16.msra.mxu0 %v5572_v7  ;;  %3608 = vmatpush3.bf16.msra.mxu1 %v5710_v24 }
 0x7c6   : > { %v5865_v55 = vpop.permute.xlu0 %2565  ;;  %v2362_v22 = vpop.permute.xlu1 %2361  ;;  %3034 = vmatprep.subr.bf16.mxu0 %v5738_v1  ;;  %3609 = vmatprep.subr.bf16.mxu1 %v5742_v35 }
 0x7c7   : > { %v5871_v28 = vsel %vm6230_vm2, %v2564_v51, %v5865_v55  ;;  %v2379_v46 = vsel %vm6231_vm3, %v5798_v15, %v2362_v22  ;;  %vm6254_vm2 = vmmov %vm6252_vm1 }
 0x7c8   : > { %vm6255_vm3 = vmmov %vm6235_vm8 }
 0x7c9   : > { %3035 = vmatpush1.bf16.msra.mxu0 %v5600_v36  ;;  %3610 = vmatpush3.bf16.msra.mxu1 %v5704_v17  ;;  %v3870_v36 = vld [vmem:[#allocation14] ss:$20 sps:$4 sm:$0xff]  }
 0x7ca   : > { %v2354_v7 = vpop.permute.xlu0 %2353  ;;  %v5877_v24 = vpop.permute.xlu1 %2569  ;;  %3036 = vmatprep.subr.bf16.mxu0 %v2278_v48  ;;  %3611 = vmatprep.subr.bf16.mxu1 %v2279_v52  ;;  %v6241_v52 = vld [vmem:[#allocation23_spill] sm:$0xff] }
 0x7cb   : > { %v2376_v1 = vsel %vm6232_vm7, %v5756_v41, %v2354_v7  ;;  %vm6256_vm7 = vmmov %vm6255_vm3 }
 0x7cd   : > { %3037 = vmatpush1.bf16.msra.mxu0 %v5632_v11  ;;  %3612 = vmatpush3.bf16.msra.mxu1 %v5786_v32  ;;  %v3873_v32 = vld [vmem:[#allocation14 + $0x2c] ss:$20 sps:$4 sm:$0xff]  }
 0x7ce   : > { %v2268_v35 = vpop.permute.xlu0 %2267  ;;  %v2652_v43 = vpop.permute.xlu1 %2651 }
 0x7cf   : > { %v2281_v29 = vsel %vm6233_vm14, %v5529_v34, %v2268_v35  ;;  %v2282_v17 = vsel %vm6234_vm15, %v2268_v35, %v5792_v30  ;;  %vm6258_vm14 = vmmov %vm6252_vm1 }
 0x7d0   : > { %3038 = vmatprep.subr.bf16.mxu0 %v2281_v29  ;;  %3613 = vmatprep.subr.bf16.mxu1 %v2282_v17  ;;  %vm6259_vm15 = vmmov %vm6239_vm0 }
 0x7d1   : > { %3039 = vmatpush1.bf16.msra.mxu0 %v5678_v16  ;;  %3614 = vmatpush3.bf16.msra.mxu1 %v2082_v10  ;;  %v6249_v10 = vld [vmem:[#allocation24_spill] sm:$0xff] }
 0x7d2   : > { %v2562_v15 = vpop.permute.xlu0 %2561  ;;  %v2648_v41 = vpop.permute.xlu1 %2647  ;;  %3061 = vmatprep.subr.bf16.mxu0 %v5769_v38  ;;  %3627 = vmatprep.subr.bf16.mxu1 %v2573_v40  ;;  %v3875_v38 = vld [vmem:[#allocation14 + $0x28] ss:$20 sps:$4 sm:$0xff]  }
 0x7d3   : > { %v2579_v11 = vsel %vm6235_vm8, %v2560_v9, %v2562_v15  ;;  %vm6261_vm8 = vmmov %vm6252_vm1 }
 0x7d4   : > { %3200 = vmatmul.mubr.bf16.vlgmr.msra.gmra.mrb[36].mxu1 %v3870_v36  ;;  %3041 = vmatmul.mubr.bf16.vlgmr.msra.gmra.mrb[4].mxu0 %v3870_v36 }
 0x7d5   : > { %3062 = vmatpush1.bf16.msra.mxu0 %v5584_v39  ;;  %3628 = vmatpush3.bf16.msra.mxu1 %v2373_v19  ;;  %v3878_v39 = vld [vmem:[#allocation14 + $0xc] ss:$20 sps:$4 sm:$0xff]  }
 0x7d6   : > { %v2644_v34 = vpop.permute.xlu0 %2643  ;;  %v2658_v30 = vpop.permute.xlu1 %2657  ;;  %3063 = vmatprep.subr.bf16.mxu0 %v5764_v14  ;;  %3629 = vmatprep.subr.bf16.mxu1 %v2576_v6 }
 0x7d7   : > { %v5893_v16 = vsel %vm6236_vm11, %v2642_v5, %v2644_v34  ;;  %3207 = vmatprep.mubr.bf16.mxu1 %v3873_v32  ;;  %3050 = vmatprep.mubr.bf16.mxu0 %v3873_v32  ;;  %vm6262_vm11 = vmmov %vm6239_vm0 }
 0x7d9   : > { %3064 = vmatpush1.bf16.msra.mxu0 %v6237_v45  ;;  %3630 = vmatpush3.bf16.msra.mxu1 %v2376_v1  ;;  %v3876_v45 = vld [vmem:[#allocation14 + $0x8] ss:$20 sps:$4 sm:$0xff]  }
 0x7da   : > { %v2640_v50 = vpop.permute.xlu0 %2639  ;;  %v2446_v54 = vpop.permute.xlu1 %2445  ;;  %3065 = vmatprep.subr.bf16.mxu0 %v5803_v59  ;;  %3631 = vmatprep.subr.bf16.mxu1 %v2579_v11 }
 0x7db   : > { %v5898_v56 = vsel %vm6238_vm12, %v2640_v50, %v2642_v5  ;;  %v2473_v14 = vsel %vm6239_vm0, %v5654_v8, %v2446_v54  ;;  %vm6263_vm12 = vmmov %vm6252_vm1 }
 0x7dc   : > { %3208 = vmatmul.mubr.bf16.gmra.mrb[40].mxu1 %v3875_v38  ;;  %3051 = vmatmul.mubr.bf16.gmra.mrb[8].mxu0 %v3875_v38  ;;  %vm6264_vm0 = vmmov %vm6252_vm1 }
 0x7dd   : > { %3066 = vmatpush1.bf16.msra.mxu0 %v6240_v58  ;;  %3632 = vmatpush3.bf16.msra.mxu1 %v2379_v46  ;;  %v6260_v46 = vld [vmem:[#allocation25_spill] sm:$0xff] }
 0x7de   : > { %v2368_v18 = vpop.permute.xlu0 %2367  ;;  %v5903_v48 = vpop.permute.xlu1 %2467  ;;  %3248 = vmatprep.mubr.bf16.mxu1 %v3878_v39  ;;  %3093 = vmatprep.mubr.bf16.mxu0 %v3878_v39  ;;  %v3879_v39 = vld [vmem:[#allocation14 + $0x34] ss:$20 sps:$4 sm:$0xff]  }
 0x7df   : > { %v2381_v59 = vsel %vm6242_vm4, %v6241_v52, %v2368_v18  ;;  %v2481_v49 = vsel %vm6243_vm9, %v5531_v44, %v5903_v48  ;;  %vm6265_vm4 = vmmov %vm6264_vm0  ;;  %vm6266_vm9 = vcmask 736256  }
 0x7e0   : > { %3067 = vmatprep.subr.bf16.mxu0 %v2381_v59 }
 0x7e1   : > { %3068 = vmatpush1.bf16.msra.mxu0 %v6244_v62 }
 0x7e2   : > { %v2650_v8 = vpop.permute.xlu0 %2649  ;;  %v2654_v23 = vpop.permute.xlu1 %2653  ;;  %3069 = vmatprep.subr.bf16.mxu0 %v6245_v25 }
 0x7e3   : > { %v5913_v20 = vsel %vm6246_vm10, %v2648_v41, %v2650_v8  ;;  %v2675_v21 = vsel %vm6247_vm13, %v2650_v8, %v2652_v43  ;;  %v2676_v53 = vsel %vm6248_vm5, %v2652_v43, %v2654_v23  ;;  %vm6267_vm10 = vmmov %vm6266_vm9  ;;  %v6276_v23 = vmov 0  }
 0x7e4   : > { %vm6268_vm13 = vmmov %vm6266_vm9 }
 0x7e5   : > { %3070 = vmatpush1.bf16.msra.mxu0 %v6249_v10  ;;  %vm6269_vm5 = vmmov %vm6266_vm9  ;;  %v3883_v10 = vld [vmem:[#allocation14 + $0x38] ss:$20 sps:$4 sm:$0xff]  }
 0x7e6   : > { %v2370_v0 = vpop.permute.xlu0 %2369  ;;  %v2664_v60 = vpop.permute.xlu1 %2663  ;;  %3071 = vmatprep.subr.bf16.mxu0 %v5780_v37 }
 0x7e7   : > { %v2382_v44 = vsel %vm6250_vm6, %v2368_v18, %v2370_v0  ;;  %vm6270_vm6 = vmmov %vm6269_vm5 }
 0x7e9   : > { %3072 = vmatpush1.bf16.msra.mxu0 %v6251_v3 }
 0x7ea   : > { %v2646_v40 = vpop.permute.xlu0 %2645  ;;  %v2742_v19 = vpop.permute.xlu1 %2741  ;;  %3073 = vmatprep.subr.bf16.mxu0 %v5817_v63 }
 0x7eb   : > { %v2673_v9 = vsel %vm6252_vm1, %v2644_v34, %v2646_v40  ;;  %vm6271_vm1 = vmmov %vm6262_vm11 }
 0x7ed   : > { %3074 = vmatpush1.bf16.msra.mxu0 %v6253_v12 }
 0x7ee   : > { %v2660_v6 = vpop.permute.xlu0 %2659  ;;  %v2568_v13 = vpop.permute.xlu1 %2567  ;;  %3075 = vmatprep.subr.bf16.mxu0 %v2481_v49  ;;  %v3882_v49 = vld [vmem:[#allocation14 + $0x10] ss:$20 sps:$4 sm:$0xff]  }
 0x7ef   : > { %v2678_v51 = vsel %vm6254_vm2, %v2658_v30, %v2660_v6  ;;  %v2581_v37 = vsel %vm6255_vm3, %v5865_v55, %v2568_v13  ;;  %v2582_v31 = vsel %vm6256_vm7, %v2568_v13, %v5877_v24  ;;  %vm6272_vm2 = vmmov %vm6269_vm5 }
 0x7f0   : > { %3633 = vmatprep.subr.bf16.mxu1 %v2582_v31  ;;  %vm6273_vm3 = vmmov %vm6272_vm2 }
 0x7f1   : > { %3076 = vmatpush1.bf16.msra.mxu0 %v5694_v26  ;;  %3634 = vmatpush3.bf16.msra.mxu1 %v2382_v44  ;;  %vm6274_vm7 = vmmov %vm6272_vm2 }
 0x7f2   : > { %v2656_v63 = vpop.permute.xlu0 %2655  ;;  %v2462_v33 = vpop.permute.xlu1 %2461  ;;  %3077 = vmatprep.subr.bf16.mxu0 %v6257_v57  ;;  %3635 = vmatprep.subr.bf16.mxu1 %v2673_v9 }
 0x7f3   : > { %v2677_v5 = vsel %vm6258_vm14, %v2656_v63, %v2658_v30  ;;  %v2479_v22 = vsel %vm6259_vm15, %v5812_v61, %v2462_v33  ;;  %vm6275_vm14 = vmmov %vm6272_vm2  ;;  %vm3001_vm15 = vcmask 523264  }
 0x7f5   : > { %3078 = vmatpush1.bf16.msra.mxu0 %v6260_v46  ;;  %3636 = vmatpush3.bf16.msra.mxu1 %v2473_v14 }
 0x7f6   : > { %v2666_v55 = vpop.permute.xlu0 %2665  ;;  %v2670_v7 = vpop.permute.xlu1 %2669  ;;  %3079 = vmatprep.subr.bf16.mxu0 %v5806_v2  ;;  %3637 = vmatprep.subr.bf16.mxu1 %v2676_v53 }
 0x7f7   : > { %v2680_v26 = vsel %vm6261_vm8, %v2664_v60, %v2666_v55  ;;  %vm6277_vm8 = vmmov %vm6272_vm2 }
 0x7f9   : > { %3080 = vmatpush1.bf16.msra.mxu0 %v5834_v27 }
 0x7fa   : > { %v2454_v24 = vpop.permute.xlu0 %2453  ;;  %v2752_v1 = vpop.permute.xlu1 %2751  ;;  %3081 = vmatprep.subr.bf16.mxu0 %v5848_v42 }
 0x7fb   : > { %v2476_v35 = vsel %vm6262_vm11, %v5775_v47, %v2454_v24  ;;  %vm6278_vm11 = vmmov %vm6272_vm2 }
 0x7fc   : > { %3638 = vmatpush3.bf16.msra.mxu1 %v2476_v35 }
 0x7fd   : > { %3082 = vmatpush1.bf16.msra.mxu0 %v5861_v4 }
 0x7fe   : > { %v2662_v61 = vpop.permute.xlu0 %2661  ;;  %v2668_v43 = vpop.permute.xlu1 %2667  ;;  %3083 = vmatprep.subr.bf16.mxu0 %v2581_v37 }
 0x7ff   : > { %v2679_v2 = vsel %vm6263_vm12, %v2660_v6, %v2662_v61  ;;  %v2681_v29 = vsel %vm6264_vm0, %v2666_v55, %v2668_v43  ;;  %v2682_v17 = vsel %vm6265_vm4, %v2668_v43, %v2670_v7  ;;  %vm6279_vm12 = vmmov %vm6272_vm2 }
 0x800   : > { %3639 = vmatprep.subr.bf16.mxu1 %v2679_v2 }
 0x801   : > { %3084 = vmatpush1.bf16.msra.mxu0 %v5871_v28  ;;  %3640 = vmatpush3.bf16.msra.mxu1 %v2479_v22 }
 0x802   : > { %v2744_v27 = vpop.permute.xlu0 %2743  ;;  %v2748_v42 = vpop.permute.xlu1 %2747  ;;  %3085 = vmatprep.subr.bf16.mxu0 %v5893_v16  ;;  %3641 = vmatprep.subr.bf16.mxu1 %v2682_v17 }
 0x803   : > { %v2772_v47 = vsel %vm6266_vm9, %v2742_v19, %v2744_v27 }
 0x805   : > { %3086 = vmatpush1.bf16.msra.mxu0 %v5898_v56 }
 0x806   : > { %v2740_v4 = vpop.permute.xlu0 %2739  ;;  %v2758_v36 = vpop.permute.xlu1 %2757  ;;  %3087 = vmatprep.subr.bf16.mxu0 %v2675_v21 }
 0x807   : > { %v2771_v15 = vsel %vm6267_vm10, %v2740_v4, %v2742_v19 }
 0x809   : > { %3088 = vmatpush1.bf16.msra.mxu0 %v5913_v20 }
 0x80a   : > { %v2750_v41 = vpop.permute.xlu0 %2749  ;;  %v2756_v11 = vpop.permute.xlu1 %2755  ;;  %3089 = vmatprep.subr.bf16.mxu0 %v2678_v51 }
 0x80b   : > { %v2774_v28 = vsel %vm6268_vm13, %v2748_v42, %v2750_v41  ;;  %v2775_v32 = vsel %vm6269_vm5, %v2750_v41, %v2752_v1  ;;  %v2777_v34 = vsel %vm6270_vm6, %v2756_v11, %v2758_v36 }
 0x80d   : > { %3090 = vmatpush1.bf16.msra.mxu0 %v2677_v5 }
 0x80e   : > { %v2470_v30 = vpop.permute.xlu0 %2469  ;;  %v2766_v16 = vpop.permute.xlu1 %2765  ;;  %3091 = vmatprep.subr.bf16.mxu0 %v2681_v29 }
 0x80f   : > { %v2482_v38 = vsel %vm6271_vm1, %v5903_v48, %v2470_v30  ;;  %v3881_v48 = vld [vmem:[#allocation14 + $0x30] ss:$20 sps:$4 sm:$0xff]  }
 0x810   : > { %3642 = vmatpush3.bf16.msra.mxu1 %v2482_v38 }
 0x811   : > { %3092 = vmatpush1.bf16.msra.mxu0 %v2680_v26 }
 0x812   : > { %v2746_v50 = vpop.permute.xlu0 %2745  ;;  %v2764_v54 = vpop.permute.xlu1 %2763  ;;  %3114 = vmatprep.subr.bf16.mxu0 %v2772_v47 }
 0x813   : > { %v2773_v56 = vsel %vm6272_vm2, %v2744_v27, %v2746_v50  ;;  %v2780_v14 = vsel %vm6273_vm3, %v2764_v54, %v2766_v16  ;;  %3249 = vmatmul.mubr.bf16.vlgmr.msra.gmra.mrb[44].mxu1 %v3876_v45 }
 0x814   : > { %3094 = vmatmul.mubr.bf16.vlgmr.msra.gmra.mrb[4].mxu0 %v3876_v45  ;;  %3675 = vmatprep.subr.bf16.mxu1 %v2773_v56 }
 0x815   : > { %3115 = vmatpush1.bf16.msra.mxu0 %v2771_v15  ;;  %3676 = vmatpush3.bf16.msra.mxu1 %v2773_v56 }
 0x816   : > { %v2760_v58 = vpop.permute.xlu0 %2759  ;;  %3116 = vmatprep.subr.bf16.mxu0 %v2775_v32  ;;  %3256 = vmatprep.mubr.bf16.mxu1 %v3879_v39  ;;  %v2770_v62 = vpop.permute.xlu1 %2769 }
 0x817   : > { %v2778_v18 = vsel %vm6274_vm7, %v2758_v36, %v2760_v58  ;;  %3103 = vmatprep.mubr.bf16.mxu0 %v3879_v39 }
 0x819   : > { %3117 = vmatpush1.bf16.msra.mxu0 %v2774_v28 }
 0x81a   : > { %v2754_v52 = vpop.permute.xlu0 %2753  ;;  %3118 = vmatprep.subr.bf16.mxu0 %v2778_v18 }
 0x81b   : > { %v2776_v59 = vsel %vm6275_vm14, %v2752_v1, %v2754_v52  ;;  %3257 = vmatmul.mubr.bf16.gmra.mrb[48].mxu1 %v3881_v48 }
 0x81c   : > { %3104 = vmatmul.mubr.bf16.gmra.mrb[8].mxu0 %v3881_v48  ;;  %3677 = vmatprep.subr.bf16.mxu1 %v2776_v59 }
 0x81d   : > { %3119 = vmatpush1.bf16.msra.mxu0 %v2777_v34  ;;  %3678 = vmatpush3.bf16.msra.mxu1 %v2776_v59 }
 0x81e   : > { %v2768_v8 = vpop.permute.xlu0 %2767  ;;  %3146 = vmatprep.mubr.bf16.mxu0 %v6276_v23  ;;  %3683 = vmatprep.mubr.msk.bf16.mxu1 %vm3001_vm15, %v3882_v49 }
 0x81f   : > { %v2781_v25 = vsel %vm6277_vm8, %v2766_v16, %v2768_v8  ;;  %v2782_v20 = vsel %vm6278_vm11, %v2768_v8, %v2770_v62 }
 0x820   : > { %3120 = vmatprep.subr.bf16.mxu0 %v2781_v25 }
 0x821   : > { %3121 = vmatpush1.bf16.msra.mxu0 %v2780_v14 }
 0x822   : > { %v2762_v21 = vpop.permute.xlu0 %2761 }
 0x823   : > { %v2779_v53 = vsel %vm6279_vm12, %v2760_v58, %v2762_v21 }
 0x824   : > { %3585 = vmatmul.mubr.msk.bf16.vlgmr.msra.gmra.mrb[4].mxu0 %vm3001_vm15, %v3882_v49  ;;  %3679 = vmatprep.subr.bf16.mxu1 %v2779_v53 }
 0x825   : > { %3680 = vmatpush3.bf16.msra.mxu1 %v2779_v53  ;;  %3156 = vmatprep.mubr.bf16.mxu0 %v6276_v23 }
 0x826   : > { %3681 = vmatprep.subr.bf16.mxu1 %v2782_v20 }
 0x827   : > { %v2939_v46 = vpop.permute.xlu1 %2938 }
 0x829   : > { %3682 = vmatpush3.bf16.msra.mxu1 %v2782_v20 }
 0x82b   : > { %v2949_v27 = vpop.permute.xlu1 %2948 }
 0x82c   : > { %3586 = vmatmul.mubr.msk.bf16.gmra.mrb[8].mxu0 %vm3001_vm15, %v3883_v10  ;;  %3684 = vmatmul.mubr.msk.bf16.vlgmr.msra.gmra.mrb[52].mxu1 %vm3001_vm15, %v3883_v10 }
 0x833   : > { %v2934_v63 = vpop.permute.xlu0 %2933 }
 0x837   : > { %v2944_v61 = vpop.permute.xlu0 %2943 }
 0x8a7   : > { %v3615_v0 = vpop.f32.mrb[36].mxu1 }
 0x8a8   : > { %v3616_v60 = vpop.f32.mrb[37].mxu1 }
 0x8a9   : > { %v3617_v44 = vadd.f32 %v3616_v60, %v3615_v0  ;;  %v3618_v3 = vpop.f32.mrb[38].mxu1 }
 0x8aa   : > { %v3619_v40 = vpop.f32.mrb[39].mxu1 }
 0x8ab   : > { %v3620_v19 = vadd.f32 %v3619_v40, %v3618_v3  ;;  %v3202_v57 = vadd.f32 %v3617_v44, %v2934_v63 }
 0x8ad   : > { %v3205_v7 = vadd.f32 %v3620_v19, %v2939_v46 }
 0x8af   : > { %v3621_v9 = vpop.f32.mrb[40].mxu1 }
 0x8b0   : > { %v3622_v12 = vpop.f32.mrb[41].mxu1 }
 0x8b1   : > { %v3623_v6 = vadd.f32 %v3622_v12, %v3621_v9  ;;  %v3624_v13 = vpop.f32.mrb[42].mxu1 }
 0x8b2   : > { %v3625_v51 = vpop.f32.mrb[43].mxu1 }
 0x8b3   : > { %v3626_v37 = vadd.f32 %v3625_v51, %v3624_v13  ;;  %v3210_v2 = vadd.f32 %v3623_v6, %v2944_v61 }
 0x8b5   : > { %v3213_v47 = vadd.f32 %v3626_v37, %v2949_v27 }
 0x8e6   : > { %v3643_v31 = vpop.f32.mrb[44].mxu1 }
 0x8e7   : > { %v3644_v33 = vpop.f32.mrb[45].mxu1 }
 0x8e8   : > { %v3645_v5 = vadd.f32 %v3644_v33, %v3643_v31  ;;  %v3646_v22 = vpop.f32.mrb[46].mxu1 }
 0x8e9   : > { %v3647_v55 = vpop.f32.mrb[47].mxu1 }
 0x8ea   : > { %v3648_v26 = vadd.f32 %v3647_v55, %v3646_v22  ;;  %v3251_v24 = vadd.f32 %v3645_v5, %v3202_v57 }
 0x8ec   : > { %v3254_v1 = vadd.f32 %v3648_v26, %v3205_v7 }
 0x8ee   : > { %v3649_v35 = vpop.f32.mrb[48].mxu1 }
 0x8ef   : > { %v3650_v43 = vpop.f32.mrb[49].mxu1 }
 0x8f0   : > { %v3651_v29 = vadd.f32 %v3650_v43, %v3649_v35  ;;  %v3652_v17 = vpop.f32.mrb[50].mxu1 }
 0x8f1   : > { %v3653_v42 = vpop.f32.mrb[51].mxu1 }
 0x8f2   : > { %v3654_v4 = vadd.f32 %v3653_v42, %v3652_v17  ;;  %v3259_v36 = vadd.f32 %v3651_v29, %v3210_v2 }
 0x8f4   : > { %v3262_v15 = vadd.f32 %v3654_v4, %v3213_v47 }
 0x8f7   : > { %v3148_v41 = vpop.f32.mrb[4].mxu0 }
 0x8f8   : > { %v3687_v11 = vadd.f32 %v3148_v41, %v2934_v63  ;;  %v3150_v28 = vpop.f32.mrb[5].mxu0 }
 0x8f9   : > { %v3688_v32 = vadd.f32 %v3150_v28, %v2934_v63  ;;  %v3152_v34 = vpop.f32.mrb[6].mxu0 }
 0x8fa   : > { %3314 = vst [vmem:[%s5970_s10] sm:$0xff] %v3687_v11  ;;  %v3689_v30 = vadd.f32 %v3152_v34, %v2939_v46  ;;  %v3154_v16 = vpop.f32.mrb[7].mxu0 }
 0x8fb   : > { %3315 = vst [vmem:[%s5970_s10 + $0x8] sm:$0xff] %v3688_v32  ;;  %v3690_v38 = vadd.f32 %v3154_v16, %v2939_v46 }
 0x8fc   : > { %3317 = vst [vmem:[%s5970_s10 + $0x18] sm:$0xff] %v3689_v30 }
 0x8fd   : > { %3318 = vst [vmem:[%s5970_s10 + $0x20] sm:$0xff] %v3690_v38 }
 0x8ff   : > { %v3158_v45 = vpop.f32.mrb[8].mxu0  ;;  %v3685_v50 = vpop.f32.mrb[52].mxu1 }
 0x900   : > { %v3691_v54 = vadd.f32 %v3158_v45, %v2944_v61  ;;  %v3308_v39 = vadd.f32 %v3685_v50, %v3259_v36  ;;  %v3160_v56 = vpop.f32.mrb[9].mxu0  ;;  %v3299_v14 = vpop.f32.mrb[53].mxu1 }
 0x901   : > { %v3692_v58 = vadd.f32 %v3160_v56, %v2944_v61  ;;  %v3300_v18 = vadd.f32 %v3299_v14, %v3251_v24  ;;  %v3162_v48 = vpop.f32.mrb[10].mxu0  ;;  %v3686_v52 = vpop.f32.mrb[54].mxu1 }
 0x902   : > { %3320 = vst [vmem:[%s5970_s10 + $0x30] sm:$0xff] %v3691_v54  ;;  %3322 = vst [vmem:[%s5970_s10 + $0x40] sm:$0xff] %v3308_v39  ;;  %v3693_v59 = vadd.f32 %v3162_v48, %v2949_v27  ;;  %v3311_v49 = vadd.f32 %v3686_v52, %v3262_v15  ;;  %v3164_v62 = vpop.f32.mrb[11].mxu0  ;;  %v3302_v8 = vpop.f32.mrb[55].mxu1 }
 0x903   : > { %3321 = vst [vmem:[%s5970_s10 + $0x38] sm:$0xff] %v3692_v58  ;;  %3316 = vst [vmem:[%s5970_s10 + $0x10] sm:$0xff] %v3300_v18  ;;  %v3694_v23 = vadd.f32 %v3164_v62, %v2949_v27  ;;  %v3303_v25 = vadd.f32 %v3302_v8, %v3254_v1 }
 0x904   : > { %3323 = vst [vmem:[%s5970_s10 + $0x48] sm:$0xff] %v3693_v59  ;;  %3325 = vst [vmem:[%s5970_s10 + $0x58] sm:$0xff] %v3311_v49 }
 0x905   : > { %3324 = vst [vmem:[%s5970_s10 + $0x50] sm:$0xff] %v3694_v23  ;;  %3319 = vst [vmem:[%s5970_s10 + $0x28] sm:$0xff] %v3303_v25 }
 0x906   : > { %4155 = shalt.err (!%p4152_p3)
}
 0x907   : > { %s4156_s15 = scalar_lea.hbm %s5983_s17, 1536  ;;  %s4160_s28 = scalar_lea.hbm %s6042_s7, 3072 }
 0x908   : > { %p4157_p7 = scmp.ne.s32.totalorder %s5983_s17, %s4156_s15  ;;  %p4161_p8 = scmp.lt.u32.totalorder %s5983_s17, %s6042_s7 }
 0x909   : > { %p4162_p0 = scmp.lt.u32.totalorder %s4160_s28, %s4156_s15  ;;  %p4164_p6 = scmp.lt.u32.totalorder %s4156_s15, %s5983_s17 }
 0x90a   : > { %p4158_p9 = pnand %p4157_p7, %p6280_p5 }
 0x90b   : > { %p4163_p2 = por %p4162_p0, %p4161_p8 }
 0x90c   : > { %p4159_p4 = pneg %p4158_p9 }
 0x90d   : > { %p4165_p10 = por %p4164_p6, %p4163_p2 }
 0x90f   : > { %p4166_p1 = pnand %p4165_p10, %p4159_p4 }
 0x911   : > { %4169 = shalt.err (!%p4166_p1)
}
 0x912   : > { %s4250_s30 = smov 384   ;;  %s4251_s22 = smov 24  }
 0x913   : > { %3747 = dma.vmem_to_hbm [thread:$0]  (%p6280_p5), %s5985_s8, 1536, %s5983_s17, %s3327_s18, %s4250_s30, %s4250_s30, %s4251_s22  }
 0x914 PF: > { %s3355_s20 = sand.u32 1, %s4208_s24   ;;  %p6281_p11 = scmp.ne.s32.totalorder %s6075_s29, 0 }
 0x915   : > { %p6282_p12 = scmp.ge.s32.totalorder %s4220_s27, 2  ;;  %s3356_s9 = scalar_lea.sflag [#allocation7], %s3355_s20 }
 0x917   : > { %p3773_p13 = pnand %p6282_p12, %p6281_p11 }
 0x919   : > { %4203 = dma.done.wait (!%p3773_p13), %s3356_s9, 1536  }
 0x91a   : > { %4205 = vsyncadd (!%p3773_p13), %s3356_s9, 4294965760  ;;  %p23_p3 = scmp.ge.s32.totalorder %s4476_s19, 4   ;;  %s6283_s24 = smov %s4212_s25 }
 0x91b   : > { %s6284_s25 = smov %s4216_s26  ;;  %s6285_s26 = smov %s4487_s13 }
 0x91c   : > { %s6286_s27 = smov %s4476_s19  ;;  %25 = sbr.rel (!%p23_p3) target bundleno = 10 (0xa), region = 117 }
 0x923   :  { %3361 = vsyncpa [#allocation6], 1 }
 0x924   :  { %3363 = vsyncpa [#allocation6 + $0x1], 1 }
 0x925   :  { %3364 = vsyncpa [#allocation9], 1 }
 0x926   :  { %3365 = vsyncpa [#allocation12], 1 }
 0x927   :  { %3366 = vsyncpa [#allocation15], 1 }
 0x928   :  { %3367 = vsyncpa [#allocation7], 1 }
 0x929   :  { %3369 = vsyncpa [#allocation7 + $0x1], 1 }

</bundles_post_ra>
